<compile_context>
chip_gen: v6e
topology: v6e:2x2x1
jax: 0.10.0
libtpu: 0.0.40
codegen_flags: <defaults>
</compile_context>

<pallas_src>
import math
import functools

import jax
import jax.numpy as jnp
from jax import lax
from jax.experimental import pallas as pl
from jax.experimental.pallas import tpu as pltpu


_PAD_ROWS = 8  # sublane-aligned zero-padding block for temporal convs


# ---------------------------------------------------------------------------
# in-kernel helpers
# ---------------------------------------------------------------------------

def _conv1d_im2col(x, w_flat, bias, K, *, zero_pad_output):
    """'same' temporal conv over the sublane (time) axis of a channels-last (T, Cin) tile.

    im2col: the K static shifted slices of a zero-padded tile are concatenated along
    lanes and contracted against the (K*Cin, Cout) reshaped weight in ONE MXU matmul
    (bf16 x bf16 -> f32), replacing K small accumulate passes.

    zero_pad_output=True reproduces Coqui Conv1dBN: a VALID conv whose *output* is
    zero-padded back to length T (edge rows are exactly zero, i.e. no bias on padded
    rows) before ReLU + BatchNorm.
    """
    T, cin = x.shape
    pad_s = (K - 1) // 2
    pad_e = (K - 1) - pad_s

    if K > 1:
        zpad = jnp.zeros((_PAD_ROWS, cin), jnp.float32)
        xp = jnp.concatenate([zpad, x, zpad], axis=0)          # sublane-aligned concat
        cols = [xp[_PAD_ROWS - pad_s + k:_PAD_ROWS - pad_s + k + T, :] for k in range(K)]
        xim = jnp.concatenate(cols, axis=-1)                   # (T, K*Cin)
    else:
        xim = x

    acc = jnp.dot(xim.astype(jnp.bfloat16), w_flat,
                  preferred_element_type=jnp.float32) + bias
    if zero_pad_output and (pad_s or pad_e):
        row = lax.broadcasted_iota(jnp.int32, (T, 1), 0)
        acc = jnp.where((row >= pad_s) & (row < T - pad_e), acc, 0.0)
    return acc


def _layer_norm(z, g, b):
    """TTS glow_tts LayerNorm over the channel (lane) axis, eps=1e-4, f32 statistics."""
    mean = jnp.mean(z, axis=-1, keepdims=True)
    var = jnp.mean((z - mean) ** 2, axis=-1, keepdims=True)
    return (z - mean) * lax.rsqrt(var + 1e-4) * g + b


# ---------------------------------------------------------------------------
# single fused encoder kernel (grid over batch; everything resident in VMEM)
# ---------------------------------------------------------------------------

def _encoder_kernel(x_ref, mc_ref, mr_ref,
                    pw0, pb0, ps0, pt0,
                    pw1, pb1, ps1, pt1,
                    pw2, pb2, ps2, pt2,
                    wqkv_ref, bqkv_ref, wo_ref, bo_ref,
                    ek_ref, ev_ref, g1_ref, be1_ref,
                    fw1_ref, fb1_ref, fw2_ref, fb2_ref, g2_ref, be2_ref,
                    o_ref, *, num_heads, num_layers):
    T = x_ref.shape[1]
    C = wo_ref.shape[1]                    # hidden channels
    dk = C // num_heads
    R = (ek_ref.shape[1] - 1) // 2         # effective rel-attn window
    inv_sqrt_dk = 1.0 / math.sqrt(dk)

    mcol = mc_ref[0]                       # (T, 1) sequence mask
    mrow = mr_ref[0]                       # (1, T) sequence mask

    # ---- prenet: ResidualConv1dBNBlock = 3 x [Conv1dBN(k=5) -> ReLU -> BN] + residuals ----
    def conv_bn(inp, w_r, b_r, s_r, t_r):
        a = _conv1d_im2col(inp, w_r[...], b_r[...], 5, zero_pad_output=True)
        a = jnp.maximum(a, 0.0)            # ReLU
        return a * s_r[...] + t_r[...]     # folded eval-mode BatchNorm1d

    xin = x_ref[0]                         # (T, Cin)
    o0 = conv_bn(xin, pw0, pb0, ps0, pt0)
    if xin.shape[-1] == o0.shape[-1]:      # residual only when channel counts match
        o0 = o0 + xin
    o1 = conv_bn(o0, pw1, pb1, ps1, pt1) + o0
    o2 = conv_bn(o1, pw2, pb2, ps2, pt2) + o1
    x = o2 * mcol                          # o = prenet(x) * x_mask

    # ---- attention constants hoisted ONCE (reused by every layer & every head) ----
    keep = mcol * mrow                     # (T, T) attention mask, 1 = keep
    dij = (lax.broadcasted_iota(jnp.int32, (T, T), 1)
           - lax.broadcasted_iota(jnp.int32, (T, T), 0))      # j - i
    planes = [(dij == r).astype(jnp.float32) for r in range(-R, R + 1)]  # 2R+1 x (T,T)

    # ---- relative-position transformer layers (static unroll; weights indexed at [l]) ----
    for l in range(num_layers):
        x = x * mcol                       # x = x * x_mask at layer entry
        xb = x.astype(jnp.bfloat16)

        # fused q|k|v projection: one (T, C) @ (C, 3C) MXU matmul, bf16 cast once
        qkv = jnp.dot(xb, wqkv_ref[l], preferred_element_type=jnp.float32) + bqkv_ref[l]
        qb = (qkv[:, 0:C] * inv_sqrt_dk).astype(jnp.bfloat16)
        kb = qkv[:, C:2 * C].astype(jnp.bfloat16)
        vb = qkv[:, 2 * C:3 * C].astype(jnp.bfloat16)
        ek = ek_ref[l]                     # (2R+1, dk) bf16
        ev = ev_ref[l]                     # (2R+1, dk) bf16

        heads_out = []
        for h in range(num_heads):         # static unroll over heads
            lo = h * dk
            qh = qb[:, lo:lo + dk]
            kh = kb[:, lo:lo + dk]
            vh = vb[:, lo:lo + dk]

            scores = lax.dot_general(qh, kh, (((1,), (1,)), ((), ())),
                                     preferred_element_type=jnp.float32)  # (q/sqrt(dk)) k^T
            # windowed relative-key logits scattered onto diagonals j - i == r
            qe = lax.dot_general(qh, ek, (((1,), (1,)), ((), ())),
                                 preferred_element_type=jnp.float32)      # (T, 2R+1)
            for r in range(2 * R + 1):
                scores = scores + planes[r] * qe[:, r:r + 1]

            # masked_fill(mask == 0, -1e4); fully padded rows softmax over a uniform
            # -1e4 plane (matches Coqui semantics; final mask zeroes them afterwards).
            scores = jnp.where(keep > 0.0, scores, -1e4)
            smax = jnp.max(scores, axis=-1, keepdims=True)
            e = jnp.exp(scores - smax)
            p = e * pl.reciprocal(jnp.sum(e, axis=-1, keepdims=True), approx=True)

            oh = jnp.dot(p.astype(jnp.bfloat16), vh, preferred_element_type=jnp.float32)
            # windowed relative-value: band-extract p to (T, 2R+1) using the hoisted
            # diagonal planes, then ONE (T,2R+1)@(2R+1,dk) matmul with emb_v.
            band = jnp.concatenate(
                [jnp.sum(p * planes[r], axis=-1, keepdims=True) for r in range(2 * R + 1)],
                axis=-1)                                                   # (T, 2R+1)
            oh = oh + jnp.dot(band.astype(jnp.bfloat16), ev,
                              preferred_element_type=jnp.float32)
            heads_out.append(oh)

        # head-concat output projection: single (T, C) @ (C, C) matmul
        attn = jnp.concatenate(heads_out, axis=-1).astype(jnp.bfloat16)
        y = jnp.dot(attn, wo_ref[l], preferred_element_type=jnp.float32) + bo_ref[l]

        x = _layer_norm(x + y, g1_ref[l], be1_ref[l])          # x = norm1(x + attn(x))

        # FeedForwardNetwork: conv1d(k=3, same) -> ReLU -> conv1d(k=3, same), masked
        h1 = jnp.maximum(
            _conv1d_im2col(x * mcol, fw1_ref[l], fb1_ref[l], 3, zero_pad_output=False), 0.0)
        y2 = _conv1d_im2col(h1 * mcol, fw2_ref[l], fb2_ref[l], 3, zero_pad_output=False) * mcol
        x = _layer_norm(x + y2, g2_ref[l], be2_ref[l])         # x = norm2(x + ffn(x))

    o_ref[0] = x * mcol                    # final x = x * x_mask


# ---------------------------------------------------------------------------
# pallas_call wrapper
# ---------------------------------------------------------------------------

def _const_index_map(ndim):
    return lambda b: (0,) * ndim


def _batch_index_map(b):
    return (b, 0, 0)


def encoder_forward(x_nct, x_mask_b1t, params, *, num_heads, rel_win):
    # layout: PyTorch NCT -> channels-last BTC for the kernel.
    x = jnp.transpose(x_nct, (0, 2, 1)).astype(jnp.float32)            # (B, T, Cin)
    mcol = jnp.transpose(x_mask_b1t, (0, 2, 1)).astype(jnp.float32)    # (B, T, 1)
    mrow = x_mask_b1t.astype(jnp.float32)                              # (B, 1, T)
    B, T, Cin = x.shape
    bf16 = jnp.bfloat16

    # ---- prenet weights: im2col-flattened (K*Cin, Cout) bf16 + f32 bias / folded BN ----
    pn_args = []
    for blk in params['prenet']:
        K, ci, co = blk['w'].shape
        pn_args += [blk['w'].reshape(K * ci, co).astype(bf16),
                    blk['b'], blk['scale'], blk['shift']]

    # ---- transformer weights stacked along a leading layer axis (one DMA, static [l]) ----
    L = len(params['layers'])
    hid = params['layers'][0]['wq'].shape[0]
    ffn = params['layers'][0]['w1'].shape[2]
    R = min(rel_win, T - 1)                 # effective window (heads_share=True)

    def stack(fn):
        return jnp.stack([fn(lp) for lp in params['layers']], axis=0)

    wqkv = stack(lambda lp: jnp.concatenate([lp['wq'], lp['wk'], lp['wv']], 1)).astype(bf16)
    bqkv = stack(lambda lp: jnp.concatenate([lp['bq'], lp['bk'], lp['bv']], 1))
    wo = stack(lambda lp: lp['wo']).astype(bf16)
    bo = stack(lambda lp: lp['bo'])
    ek = stack(lambda lp: lp['emb_k'][0, rel_win - R: rel_win + R + 1, :]).astype(bf16)
    ev = stack(lambda lp: lp['emb_v'][0, rel_win - R: rel_win + R + 1, :]).astype(bf16)
    g1 = stack(lambda lp: lp['g1']);   be1 = stack(lambda lp: lp['be1'])
    fw1 = stack(lambda lp: lp['w1'].reshape(3 * hid, ffn)).astype(bf16)
    fb1 = stack(lambda lp: lp['b1'])
    fw2 = stack(lambda lp: lp['w2'].reshape(3 * ffn, hid)).astype(bf16)
    fb2 = stack(lambda lp: lp['b2'])
    g2 = stack(lambda lp: lp['g2']);   be2 = stack(lambda lp: lp['be2'])

    weights = pn_args + [wqkv, bqkv, wo, bo, ek, ev, g1, be1, fw1, fb1, fw2, fb2, g2, be2]

    in_specs = [pl.BlockSpec((1, T, Cin), _batch_index_map),
                pl.BlockSpec((1, T, 1), _batch_index_map),
                pl.BlockSpec((1, 1, T), _batch_index_map)]
    in_specs += [pl.BlockSpec(a.shape, _const_index_map(a.ndim)) for a in weights]

    kern = functools.partial(_encoder_kernel, num_heads=num_heads, num_layers=L)
    o = pl.pallas_call(
        kern,
        out_shape=jax.ShapeDtypeStruct((B, T, hid), jnp.float32),
        grid=(B,),
        in_specs=in_specs,
        out_specs=pl.BlockSpec((1, T, hid), _batch_index_map),
        compiler_params=pltpu.CompilerParams(
            dimension_semantics=("parallel",),   # batch splits across TCs (v7x)
        ),
    )(x, mcol, mrow, *weights)
    return jnp.transpose(o, (0, 2, 1))          # back to [B, C_out, T]


# ---------------------------------------------------------------------------
# parameter setup
# ---------------------------------------------------------------------------

def init_params(key, in_ch, hid, out_ch, ffn_ch, heads, layers, win):
    assert out_ch == hid, "demo config uses out_channels == hidden_channels (no proj branch)"
    dk = hid // heads
    keys = iter(jax.random.split(key, 512))

    def rnd(shape, scale=0.1):
        return jax.random.normal(next(keys), shape, jnp.float32) * scale

    # prenet: ResidualConv1dBNBlock -> 3 res blocks, each one Conv1dBN(k=5, dilation=1)
    prenet = []
    cin = in_ch
    for _ in range(3):
        cout = hid
        w = rnd((5, cin, cout))                  # torch weight (Cout, Cin, 5) transposed
        b = rnd((1, cout), 0.05)
        gamma = 1.0 + rnd((1, cout), 0.05)
        beta = rnd((1, cout), 0.05)
        rmean = rnd((1, cout), 0.05)
        rvar = 1.0 + jnp.abs(rnd((1, cout), 0.1))
        scale = gamma / jnp.sqrt(rvar + 1e-5)    # BatchNorm1d eps
        shift = beta - rmean * scale
        prenet.append(dict(w=w, b=b, scale=scale, shift=shift))
        cin = cout

    tl = []
    for _ in range(layers):
        tl.append(dict(
            wq=rnd((hid, hid)), bq=rnd((1, hid), 0.05),
            wk=rnd((hid, hid)), bk=rnd((1, hid), 0.05),
            wv=rnd((hid, hid)), bv=rnd((1, hid), 0.05),
            wo=rnd((hid, hid)), bo=rnd((1, hid), 0.05),
            emb_k=rnd((1, 2 * win + 1, dk), dk ** -0.5),
            emb_v=rnd((1, 2 * win + 1, dk), dk ** -0.5),
            g1=0.1 * jnp.ones((1, hid), jnp.float32) + rnd((1, hid), 0.02),
            be1=rnd((1, hid), 0.02),
            w1=rnd((3, hid, ffn_ch)), b1=rnd((1, ffn_ch), 0.05),
            w2=rnd((3, ffn_ch, hid)), b2=rnd((1, hid), 0.05),
            g2=0.1 * jnp.ones((1, hid), jnp.float32) + rnd((1, hid), 0.02),
            be2=rnd((1, hid), 0.02),
        ))
    return dict(prenet=prenet, layers=tl)


if __name__ == "__main__":
    B, T = 2, 16
    IN_CH, HID, OUT_CH = 32, 32, 32
    FFN_CH, HEADS, LAYERS, WIN = 64, 2, 2, 4

    root = jax.random.PRNGKey(0)
    k_params, k_x = jax.random.split(root)
    params = init_params(k_params, IN_CH, HID, OUT_CH, FFN_CH, HEADS, LAYERS, WIN)

    x = jax.random.normal(k_x, (B, IN_CH, T), jnp.float32)             # PyTorch layout [B, C, T]
    lengths = jnp.array([T, T - 5])
    x_mask = (jnp.arange(T)[None, :] < lengths[:, None]).astype(jnp.float32)[:, None, :]  # [B,1,T]

    fwd = jax.jit(functools.partial(encoder_forward, num_heads=HEADS, rel_win=WIN))
    out = fwd(x, x_mask, params)
    jax.block_until_ready(out)
    assert out.shape == (B, OUT_CH, T)
    print("KERNEL_OK")
</pallas_src>

<mosaic_0001>
module attributes {stable_mosaic.version = 11 : i64} {
  func.func @_encoder_kernel(%arg0: i32, %arg1: memref<1x16x32xf32, #tpu.memory_space<vmem>>, %arg2: memref<1x16x1xf32, #tpu.memory_space<vmem>>, %arg3: memref<1x1x16xf32, #tpu.memory_space<vmem>>, %arg4: memref<160x32xbf16, #tpu.memory_space<vmem>>, %arg5: memref<1x32xf32, #tpu.memory_space<vmem>>, %arg6: memref<1x32xf32, #tpu.memory_space<vmem>>, %arg7: memref<1x32xf32, #tpu.memory_space<vmem>>, %arg8: memref<160x32xbf16, #tpu.memory_space<vmem>>, %arg9: memref<1x32xf32, #tpu.memory_space<vmem>>, %arg10: memref<1x32xf32, #tpu.memory_space<vmem>>, %arg11: memref<1x32xf32, #tpu.memory_space<vmem>>, %arg12: memref<160x32xbf16, #tpu.memory_space<vmem>>, %arg13: memref<1x32xf32, #tpu.memory_space<vmem>>, %arg14: memref<1x32xf32, #tpu.memory_space<vmem>>, %arg15: memref<1x32xf32, #tpu.memory_space<vmem>>, %arg16: memref<2x32x96xbf16, #tpu.memory_space<vmem>>, %arg17: memref<2x1x96xf32, #tpu.memory_space<vmem>>, %arg18: memref<2x32x32xbf16, #tpu.memory_space<vmem>>, %arg19: memref<2x1x32xf32, #tpu.memory_space<vmem>>, %arg20: memref<2x9x16xbf16, #tpu.memory_space<vmem>>, %arg21: memref<2x9x16xbf16, #tpu.memory_space<vmem>>, %arg22: memref<2x1x32xf32, #tpu.memory_space<vmem>>, %arg23: memref<2x1x32xf32, #tpu.memory_space<vmem>>, %arg24: memref<2x96x64xbf16, #tpu.memory_space<vmem>>, %arg25: memref<2x1x64xf32, #tpu.memory_space<vmem>>, %arg26: memref<2x192x32xbf16, #tpu.memory_space<vmem>>, %arg27: memref<2x1x32xf32, #tpu.memory_space<vmem>>, %arg28: memref<2x1x32xf32, #tpu.memory_space<vmem>>, %arg29: memref<2x1x32xf32, #tpu.memory_space<vmem>>, %arg30: memref<1x16x32xf32, #tpu.memory_space<vmem>>) attributes {dimension_semantics = [#tpu.dimension_semantics<parallel>], iteration_bounds = array<i64: 2>, scalar_prefetch = 0 : i64, scratch_operands = 0 : i64, tpu.core_type = #tpu.core_type<tc>, window_params = [{transform_indices = @transform_0, window_bounds = array<i64: 1, 16, 32>}, {transform_indices = @transform_1, window_bounds = array<i64: 1, 16, 1>}, {transform_indices = @transform_2, window_bounds = array<i64: 1, 1, 16>}, {pipeline_mode = #tpu.pipeline_mode<synchronous>, transform_indices = @transform_3, window_bounds = array<i64: 160, 32>}, {pipeline_mode = #tpu.pipeline_mode<synchronous>, transform_indices = @transform_4, window_bounds = array<i64: 1, 32>}, {pipeline_mode = #tpu.pipeline_mode<synchronous>, transform_indices = @transform_5, window_bounds = array<i64: 1, 32>}, {pipeline_mode = #tpu.pipeline_mode<synchronous>, transform_indices = @transform_6, window_bounds = array<i64: 1, 32>}, {pipeline_mode = #tpu.pipeline_mode<synchronous>, transform_indices = @transform_7, window_bounds = array<i64: 160, 32>}, {pipeline_mode = #tpu.pipeline_mode<synchronous>, transform_indices = @transform_8, window_bounds = array<i64: 1, 32>}, {pipeline_mode = #tpu.pipeline_mode<synchronous>, transform_indices = @transform_9, window_bounds = array<i64: 1, 32>}, {pipeline_mode = #tpu.pipeline_mode<synchronous>, transform_indices = @transform_10, window_bounds = array<i64: 1, 32>}, {pipeline_mode = #tpu.pipeline_mode<synchronous>, transform_indices = @transform_11, window_bounds = array<i64: 160, 32>}, {pipeline_mode = #tpu.pipeline_mode<synchronous>, transform_indices = @transform_12, window_bounds = array<i64: 1, 32>}, {pipeline_mode = #tpu.pipeline_mode<synchronous>, transform_indices = @transform_13, window_bounds = array<i64: 1, 32>}, {pipeline_mode = #tpu.pipeline_mode<synchronous>, transform_indices = @transform_14, window_bounds = array<i64: 1, 32>}, {pipeline_mode = #tpu.pipeline_mode<synchronous>, transform_indices = @transform_15, window_bounds = array<i64: 2, 32, 96>}, {pipeline_mode = #tpu.pipeline_mode<synchronous>, transform_indices = @transform_16, window_bounds = array<i64: 2, 1, 96>}, {pipeline_mode = #tpu.pipeline_mode<synchronous>, transform_indices = @transform_17, window_bounds = array<i64: 2, 32, 32>}, {pipeline_mode = #tpu.pipeline_mode<synchronous>, transform_indices = @transform_18, window_bounds = array<i64: 2, 1, 32>}, {pipeline_mode = #tpu.pipeline_mode<synchronous>, transform_indices = @transform_19, window_bounds = array<i64: 2, 9, 16>}, {pipeline_mode = #tpu.pipeline_mode<synchronous>, transform_indices = @transform_20, window_bounds = array<i64: 2, 9, 16>}, {pipeline_mode = #tpu.pipeline_mode<synchronous>, transform_indices = @transform_21, window_bounds = array<i64: 2, 1, 32>}, {pipeline_mode = #tpu.pipeline_mode<synchronous>, transform_indices = @transform_22, window_bounds = array<i64: 2, 1, 32>}, {pipeline_mode = #tpu.pipeline_mode<synchronous>, transform_indices = @transform_23, window_bounds = array<i64: 2, 96, 64>}, {pipeline_mode = #tpu.pipeline_mode<synchronous>, transform_indices = @transform_24, window_bounds = array<i64: 2, 1, 64>}, {pipeline_mode = #tpu.pipeline_mode<synchronous>, transform_indices = @transform_25, window_bounds = array<i64: 2, 192, 32>}, {pipeline_mode = #tpu.pipeline_mode<synchronous>, transform_indices = @transform_26, window_bounds = array<i64: 2, 1, 32>}, {pipeline_mode = #tpu.pipeline_mode<synchronous>, transform_indices = @transform_27, window_bounds = array<i64: 2, 1, 32>}, {pipeline_mode = #tpu.pipeline_mode<synchronous>, transform_indices = @transform_28, window_bounds = array<i64: 2, 1, 32>}, {transform_indices = @transform_29, window_bounds = array<i64: 1, 16, 32>}]} {
    %c0 = arith.constant 0 : index
    %c0_0 = arith.constant 0 : index
    %c0_1 = arith.constant 0 : index
    %0 = vector.load %arg2[%c0, %c0_0, %c0_1] : memref<1x16x1xf32, #tpu.memory_space<vmem>>, vector<1x16x1xf32>
    %1 = vector.shape_cast %0 : vector<1x16x1xf32> to vector<16x1xf32>
    %c0_2 = arith.constant 0 : index
    %c0_3 = arith.constant 0 : index
    %c0_4 = arith.constant 0 : index
    %2 = vector.load %arg3[%c0_2, %c0_3, %c0_4] : memref<1x1x16xf32, #tpu.memory_space<vmem>>, vector<1x1x16xf32>
    %3 = vector.shape_cast %2 : vector<1x1x16xf32> to vector<1x16xf32>
    %c0_5 = arith.constant 0 : index
    %c0_6 = arith.constant 0 : index
    %c0_7 = arith.constant 0 : index
    %4 = vector.load %arg1[%c0_5, %c0_6, %c0_7] : memref<1x16x32xf32, #tpu.memory_space<vmem>>, vector<1x16x32xf32>
    %5 = vector.shape_cast %4 : vector<1x16x32xf32> to vector<16x32xf32>
    %c0_8 = arith.constant 0 : index
    %c0_9 = arith.constant 0 : index
    %6 = vector.load %arg4[%c0_8, %c0_9] : memref<160x32xbf16, #tpu.memory_space<vmem>>, vector<160x32xbf16>
    %c0_10 = arith.constant 0 : index
    %c0_11 = arith.constant 0 : index
    %7 = vector.load %arg5[%c0_10, %c0_11] : memref<1x32xf32, #tpu.memory_space<vmem>>, vector<1x32xf32>
    %cst = arith.constant 0.000000e+00 : f32
    %8 = vector.broadcast %cst : f32 to vector<8x32xf32>
    %9 = tpu.concatenate %8, %5, %8 in 0 : vector<8x32xf32>, vector<16x32xf32>, vector<8x32xf32> -> vector<32x32xf32>
    %10 = vector.extract_strided_slice %9 {offsets = [6, 0], sizes = [16, 32], strides = [1, 1]} : vector<32x32xf32> to vector<16x32xf32>
    %11 = vector.extract_strided_slice %9 {offsets = [7, 0], sizes = [16, 32], strides = [1, 1]} : vector<32x32xf32> to vector<16x32xf32>
    %12 = vector.extract_strided_slice %9 {offsets = [8, 0], sizes = [16, 32], strides = [1, 1]} : vector<32x32xf32> to vector<16x32xf32>
    %13 = vector.extract_strided_slice %9 {offsets = [9, 0], sizes = [16, 32], strides = [1, 1]} : vector<32x32xf32> to vector<16x32xf32>
    %14 = vector.extract_strided_slice %9 {offsets = [10, 0], sizes = [16, 32], strides = [1, 1]} : vector<32x32xf32> to vector<16x32xf32>
    %15 = tpu.concatenate %10, %11, %12, %13, %14 in 1 : vector<16x32xf32>, vector<16x32xf32>, vector<16x32xf32>, vector<16x32xf32>, vector<16x32xf32> -> vector<16x160xf32>
    %16 = arith.truncf %15 : vector<16x160xf32> to vector<16x160xbf16>
    %cst_12 = arith.constant dense<0.000000e+00> : vector<16x32xf32>
    %17 = tpu.matmul %16, %6, %cst_12 {dimension_numbers = #tpu.dot_dimension_numbers<[1], [0], [0], [1], [0, 0, 1, 1], [], []>} : vector<16x160xbf16>, vector<160x32xbf16>, vector<16x32xf32> -> vector<16x32xf32>
    %18 = vector.broadcast %7 : vector<1x32xf32> to vector<16x32xf32>
    %19 = arith.addf %17, %18 : vector<16x32xf32>
    %20 = tpu.iota {dimensions = array<i32: 0>} : vector<16x1xi32>
    %c2_i32 = arith.constant 2 : i32
    %21 = vector.broadcast %c2_i32 : i32 to vector<16x1xi32>
    %22 = arith.cmpi sge, %20, %21 : vector<16x1xi32>
    %c14_i32 = arith.constant 14 : i32
    %23 = vector.broadcast %c14_i32 : i32 to vector<16x1xi32>
    %24 = arith.cmpi slt, %20, %23 : vector<16x1xi32>
    %25 = arith.andi %22, %24 : vector<16x1xi1>
    %cst_13 = arith.constant 0.000000e+00 : f32
    %26 = vector.shape_cast %25 : vector<16x1xi1> to vector<16x1xi1>
    %27 = vector.broadcast %26 : vector<16x1xi1> to vector<16x32xi1>
    %28 = vector.broadcast %cst_13 : f32 to vector<16x32xf32>
    %29 = arith.select %27, %19, %28 : vector<16x32xi1>, vector<16x32xf32>
    %cst_14 = arith.constant 0.000000e+00 : f32
    %30 = vector.broadcast %cst_14 : f32 to vector<16x32xf32>
    %31 = arith.maximumf %29, %30 : vector<16x32xf32>
    %c0_15 = arith.constant 0 : index
    %c0_16 = arith.constant 0 : index
    %32 = vector.load %arg6[%c0_15, %c0_16] : memref<1x32xf32, #tpu.memory_space<vmem>>, vector<1x32xf32>
    %33 = vector.broadcast %32 : vector<1x32xf32> to vector<16x32xf32>
    %34 = arith.mulf %31, %33 : vector<16x32xf32>
    %c0_17 = arith.constant 0 : index
    %c0_18 = arith.constant 0 : index
    %35 = vector.load %arg7[%c0_17, %c0_18] : memref<1x32xf32, #tpu.memory_space<vmem>>, vector<1x32xf32>
    %36 = vector.broadcast %35 : vector<1x32xf32> to vector<16x32xf32>
    %37 = arith.addf %34, %36 : vector<16x32xf32>
    %38 = arith.addf %37, %5 : vector<16x32xf32>
    %c0_19 = arith.constant 0 : index
    %c0_20 = arith.constant 0 : index
    %39 = vector.load %arg8[%c0_19, %c0_20] : memref<160x32xbf16, #tpu.memory_space<vmem>>, vector<160x32xbf16>
    %c0_21 = arith.constant 0 : index
    %c0_22 = arith.constant 0 : index
    %40 = vector.load %arg9[%c0_21, %c0_22] : memref<1x32xf32, #tpu.memory_space<vmem>>, vector<1x32xf32>
    %cst_23 = arith.constant 0.000000e+00 : f32
    %41 = vector.broadcast %cst_23 : f32 to vector<8x32xf32>
    %42 = tpu.concatenate %41, %38, %41 in 0 : vector<8x32xf32>, vector<16x32xf32>, vector<8x32xf32> -> vector<32x32xf32>
    %43 = vector.extract_strided_slice %42 {offsets = [6, 0], sizes = [16, 32], strides = [1, 1]} : vector<32x32xf32> to vector<16x32xf32>
    %44 = vector.extract_strided_slice %42 {offsets = [7, 0], sizes = [16, 32], strides = [1, 1]} : vector<32x32xf32> to vector<16x32xf32>
    %45 = vector.extract_strided_slice %42 {offsets = [8, 0], sizes = [16, 32], strides = [1, 1]} : vector<32x32xf32> to vector<16x32xf32>
    %46 = vector.extract_strided_slice %42 {offsets = [9, 0], sizes = [16, 32], strides = [1, 1]} : vector<32x32xf32> to vector<16x32xf32>
    %47 = vector.extract_strided_slice %42 {offsets = [10, 0], sizes = [16, 32], strides = [1, 1]} : vector<32x32xf32> to vector<16x32xf32>
    %48 = tpu.concatenate %43, %44, %45, %46, %47 in 1 : vector<16x32xf32>, vector<16x32xf32>, vector<16x32xf32>, vector<16x32xf32>, vector<16x32xf32> -> vector<16x160xf32>
    %49 = arith.truncf %48 : vector<16x160xf32> to vector<16x160xbf16>
    %cst_24 = arith.constant dense<0.000000e+00> : vector<16x32xf32>
    %50 = tpu.matmul %49, %39, %cst_24 {dimension_numbers = #tpu.dot_dimension_numbers<[1], [0], [0], [1], [0, 0, 1, 1], [], []>} : vector<16x160xbf16>, vector<160x32xbf16>, vector<16x32xf32> -> vector<16x32xf32>
    %51 = vector.broadcast %40 : vector<1x32xf32> to vector<16x32xf32>
    %52 = arith.addf %50, %51 : vector<16x32xf32>
    %53 = tpu.iota {dimensions = array<i32: 0>} : vector<16x1xi32>
    %c2_i32_25 = arith.constant 2 : i32
    %54 = vector.broadcast %c2_i32_25 : i32 to vector<16x1xi32>
    %55 = arith.cmpi sge, %53, %54 : vector<16x1xi32>
    %c14_i32_26 = arith.constant 14 : i32
    %56 = vector.broadcast %c14_i32_26 : i32 to vector<16x1xi32>
    %57 = arith.cmpi slt, %53, %56 : vector<16x1xi32>
    %58 = arith.andi %55, %57 : vector<16x1xi1>
    %cst_27 = arith.constant 0.000000e+00 : f32
    %59 = vector.shape_cast %58 : vector<16x1xi1> to vector<16x1xi1>
    %60 = vector.broadcast %59 : vector<16x1xi1> to vector<16x32xi1>
    %61 = vector.broadcast %cst_27 : f32 to vector<16x32xf32>
    %62 = arith.select %60, %52, %61 : vector<16x32xi1>, vector<16x32xf32>
    %cst_28 = arith.constant 0.000000e+00 : f32
    %63 = vector.broadcast %cst_28 : f32 to vector<16x32xf32>
    %64 = arith.maximumf %62, %63 : vector<16x32xf32>
    %c0_29 = arith.constant 0 : index
    %c0_30 = arith.constant 0 : index
    %65 = vector.load %arg10[%c0_29, %c0_30] : memref<1x32xf32, #tpu.memory_space<vmem>>, vector<1x32xf32>
    %66 = vector.broadcast %65 : vector<1x32xf32> to vector<16x32xf32>
    %67 = arith.mulf %64, %66 : vector<16x32xf32>
    %c0_31 = arith.constant 0 : index
    %c0_32 = arith.constant 0 : index
    %68 = vector.load %arg11[%c0_31, %c0_32] : memref<1x32xf32, #tpu.memory_space<vmem>>, vector<1x32xf32>
    %69 = vector.broadcast %68 : vector<1x32xf32> to vector<16x32xf32>
    %70 = arith.addf %67, %69 : vector<16x32xf32>
    %71 = arith.addf %70, %38 : vector<16x32xf32>
    %c0_33 = arith.constant 0 : index
    %c0_34 = arith.constant 0 : index
    %72 = vector.load %arg12[%c0_33, %c0_34] : memref<160x32xbf16, #tpu.memory_space<vmem>>, vector<160x32xbf16>
    %c0_35 = arith.constant 0 : index
    %c0_36 = arith.constant 0 : index
    %73 = vector.load %arg13[%c0_35, %c0_36] : memref<1x32xf32, #tpu.memory_space<vmem>>, vector<1x32xf32>
    %cst_37 = arith.constant 0.000000e+00 : f32
    %74 = vector.broadcast %cst_37 : f32 to vector<8x32xf32>
    %75 = tpu.concatenate %74, %71, %74 in 0 : vector<8x32xf32>, vector<16x32xf32>, vector<8x32xf32> -> vector<32x32xf32>
    %76 = vector.extract_strided_slice %75 {offsets = [6, 0], sizes = [16, 32], strides = [1, 1]} : vector<32x32xf32> to vector<16x32xf32>
    %77 = vector.extract_strided_slice %75 {offsets = [7, 0], sizes = [16, 32], strides = [1, 1]} : vector<32x32xf32> to vector<16x32xf32>
    %78 = vector.extract_strided_slice %75 {offsets = [8, 0], sizes = [16, 32], strides = [1, 1]} : vector<32x32xf32> to vector<16x32xf32>
    %79 = vector.extract_strided_slice %75 {offsets = [9, 0], sizes = [16, 32], strides = [1, 1]} : vector<32x32xf32> to vector<16x32xf32>
    %80 = vector.extract_strided_slice %75 {offsets = [10, 0], sizes = [16, 32], strides = [1, 1]} : vector<32x32xf32> to vector<16x32xf32>
    %81 = tpu.concatenate %76, %77, %78, %79, %80 in 1 : vector<16x32xf32>, vector<16x32xf32>, vector<16x32xf32>, vector<16x32xf32>, vector<16x32xf32> -> vector<16x160xf32>
    %82 = arith.truncf %81 : vector<16x160xf32> to vector<16x160xbf16>
    %cst_38 = arith.constant dense<0.000000e+00> : vector<16x32xf32>
    %83 = tpu.matmul %82, %72, %cst_38 {dimension_numbers = #tpu.dot_dimension_numbers<[1], [0], [0], [1], [0, 0, 1, 1], [], []>} : vector<16x160xbf16>, vector<160x32xbf16>, vector<16x32xf32> -> vector<16x32xf32>
    %84 = vector.broadcast %73 : vector<1x32xf32> to vector<16x32xf32>
    %85 = arith.addf %83, %84 : vector<16x32xf32>
    %86 = tpu.iota {dimensions = array<i32: 0>} : vector<16x1xi32>
    %c2_i32_39 = arith.constant 2 : i32
    %87 = vector.broadcast %c2_i32_39 : i32 to vector<16x1xi32>
    %88 = arith.cmpi sge, %86, %87 : vector<16x1xi32>
    %c14_i32_40 = arith.constant 14 : i32
    %89 = vector.broadcast %c14_i32_40 : i32 to vector<16x1xi32>
    %90 = arith.cmpi slt, %86, %89 : vector<16x1xi32>
    %91 = arith.andi %88, %90 : vector<16x1xi1>
    %cst_41 = arith.constant 0.000000e+00 : f32
    %92 = vector.shape_cast %91 : vector<16x1xi1> to vector<16x1xi1>
    %93 = vector.broadcast %92 : vector<16x1xi1> to vector<16x32xi1>
    %94 = vector.broadcast %cst_41 : f32 to vector<16x32xf32>
    %95 = arith.select %93, %85, %94 : vector<16x32xi1>, vector<16x32xf32>
    %cst_42 = arith.constant 0.000000e+00 : f32
    %96 = vector.broadcast %cst_42 : f32 to vector<16x32xf32>
    %97 = arith.maximumf %95, %96 : vector<16x32xf32>
    %c0_43 = arith.constant 0 : index
    %c0_44 = arith.constant 0 : index
    %98 = vector.load %arg14[%c0_43, %c0_44] : memref<1x32xf32, #tpu.memory_space<vmem>>, vector<1x32xf32>
    %99 = vector.broadcast %98 : vector<1x32xf32> to vector<16x32xf32>
    %100 = arith.mulf %97, %99 : vector<16x32xf32>
    %c0_45 = arith.constant 0 : index
    %c0_46 = arith.constant 0 : index
    %101 = vector.load %arg15[%c0_45, %c0_46] : memref<1x32xf32, #tpu.memory_space<vmem>>, vector<1x32xf32>
    %102 = vector.broadcast %101 : vector<1x32xf32> to vector<16x32xf32>
    %103 = arith.addf %100, %102 : vector<16x32xf32>
    %104 = arith.addf %103, %71 : vector<16x32xf32>
    %105 = vector.broadcast %1 : vector<16x1xf32> to vector<16x32xf32>
    %106 = arith.mulf %104, %105 : vector<16x32xf32>
    %107 = vector.broadcast %1 : vector<16x1xf32> to vector<16x16xf32>
    %108 = vector.broadcast %3 : vector<1x16xf32> to vector<16x16xf32>
    %109 = arith.mulf %107, %108 : vector<16x16xf32>
    %110 = tpu.iota {dimensions = array<i32: 1>} : vector<16x16xi32>
    %111 = tpu.iota {dimensions = array<i32: 0>} : vector<16x16xi32>
    %112 = arith.subi %110, %111 : vector<16x16xi32>
    %c-4_i32 = arith.constant -4 : i32
    %113 = vector.broadcast %c-4_i32 : i32 to vector<16x16xi32>
    %114 = arith.cmpi eq, %112, %113 : vector<16x16xi32>
    %115 = arith.extui %114 : vector<16x16xi1> to vector<16x16xi32>
    %116 = arith.sitofp %115 : vector<16x16xi32> to vector<16x16xf32>
    %c-3_i32 = arith.constant -3 : i32
    %117 = vector.broadcast %c-3_i32 : i32 to vector<16x16xi32>
    %118 = arith.cmpi eq, %112, %117 : vector<16x16xi32>
    %119 = arith.extui %118 : vector<16x16xi1> to vector<16x16xi32>
    %120 = arith.sitofp %119 : vector<16x16xi32> to vector<16x16xf32>
    %c-2_i32 = arith.constant -2 : i32
    %121 = vector.broadcast %c-2_i32 : i32 to vector<16x16xi32>
    %122 = arith.cmpi eq, %112, %121 : vector<16x16xi32>
    %123 = arith.extui %122 : vector<16x16xi1> to vector<16x16xi32>
    %124 = arith.sitofp %123 : vector<16x16xi32> to vector<16x16xf32>
    %c-1_i32 = arith.constant -1 : i32
    %125 = vector.broadcast %c-1_i32 : i32 to vector<16x16xi32>
    %126 = arith.cmpi eq, %112, %125 : vector<16x16xi32>
    %127 = arith.extui %126 : vector<16x16xi1> to vector<16x16xi32>
    %128 = arith.sitofp %127 : vector<16x16xi32> to vector<16x16xf32>
    %c0_i32 = arith.constant 0 : i32
    %129 = vector.broadcast %c0_i32 : i32 to vector<16x16xi32>
    %130 = arith.cmpi eq, %112, %129 : vector<16x16xi32>
    %131 = arith.extui %130 : vector<16x16xi1> to vector<16x16xi32>
    %132 = arith.sitofp %131 : vector<16x16xi32> to vector<16x16xf32>
    %c1_i32 = arith.constant 1 : i32
    %133 = vector.broadcast %c1_i32 : i32 to vector<16x16xi32>
    %134 = arith.cmpi eq, %112, %133 : vector<16x16xi32>
    %135 = arith.extui %134 : vector<16x16xi1> to vector<16x16xi32>
    %136 = arith.sitofp %135 : vector<16x16xi32> to vector<16x16xf32>
    %c2_i32_47 = arith.constant 2 : i32
    %137 = vector.broadcast %c2_i32_47 : i32 to vector<16x16xi32>
    %138 = arith.cmpi eq, %112, %137 : vector<16x16xi32>
    %139 = arith.extui %138 : vector<16x16xi1> to vector<16x16xi32>
    %140 = arith.sitofp %139 : vector<16x16xi32> to vector<16x16xf32>
    %c3_i32 = arith.constant 3 : i32
    %141 = vector.broadcast %c3_i32 : i32 to vector<16x16xi32>
    %142 = arith.cmpi eq, %112, %141 : vector<16x16xi32>
    %143 = arith.extui %142 : vector<16x16xi1> to vector<16x16xi32>
    %144 = arith.sitofp %143 : vector<16x16xi32> to vector<16x16xf32>
    %c4_i32 = arith.constant 4 : i32
    %145 = vector.broadcast %c4_i32 : i32 to vector<16x16xi32>
    %146 = arith.cmpi eq, %112, %145 : vector<16x16xi32>
    %147 = arith.extui %146 : vector<16x16xi1> to vector<16x16xi32>
    %148 = arith.sitofp %147 : vector<16x16xi32> to vector<16x16xf32>
    %149 = vector.broadcast %1 : vector<16x1xf32> to vector<16x32xf32>
    %150 = arith.mulf %106, %149 : vector<16x32xf32>
    %151 = arith.truncf %150 : vector<16x32xf32> to vector<16x32xbf16>
    %c0_48 = arith.constant 0 : index
    %c0_49 = arith.constant 0 : index
    %c0_50 = arith.constant 0 : index
    %152 = vector.load %arg16[%c0_48, %c0_49, %c0_50] : memref<2x32x96xbf16, #tpu.memory_space<vmem>>, vector<1x32x96xbf16>
    %153 = vector.shape_cast %152 : vector<1x32x96xbf16> to vector<32x96xbf16>
    %cst_51 = arith.constant dense<0.000000e+00> : vector<16x96xf32>
    %154 = tpu.matmul %151, %153, %cst_51 {dimension_numbers = #tpu.dot_dimension_numbers<[1], [0], [0], [1], [0, 0, 1, 1], [], []>} : vector<16x32xbf16>, vector<32x96xbf16>, vector<16x96xf32> -> vector<16x96xf32>
    %c0_52 = arith.constant 0 : index
    %c0_53 = arith.constant 0 : index
    %c0_54 = arith.constant 0 : index
    %155 = vector.load %arg17[%c0_52, %c0_53, %c0_54] : memref<2x1x96xf32, #tpu.memory_space<vmem>>, vector<1x1x96xf32>
    %156 = vector.shape_cast %155 : vector<1x1x96xf32> to vector<1x96xf32>
    %157 = vector.broadcast %156 : vector<1x96xf32> to vector<16x96xf32>
    %158 = arith.addf %154, %157 : vector<16x96xf32>
    %159 = vector.extract_strided_slice %158 {offsets = [0, 0], sizes = [16, 32], strides = [1, 1]} : vector<16x96xf32> to vector<16x32xf32>
    %cst_55 = arith.constant 2.500000e-01 : f32
    %160 = vector.broadcast %cst_55 : f32 to vector<16x32xf32>
    %161 = arith.mulf %159, %160 : vector<16x32xf32>
    %162 = arith.truncf %161 : vector<16x32xf32> to vector<16x32xbf16>
    %163 = vector.extract_strided_slice %158 {offsets = [0, 32], sizes = [16, 32], strides = [1, 1]} : vector<16x96xf32> to vector<16x32xf32>
    %164 = arith.truncf %163 : vector<16x32xf32> to vector<16x32xbf16>
    %165 = vector.extract_strided_slice %158 {offsets = [0, 64], sizes = [16, 32], strides = [1, 1]} : vector<16x96xf32> to vector<16x32xf32>
    %166 = arith.truncf %165 : vector<16x32xf32> to vector<16x32xbf16>
    %c0_56 = arith.constant 0 : index
    %c0_57 = arith.constant 0 : index
    %c0_58 = arith.constant 0 : index
    %167 = vector.load %arg20[%c0_56, %c0_57, %c0_58] : memref<2x9x16xbf16, #tpu.memory_space<vmem>>, vector<1x9x16xbf16>
    %168 = vector.shape_cast %167 : vector<1x9x16xbf16> to vector<9x16xbf16>
    %c0_59 = arith.constant 0 : index
    %c0_60 = arith.constant 0 : index
    %c0_61 = arith.constant 0 : index
    %169 = vector.load %arg21[%c0_59, %c0_60, %c0_61] : memref<2x9x16xbf16, #tpu.memory_space<vmem>>, vector<1x9x16xbf16>
    %170 = vector.shape_cast %169 : vector<1x9x16xbf16> to vector<9x16xbf16>
    %171 = vector.extract_strided_slice %162 {offsets = [0, 0], sizes = [16, 16], strides = [1, 1]} : vector<16x32xbf16> to vector<16x16xbf16>
    %172 = vector.extract_strided_slice %164 {offsets = [0, 0], sizes = [16, 16], strides = [1, 1]} : vector<16x32xbf16> to vector<16x16xbf16>
    %173 = vector.extract_strided_slice %166 {offsets = [0, 0], sizes = [16, 16], strides = [1, 1]} : vector<16x32xbf16> to vector<16x16xbf16>
    %cst_62 = arith.constant dense<0.000000e+00> : vector<16x16xf32>
    %174 = tpu.matmul %171, %172, %cst_62 {dimension_numbers = #tpu.dot_dimension_numbers<[1], [1], [0], [0], [0, 0, 1, 0], [], []>} : vector<16x16xbf16>, vector<16x16xbf16>, vector<16x16xf32> -> vector<16x16xf32>
    %cst_63 = arith.constant dense<0.000000e+00> : vector<16x9xf32>
    %175 = tpu.matmul %171, %168, %cst_63 {dimension_numbers = #tpu.dot_dimension_numbers<[1], [1], [0], [0], [0, 0, 1, 0], [], []>} : vector<16x16xbf16>, vector<9x16xbf16>, vector<16x9xf32> -> vector<16x9xf32>
    %176 = vector.extract_strided_slice %175 {offsets = [0, 0], sizes = [16, 1], strides = [1, 1]} : vector<16x9xf32> to vector<16x1xf32>
    %177 = vector.broadcast %176 : vector<16x1xf32> to vector<16x16xf32>
    %178 = arith.mulf %116, %177 : vector<16x16xf32>
    %179 = arith.addf %174, %178 : vector<16x16xf32>
    %180 = vector.extract_strided_slice %175 {offsets = [0, 1], sizes = [16, 1], strides = [1, 1]} : vector<16x9xf32> to vector<16x1xf32>
    %181 = vector.broadcast %180 : vector<16x1xf32> to vector<16x16xf32>
    %182 = arith.mulf %120, %181 : vector<16x16xf32>
    %183 = arith.addf %179, %182 : vector<16x16xf32>
    %184 = vector.extract_strided_slice %175 {offsets = [0, 2], sizes = [16, 1], strides = [1, 1]} : vector<16x9xf32> to vector<16x1xf32>
    %185 = vector.broadcast %184 : vector<16x1xf32> to vector<16x16xf32>
    %186 = arith.mulf %124, %185 : vector<16x16xf32>
    %187 = arith.addf %183, %186 : vector<16x16xf32>
    %188 = vector.extract_strided_slice %175 {offsets = [0, 3], sizes = [16, 1], strides = [1, 1]} : vector<16x9xf32> to vector<16x1xf32>
    %189 = vector.broadcast %188 : vector<16x1xf32> to vector<16x16xf32>
    %190 = arith.mulf %128, %189 : vector<16x16xf32>
    %191 = arith.addf %187, %190 : vector<16x16xf32>
    %192 = vector.extract_strided_slice %175 {offsets = [0, 4], sizes = [16, 1], strides = [1, 1]} : vector<16x9xf32> to vector<16x1xf32>
    %193 = vector.broadcast %192 : vector<16x1xf32> to vector<16x16xf32>
    %194 = arith.mulf %132, %193 : vector<16x16xf32>
    %195 = arith.addf %191, %194 : vector<16x16xf32>
    %196 = vector.extract_strided_slice %175 {offsets = [0, 5], sizes = [16, 1], strides = [1, 1]} : vector<16x9xf32> to vector<16x1xf32>
    %197 = vector.broadcast %196 : vector<16x1xf32> to vector<16x16xf32>
    %198 = arith.mulf %136, %197 : vector<16x16xf32>
    %199 = arith.addf %195, %198 : vector<16x16xf32>
    %200 = vector.extract_strided_slice %175 {offsets = [0, 6], sizes = [16, 1], strides = [1, 1]} : vector<16x9xf32> to vector<16x1xf32>
    %201 = vector.broadcast %200 : vector<16x1xf32> to vector<16x16xf32>
    %202 = arith.mulf %140, %201 : vector<16x16xf32>
    %203 = arith.addf %199, %202 : vector<16x16xf32>
    %204 = vector.extract_strided_slice %175 {offsets = [0, 7], sizes = [16, 1], strides = [1, 1]} : vector<16x9xf32> to vector<16x1xf32>
    %205 = vector.broadcast %204 : vector<16x1xf32> to vector<16x16xf32>
    %206 = arith.mulf %144, %205 : vector<16x16xf32>
    %207 = arith.addf %203, %206 : vector<16x16xf32>
    %208 = vector.extract_strided_slice %175 {offsets = [0, 8], sizes = [16, 1], strides = [1, 1]} : vector<16x9xf32> to vector<16x1xf32>
    %209 = vector.broadcast %208 : vector<16x1xf32> to vector<16x16xf32>
    %210 = arith.mulf %148, %209 : vector<16x16xf32>
    %211 = arith.addf %207, %210 : vector<16x16xf32>
    %cst_64 = arith.constant 0.000000e+00 : f32
    %212 = vector.broadcast %cst_64 : f32 to vector<16x16xf32>
    %213 = arith.cmpf ogt, %109, %212 : vector<16x16xf32>
    %cst_65 = arith.constant -1.000000e+04 : f32
    %214 = vector.broadcast %cst_65 : f32 to vector<16x16xf32>
    %215 = arith.select %213, %211, %214 : vector<16x16xi1>, vector<16x16xf32>
    %cst_66 = arith.constant dense<0xFF800000> : vector<16xf32>
    %216 = vector.multi_reduction <maximumf>, %215, %cst_66 [1] : vector<16x16xf32> to vector<16xf32>
    %217 = vector.shape_cast %216 : vector<16xf32> to vector<16x1xf32>
    %218 = vector.broadcast %217 : vector<16x1xf32> to vector<16x16xf32>
    %219 = arith.subf %215, %218 : vector<16x16xf32>
    %220 = math.exp %219 : vector<16x16xf32>
    %cst_67 = arith.constant dense<0.000000e+00> : vector<16xf32>
    %221 = vector.multi_reduction <add>, %220, %cst_67 [1] : vector<16x16xf32> to vector<16xf32>
    %222 = vector.shape_cast %221 : vector<16xf32> to vector<16x1xf32>
    %223 = tpu.reciprocal %222 {approx = true} : vector<16x1xf32> -> vector<16x1xf32>
    %224 = vector.broadcast %223 : vector<16x1xf32> to vector<16x16xf32>
    %225 = arith.mulf %220, %224 : vector<16x16xf32>
    %226 = arith.truncf %225 : vector<16x16xf32> to vector<16x16xbf16>
    %cst_68 = arith.constant dense<0.000000e+00> : vector<16x16xf32>
    %227 = tpu.matmul %226, %173, %cst_68 {dimension_numbers = #tpu.dot_dimension_numbers<[1], [0], [0], [1], [0, 0, 1, 1], [], []>} : vector<16x16xbf16>, vector<16x16xbf16>, vector<16x16xf32> -> vector<16x16xf32>
    %228 = arith.mulf %225, %116 : vector<16x16xf32>
    %cst_69 = arith.constant dense<0.000000e+00> : vector<16xf32>
    %229 = vector.multi_reduction <add>, %228, %cst_69 [1] : vector<16x16xf32> to vector<16xf32>
    %230 = vector.shape_cast %229 : vector<16xf32> to vector<16x1xf32>
    %231 = arith.mulf %225, %120 : vector<16x16xf32>
    %cst_70 = arith.constant dense<0.000000e+00> : vector<16xf32>
    %232 = vector.multi_reduction <add>, %231, %cst_70 [1] : vector<16x16xf32> to vector<16xf32>
    %233 = vector.shape_cast %232 : vector<16xf32> to vector<16x1xf32>
    %234 = arith.mulf %225, %124 : vector<16x16xf32>
    %cst_71 = arith.constant dense<0.000000e+00> : vector<16xf32>
    %235 = vector.multi_reduction <add>, %234, %cst_71 [1] : vector<16x16xf32> to vector<16xf32>
    %236 = vector.shape_cast %235 : vector<16xf32> to vector<16x1xf32>
    %237 = arith.mulf %225, %128 : vector<16x16xf32>
    %cst_72 = arith.constant dense<0.000000e+00> : vector<16xf32>
    %238 = vector.multi_reduction <add>, %237, %cst_72 [1] : vector<16x16xf32> to vector<16xf32>
    %239 = vector.shape_cast %238 : vector<16xf32> to vector<16x1xf32>
    %240 = arith.mulf %225, %132 : vector<16x16xf32>
    %cst_73 = arith.constant dense<0.000000e+00> : vector<16xf32>
    %241 = vector.multi_reduction <add>, %240, %cst_73 [1] : vector<16x16xf32> to vector<16xf32>
    %242 = vector.shape_cast %241 : vector<16xf32> to vector<16x1xf32>
    %243 = arith.mulf %225, %136 : vector<16x16xf32>
    %cst_74 = arith.constant dense<0.000000e+00> : vector<16xf32>
    %244 = vector.multi_reduction <add>, %243, %cst_74 [1] : vector<16x16xf32> to vector<16xf32>
    %245 = vector.shape_cast %244 : vector<16xf32> to vector<16x1xf32>
    %246 = arith.mulf %225, %140 : vector<16x16xf32>
    %cst_75 = arith.constant dense<0.000000e+00> : vector<16xf32>
    %247 = vector.multi_reduction <add>, %246, %cst_75 [1] : vector<16x16xf32> to vector<16xf32>
    %248 = vector.shape_cast %247 : vector<16xf32> to vector<16x1xf32>
    %249 = arith.mulf %225, %144 : vector<16x16xf32>
    %cst_76 = arith.constant dense<0.000000e+00> : vector<16xf32>
    %250 = vector.multi_reduction <add>, %249, %cst_76 [1] : vector<16x16xf32> to vector<16xf32>
    %251 = vector.shape_cast %250 : vector<16xf32> to vector<16x1xf32>
    %252 = arith.mulf %225, %148 : vector<16x16xf32>
    %cst_77 = arith.constant dense<0.000000e+00> : vector<16xf32>
    %253 = vector.multi_reduction <add>, %252, %cst_77 [1] : vector<16x16xf32> to vector<16xf32>
    %254 = vector.shape_cast %253 : vector<16xf32> to vector<16x1xf32>
    %255 = tpu.concatenate %230, %233, %236, %239, %242, %245, %248, %251, %254 in 1 : vector<16x1xf32>, vector<16x1xf32>, vector<16x1xf32>, vector<16x1xf32>, vector<16x1xf32>, vector<16x1xf32>, vector<16x1xf32>, vector<16x1xf32>, vector<16x1xf32> -> vector<16x9xf32>
    %256 = arith.truncf %255 : vector<16x9xf32> to vector<16x9xbf16>
    %cst_78 = arith.constant dense<0.000000e+00> : vector<16x16xf32>
    %257 = tpu.matmul %256, %170, %cst_78 {dimension_numbers = #tpu.dot_dimension_numbers<[1], [0], [0], [1], [0, 0, 1, 1], [], []>} : vector<16x9xbf16>, vector<9x16xbf16>, vector<16x16xf32> -> vector<16x16xf32>
    %258 = arith.addf %227, %257 : vector<16x16xf32>
    %259 = vector.extract_strided_slice %162 {offsets = [0, 16], sizes = [16, 16], strides = [1, 1]} : vector<16x32xbf16> to vector<16x16xbf16>
    %260 = vector.extract_strided_slice %164 {offsets = [0, 16], sizes = [16, 16], strides = [1, 1]} : vector<16x32xbf16> to vector<16x16xbf16>
    %261 = vector.extract_strided_slice %166 {offsets = [0, 16], sizes = [16, 16], strides = [1, 1]} : vector<16x32xbf16> to vector<16x16xbf16>
    %cst_79 = arith.constant dense<0.000000e+00> : vector<16x16xf32>
    %262 = tpu.matmul %259, %260, %cst_79 {dimension_numbers = #tpu.dot_dimension_numbers<[1], [1], [0], [0], [0, 0, 1, 0], [], []>} : vector<16x16xbf16>, vector<16x16xbf16>, vector<16x16xf32> -> vector<16x16xf32>
    %cst_80 = arith.constant dense<0.000000e+00> : vector<16x9xf32>
    %263 = tpu.matmul %259, %168, %cst_80 {dimension_numbers = #tpu.dot_dimension_numbers<[1], [1], [0], [0], [0, 0, 1, 0], [], []>} : vector<16x16xbf16>, vector<9x16xbf16>, vector<16x9xf32> -> vector<16x9xf32>
    %264 = vector.extract_strided_slice %263 {offsets = [0, 0], sizes = [16, 1], strides = [1, 1]} : vector<16x9xf32> to vector<16x1xf32>
    %265 = vector.broadcast %264 : vector<16x1xf32> to vector<16x16xf32>
    %266 = arith.mulf %116, %265 : vector<16x16xf32>
    %267 = arith.addf %262, %266 : vector<16x16xf32>
    %268 = vector.extract_strided_slice %263 {offsets = [0, 1], sizes = [16, 1], strides = [1, 1]} : vector<16x9xf32> to vector<16x1xf32>
    %269 = vector.broadcast %268 : vector<16x1xf32> to vector<16x16xf32>
    %270 = arith.mulf %120, %269 : vector<16x16xf32>
    %271 = arith.addf %267, %270 : vector<16x16xf32>
    %272 = vector.extract_strided_slice %263 {offsets = [0, 2], sizes = [16, 1], strides = [1, 1]} : vector<16x9xf32> to vector<16x1xf32>
    %273 = vector.broadcast %272 : vector<16x1xf32> to vector<16x16xf32>
    %274 = arith.mulf %124, %273 : vector<16x16xf32>
    %275 = arith.addf %271, %274 : vector<16x16xf32>
    %276 = vector.extract_strided_slice %263 {offsets = [0, 3], sizes = [16, 1], strides = [1, 1]} : vector<16x9xf32> to vector<16x1xf32>
    %277 = vector.broadcast %276 : vector<16x1xf32> to vector<16x16xf32>
    %278 = arith.mulf %128, %277 : vector<16x16xf32>
    %279 = arith.addf %275, %278 : vector<16x16xf32>
    %280 = vector.extract_strided_slice %263 {offsets = [0, 4], sizes = [16, 1], strides = [1, 1]} : vector<16x9xf32> to vector<16x1xf32>
    %281 = vector.broadcast %280 : vector<16x1xf32> to vector<16x16xf32>
    %282 = arith.mulf %132, %281 : vector<16x16xf32>
    %283 = arith.addf %279, %282 : vector<16x16xf32>
    %284 = vector.extract_strided_slice %263 {offsets = [0, 5], sizes = [16, 1], strides = [1, 1]} : vector<16x9xf32> to vector<16x1xf32>
    %285 = vector.broadcast %284 : vector<16x1xf32> to vector<16x16xf32>
    %286 = arith.mulf %136, %285 : vector<16x16xf32>
    %287 = arith.addf %283, %286 : vector<16x16xf32>
    %288 = vector.extract_strided_slice %263 {offsets = [0, 6], sizes = [16, 1], strides = [1, 1]} : vector<16x9xf32> to vector<16x1xf32>
    %289 = vector.broadcast %288 : vector<16x1xf32> to vector<16x16xf32>
    %290 = arith.mulf %140, %289 : vector<16x16xf32>
    %291 = arith.addf %287, %290 : vector<16x16xf32>
    %292 = vector.extract_strided_slice %263 {offsets = [0, 7], sizes = [16, 1], strides = [1, 1]} : vector<16x9xf32> to vector<16x1xf32>
    %293 = vector.broadcast %292 : vector<16x1xf32> to vector<16x16xf32>
    %294 = arith.mulf %144, %293 : vector<16x16xf32>
    %295 = arith.addf %291, %294 : vector<16x16xf32>
    %296 = vector.extract_strided_slice %263 {offsets = [0, 8], sizes = [16, 1], strides = [1, 1]} : vector<16x9xf32> to vector<16x1xf32>
    %297 = vector.broadcast %296 : vector<16x1xf32> to vector<16x16xf32>
    %298 = arith.mulf %148, %297 : vector<16x16xf32>
    %299 = arith.addf %295, %298 : vector<16x16xf32>
    %cst_81 = arith.constant 0.000000e+00 : f32
    %300 = vector.broadcast %cst_81 : f32 to vector<16x16xf32>
    %301 = arith.cmpf ogt, %109, %300 : vector<16x16xf32>
    %cst_82 = arith.constant -1.000000e+04 : f32
    %302 = vector.broadcast %cst_82 : f32 to vector<16x16xf32>
    %303 = arith.select %301, %299, %302 : vector<16x16xi1>, vector<16x16xf32>
    %cst_83 = arith.constant dense<0xFF800000> : vector<16xf32>
    %304 = vector.multi_reduction <maximumf>, %303, %cst_83 [1] : vector<16x16xf32> to vector<16xf32>
    %305 = vector.shape_cast %304 : vector<16xf32> to vector<16x1xf32>
    %306 = vector.broadcast %305 : vector<16x1xf32> to vector<16x16xf32>
    %307 = arith.subf %303, %306 : vector<16x16xf32>
    %308 = math.exp %307 : vector<16x16xf32>
    %cst_84 = arith.constant dense<0.000000e+00> : vector<16xf32>
    %309 = vector.multi_reduction <add>, %308, %cst_84 [1] : vector<16x16xf32> to vector<16xf32>
    %310 = vector.shape_cast %309 : vector<16xf32> to vector<16x1xf32>
    %311 = tpu.reciprocal %310 {approx = true} : vector<16x1xf32> -> vector<16x1xf32>
    %312 = vector.broadcast %311 : vector<16x1xf32> to vector<16x16xf32>
    %313 = arith.mulf %308, %312 : vector<16x16xf32>
    %314 = arith.truncf %313 : vector<16x16xf32> to vector<16x16xbf16>
    %cst_85 = arith.constant dense<0.000000e+00> : vector<16x16xf32>
    %315 = tpu.matmul %314, %261, %cst_85 {dimension_numbers = #tpu.dot_dimension_numbers<[1], [0], [0], [1], [0, 0, 1, 1], [], []>} : vector<16x16xbf16>, vector<16x16xbf16>, vector<16x16xf32> -> vector<16x16xf32>
    %316 = arith.mulf %313, %116 : vector<16x16xf32>
    %cst_86 = arith.constant dense<0.000000e+00> : vector<16xf32>
    %317 = vector.multi_reduction <add>, %316, %cst_86 [1] : vector<16x16xf32> to vector<16xf32>
    %318 = vector.shape_cast %317 : vector<16xf32> to vector<16x1xf32>
    %319 = arith.mulf %313, %120 : vector<16x16xf32>
    %cst_87 = arith.constant dense<0.000000e+00> : vector<16xf32>
    %320 = vector.multi_reduction <add>, %319, %cst_87 [1] : vector<16x16xf32> to vector<16xf32>
    %321 = vector.shape_cast %320 : vector<16xf32> to vector<16x1xf32>
    %322 = arith.mulf %313, %124 : vector<16x16xf32>
    %cst_88 = arith.constant dense<0.000000e+00> : vector<16xf32>
    %323 = vector.multi_reduction <add>, %322, %cst_88 [1] : vector<16x16xf32> to vector<16xf32>
    %324 = vector.shape_cast %323 : vector<16xf32> to vector<16x1xf32>
    %325 = arith.mulf %313, %128 : vector<16x16xf32>
    %cst_89 = arith.constant dense<0.000000e+00> : vector<16xf32>
    %326 = vector.multi_reduction <add>, %325, %cst_89 [1] : vector<16x16xf32> to vector<16xf32>
    %327 = vector.shape_cast %326 : vector<16xf32> to vector<16x1xf32>
    %328 = arith.mulf %313, %132 : vector<16x16xf32>
    %cst_90 = arith.constant dense<0.000000e+00> : vector<16xf32>
    %329 = vector.multi_reduction <add>, %328, %cst_90 [1] : vector<16x16xf32> to vector<16xf32>
    %330 = vector.shape_cast %329 : vector<16xf32> to vector<16x1xf32>
    %331 = arith.mulf %313, %136 : vector<16x16xf32>
    %cst_91 = arith.constant dense<0.000000e+00> : vector<16xf32>
    %332 = vector.multi_reduction <add>, %331, %cst_91 [1] : vector<16x16xf32> to vector<16xf32>
    %333 = vector.shape_cast %332 : vector<16xf32> to vector<16x1xf32>
    %334 = arith.mulf %313, %140 : vector<16x16xf32>
    %cst_92 = arith.constant dense<0.000000e+00> : vector<16xf32>
    %335 = vector.multi_reduction <add>, %334, %cst_92 [1] : vector<16x16xf32> to vector<16xf32>
    %336 = vector.shape_cast %335 : vector<16xf32> to vector<16x1xf32>
    %337 = arith.mulf %313, %144 : vector<16x16xf32>
    %cst_93 = arith.constant dense<0.000000e+00> : vector<16xf32>
    %338 = vector.multi_reduction <add>, %337, %cst_93 [1] : vector<16x16xf32> to vector<16xf32>
    %339 = vector.shape_cast %338 : vector<16xf32> to vector<16x1xf32>
    %340 = arith.mulf %313, %148 : vector<16x16xf32>
    %cst_94 = arith.constant dense<0.000000e+00> : vector<16xf32>
    %341 = vector.multi_reduction <add>, %340, %cst_94 [1] : vector<16x16xf32> to vector<16xf32>
    %342 = vector.shape_cast %341 : vector<16xf32> to vector<16x1xf32>
    %343 = tpu.concatenate %318, %321, %324, %327, %330, %333, %336, %339, %342 in 1 : vector<16x1xf32>, vector<16x1xf32>, vector<16x1xf32>, vector<16x1xf32>, vector<16x1xf32>, vector<16x1xf32>, vector<16x1xf32>, vector<16x1xf32>, vector<16x1xf32> -> vector<16x9xf32>
    %344 = arith.truncf %343 : vector<16x9xf32> to vector<16x9xbf16>
    %cst_95 = arith.constant dense<0.000000e+00> : vector<16x16xf32>
    %345 = tpu.matmul %344, %170, %cst_95 {dimension_numbers = #tpu.dot_dimension_numbers<[1], [0], [0], [1], [0, 0, 1, 1], [], []>} : vector<16x9xbf16>, vector<9x16xbf16>, vector<16x16xf32> -> vector<16x16xf32>
    %346 = arith.addf %315, %345 : vector<16x16xf32>
    %347 = tpu.concatenate %258, %346 in 1 : vector<16x16xf32>, vector<16x16xf32> -> vector<16x32xf32>
    %348 = arith.truncf %347 : vector<16x32xf32> to vector<16x32xbf16>
    %c0_96 = arith.constant 0 : index
    %c0_97 = arith.constant 0 : index
    %c0_98 = arith.constant 0 : index
    %349 = vector.load %arg18[%c0_96, %c0_97, %c0_98] : memref<2x32x32xbf16, #tpu.memory_space<vmem>>, vector<1x32x32xbf16>
    %350 = vector.shape_cast %349 : vector<1x32x32xbf16> to vector<32x32xbf16>
    %cst_99 = arith.constant dense<0.000000e+00> : vector<16x32xf32>
    %351 = tpu.matmul %348, %350, %cst_99 {dimension_numbers = #tpu.dot_dimension_numbers<[1], [0], [0], [1], [0, 0, 1, 1], [], []>} : vector<16x32xbf16>, vector<32x32xbf16>, vector<16x32xf32> -> vector<16x32xf32>
    %c0_100 = arith.constant 0 : index
    %c0_101 = arith.constant 0 : index
    %c0_102 = arith.constant 0 : index
    %352 = vector.load %arg19[%c0_100, %c0_101, %c0_102] : memref<2x1x32xf32, #tpu.memory_space<vmem>>, vector<1x1x32xf32>
    %353 = vector.shape_cast %352 : vector<1x1x32xf32> to vector<1x32xf32>
    %354 = vector.broadcast %353 : vector<1x32xf32> to vector<16x32xf32>
    %355 = arith.addf %351, %354 : vector<16x32xf32>
    %356 = arith.addf %150, %355 : vector<16x32xf32>
    %c0_103 = arith.constant 0 : index
    %c0_104 = arith.constant 0 : index
    %c0_105 = arith.constant 0 : index
    %357 = vector.load %arg22[%c0_103, %c0_104, %c0_105] : memref<2x1x32xf32, #tpu.memory_space<vmem>>, vector<1x1x32xf32>
    %358 = vector.shape_cast %357 : vector<1x1x32xf32> to vector<1x32xf32>
    %c0_106 = arith.constant 0 : index
    %c0_107 = arith.constant 0 : index
    %c0_108 = arith.constant 0 : index
    %359 = vector.load %arg23[%c0_106, %c0_107, %c0_108] : memref<2x1x32xf32, #tpu.memory_space<vmem>>, vector<1x1x32xf32>
    %360 = vector.shape_cast %359 : vector<1x1x32xf32> to vector<1x32xf32>
    %cst_109 = arith.constant dense<0.000000e+00> : vector<16xf32>
    %361 = vector.multi_reduction <add>, %356, %cst_109 [1] : vector<16x32xf32> to vector<16xf32>
    %362 = vector.shape_cast %361 : vector<16xf32> to vector<16x1xf32>
    %cst_110 = arith.constant 3.200000e+01 : f32
    %363 = vector.broadcast %cst_110 : f32 to vector<16x1xf32>
    %364 = arith.divf %362, %363 : vector<16x1xf32>
    %365 = vector.broadcast %364 : vector<16x1xf32> to vector<16x32xf32>
    %366 = arith.subf %356, %365 : vector<16x32xf32>
    %367 = arith.mulf %366, %366 : vector<16x32xf32>
    %cst_111 = arith.constant dense<0.000000e+00> : vector<16xf32>
    %368 = vector.multi_reduction <add>, %367, %cst_111 [1] : vector<16x32xf32> to vector<16xf32>
    %369 = vector.shape_cast %368 : vector<16xf32> to vector<16x1xf32>
    %cst_112 = arith.constant 3.200000e+01 : f32
    %370 = vector.broadcast %cst_112 : f32 to vector<16x1xf32>
    %371 = arith.divf %369, %370 : vector<16x1xf32>
    %372 = vector.broadcast %364 : vector<16x1xf32> to vector<16x32xf32>
    %373 = arith.subf %356, %372 : vector<16x32xf32>
    %cst_113 = arith.constant 9.99999974E-5 : f32
    %374 = vector.broadcast %cst_113 : f32 to vector<16x1xf32>
    %375 = arith.addf %371, %374 : vector<16x1xf32>
    %376 = math.rsqrt %375 : vector<16x1xf32>
    %377 = vector.broadcast %376 : vector<16x1xf32> to vector<16x32xf32>
    %378 = arith.mulf %373, %377 : vector<16x32xf32>
    %379 = vector.broadcast %358 : vector<1x32xf32> to vector<16x32xf32>
    %380 = arith.mulf %378, %379 : vector<16x32xf32>
    %381 = vector.broadcast %360 : vector<1x32xf32> to vector<16x32xf32>
    %382 = arith.addf %380, %381 : vector<16x32xf32>
    %383 = vector.broadcast %1 : vector<16x1xf32> to vector<16x32xf32>
    %384 = arith.mulf %382, %383 : vector<16x32xf32>
    %c0_114 = arith.constant 0 : index
    %c0_115 = arith.constant 0 : index
    %c0_116 = arith.constant 0 : index
    %385 = vector.load %arg24[%c0_114, %c0_115, %c0_116] : memref<2x96x64xbf16, #tpu.memory_space<vmem>>, vector<1x96x64xbf16>
    %386 = vector.shape_cast %385 : vector<1x96x64xbf16> to vector<96x64xbf16>
    %c0_117 = arith.constant 0 : index
    %c0_118 = arith.constant 0 : index
    %c0_119 = arith.constant 0 : index
    %387 = vector.load %arg25[%c0_117, %c0_118, %c0_119] : memref<2x1x64xf32, #tpu.memory_space<vmem>>, vector<1x1x64xf32>
    %388 = vector.shape_cast %387 : vector<1x1x64xf32> to vector<1x64xf32>
    %cst_120 = arith.constant 0.000000e+00 : f32
    %389 = vector.broadcast %cst_120 : f32 to vector<8x32xf32>
    %390 = tpu.concatenate %389, %384, %389 in 0 : vector<8x32xf32>, vector<16x32xf32>, vector<8x32xf32> -> vector<32x32xf32>
    %391 = vector.extract_strided_slice %390 {offsets = [7, 0], sizes = [16, 32], strides = [1, 1]} : vector<32x32xf32> to vector<16x32xf32>
    %392 = vector.extract_strided_slice %390 {offsets = [8, 0], sizes = [16, 32], strides = [1, 1]} : vector<32x32xf32> to vector<16x32xf32>
    %393 = vector.extract_strided_slice %390 {offsets = [9, 0], sizes = [16, 32], strides = [1, 1]} : vector<32x32xf32> to vector<16x32xf32>
    %394 = tpu.concatenate %391, %392, %393 in 1 : vector<16x32xf32>, vector<16x32xf32>, vector<16x32xf32> -> vector<16x96xf32>
    %395 = arith.truncf %394 : vector<16x96xf32> to vector<16x96xbf16>
    %cst_121 = arith.constant dense<0.000000e+00> : vector<16x64xf32>
    %396 = tpu.matmul %395, %386, %cst_121 {dimension_numbers = #tpu.dot_dimension_numbers<[1], [0], [0], [1], [0, 0, 1, 1], [], []>} : vector<16x96xbf16>, vector<96x64xbf16>, vector<16x64xf32> -> vector<16x64xf32>
    %397 = vector.broadcast %388 : vector<1x64xf32> to vector<16x64xf32>
    %398 = arith.addf %396, %397 : vector<16x64xf32>
    %cst_122 = arith.constant 0.000000e+00 : f32
    %399 = vector.broadcast %cst_122 : f32 to vector<16x64xf32>
    %400 = arith.maximumf %398, %399 : vector<16x64xf32>
    %401 = vector.broadcast %1 : vector<16x1xf32> to vector<16x64xf32>
    %402 = arith.mulf %400, %401 : vector<16x64xf32>
    %c0_123 = arith.constant 0 : index
    %c0_124 = arith.constant 0 : index
    %c0_125 = arith.constant 0 : index
    %403 = vector.load %arg26[%c0_123, %c0_124, %c0_125] : memref<2x192x32xbf16, #tpu.memory_space<vmem>>, vector<1x192x32xbf16>
    %404 = vector.shape_cast %403 : vector<1x192x32xbf16> to vector<192x32xbf16>
    %c0_126 = arith.constant 0 : index
    %c0_127 = arith.constant 0 : index
    %c0_128 = arith.constant 0 : index
    %405 = vector.load %arg27[%c0_126, %c0_127, %c0_128] : memref<2x1x32xf32, #tpu.memory_space<vmem>>, vector<1x1x32xf32>
    %406 = vector.shape_cast %405 : vector<1x1x32xf32> to vector<1x32xf32>
    %cst_129 = arith.constant 0.000000e+00 : f32
    %407 = vector.broadcast %cst_129 : f32 to vector<8x64xf32>
    %408 = tpu.concatenate %407, %402, %407 in 0 : vector<8x64xf32>, vector<16x64xf32>, vector<8x64xf32> -> vector<32x64xf32>
    %409 = vector.extract_strided_slice %408 {offsets = [7, 0], sizes = [16, 64], strides = [1, 1]} : vector<32x64xf32> to vector<16x64xf32>
    %410 = vector.extract_strided_slice %408 {offsets = [8, 0], sizes = [16, 64], strides = [1, 1]} : vector<32x64xf32> to vector<16x64xf32>
    %411 = vector.extract_strided_slice %408 {offsets = [9, 0], sizes = [16, 64], strides = [1, 1]} : vector<32x64xf32> to vector<16x64xf32>
    %412 = tpu.concatenate %409, %410, %411 in 1 : vector<16x64xf32>, vector<16x64xf32>, vector<16x64xf32> -> vector<16x192xf32>
    %413 = arith.truncf %412 : vector<16x192xf32> to vector<16x192xbf16>
    %cst_130 = arith.constant dense<0.000000e+00> : vector<16x32xf32>
    %414 = tpu.matmul %413, %404, %cst_130 {dimension_numbers = #tpu.dot_dimension_numbers<[1], [0], [0], [1], [0, 0, 1, 1], [], []>} : vector<16x192xbf16>, vector<192x32xbf16>, vector<16x32xf32> -> vector<16x32xf32>
    %415 = vector.broadcast %406 : vector<1x32xf32> to vector<16x32xf32>
    %416 = arith.addf %414, %415 : vector<16x32xf32>
    %417 = vector.broadcast %1 : vector<16x1xf32> to vector<16x32xf32>
    %418 = arith.mulf %416, %417 : vector<16x32xf32>
    %419 = arith.addf %382, %418 : vector<16x32xf32>
    %c0_131 = arith.constant 0 : index
    %c0_132 = arith.constant 0 : index
    %c0_133 = arith.constant 0 : index
    %420 = vector.load %arg28[%c0_131, %c0_132, %c0_133] : memref<2x1x32xf32, #tpu.memory_space<vmem>>, vector<1x1x32xf32>
    %421 = vector.shape_cast %420 : vector<1x1x32xf32> to vector<1x32xf32>
    %c0_134 = arith.constant 0 : index
    %c0_135 = arith.constant 0 : index
    %c0_136 = arith.constant 0 : index
    %422 = vector.load %arg29[%c0_134, %c0_135, %c0_136] : memref<2x1x32xf32, #tpu.memory_space<vmem>>, vector<1x1x32xf32>
    %423 = vector.shape_cast %422 : vector<1x1x32xf32> to vector<1x32xf32>
    %cst_137 = arith.constant dense<0.000000e+00> : vector<16xf32>
    %424 = vector.multi_reduction <add>, %419, %cst_137 [1] : vector<16x32xf32> to vector<16xf32>
    %425 = vector.shape_cast %424 : vector<16xf32> to vector<16x1xf32>
    %cst_138 = arith.constant 3.200000e+01 : f32
    %426 = vector.broadcast %cst_138 : f32 to vector<16x1xf32>
    %427 = arith.divf %425, %426 : vector<16x1xf32>
    %428 = vector.broadcast %427 : vector<16x1xf32> to vector<16x32xf32>
    %429 = arith.subf %419, %428 : vector<16x32xf32>
    %430 = arith.mulf %429, %429 : vector<16x32xf32>
    %cst_139 = arith.constant dense<0.000000e+00> : vector<16xf32>
    %431 = vector.multi_reduction <add>, %430, %cst_139 [1] : vector<16x32xf32> to vector<16xf32>
    %432 = vector.shape_cast %431 : vector<16xf32> to vector<16x1xf32>
    %cst_140 = arith.constant 3.200000e+01 : f32
    %433 = vector.broadcast %cst_140 : f32 to vector<16x1xf32>
    %434 = arith.divf %432, %433 : vector<16x1xf32>
    %435 = vector.broadcast %427 : vector<16x1xf32> to vector<16x32xf32>
    %436 = arith.subf %419, %435 : vector<16x32xf32>
    %cst_141 = arith.constant 9.99999974E-5 : f32
    %437 = vector.broadcast %cst_141 : f32 to vector<16x1xf32>
    %438 = arith.addf %434, %437 : vector<16x1xf32>
    %439 = math.rsqrt %438 : vector<16x1xf32>
    %440 = vector.broadcast %439 : vector<16x1xf32> to vector<16x32xf32>
    %441 = arith.mulf %436, %440 : vector<16x32xf32>
    %442 = vector.broadcast %421 : vector<1x32xf32> to vector<16x32xf32>
    %443 = arith.mulf %441, %442 : vector<16x32xf32>
    %444 = vector.broadcast %423 : vector<1x32xf32> to vector<16x32xf32>
    %445 = arith.addf %443, %444 : vector<16x32xf32>
    %446 = vector.broadcast %1 : vector<16x1xf32> to vector<16x32xf32>
    %447 = arith.mulf %445, %446 : vector<16x32xf32>
    %448 = arith.truncf %447 : vector<16x32xf32> to vector<16x32xbf16>
    %c1 = arith.constant 1 : index
    %c0_142 = arith.constant 0 : index
    %c0_143 = arith.constant 0 : index
    %449 = vector.load %arg16[%c1, %c0_142, %c0_143] : memref<2x32x96xbf16, #tpu.memory_space<vmem>>, vector<1x32x96xbf16>
    %450 = vector.shape_cast %449 : vector<1x32x96xbf16> to vector<32x96xbf16>
    %cst_144 = arith.constant dense<0.000000e+00> : vector<16x96xf32>
    %451 = tpu.matmul %448, %450, %cst_144 {dimension_numbers = #tpu.dot_dimension_numbers<[1], [0], [0], [1], [0, 0, 1, 1], [], []>} : vector<16x32xbf16>, vector<32x96xbf16>, vector<16x96xf32> -> vector<16x96xf32>
    %c1_145 = arith.constant 1 : index
    %c0_146 = arith.constant 0 : index
    %c0_147 = arith.constant 0 : index
    %452 = vector.load %arg17[%c1_145, %c0_146, %c0_147] : memref<2x1x96xf32, #tpu.memory_space<vmem>>, vector<1x1x96xf32>
    %453 = vector.shape_cast %452 : vector<1x1x96xf32> to vector<1x96xf32>
    %454 = vector.broadcast %453 : vector<1x96xf32> to vector<16x96xf32>
    %455 = arith.addf %451, %454 : vector<16x96xf32>
    %456 = vector.extract_strided_slice %455 {offsets = [0, 0], sizes = [16, 32], strides = [1, 1]} : vector<16x96xf32> to vector<16x32xf32>
    %cst_148 = arith.constant 2.500000e-01 : f32
    %457 = vector.broadcast %cst_148 : f32 to vector<16x32xf32>
    %458 = arith.mulf %456, %457 : vector<16x32xf32>
    %459 = arith.truncf %458 : vector<16x32xf32> to vector<16x32xbf16>
    %460 = vector.extract_strided_slice %455 {offsets = [0, 32], sizes = [16, 32], strides = [1, 1]} : vector<16x96xf32> to vector<16x32xf32>
    %461 = arith.truncf %460 : vector<16x32xf32> to vector<16x32xbf16>
    %462 = vector.extract_strided_slice %455 {offsets = [0, 64], sizes = [16, 32], strides = [1, 1]} : vector<16x96xf32> to vector<16x32xf32>
    %463 = arith.truncf %462 : vector<16x32xf32> to vector<16x32xbf16>
    %c1_149 = arith.constant 1 : index
    %c0_150 = arith.constant 0 : index
    %c0_151 = arith.constant 0 : index
    %464 = vector.load %arg20[%c1_149, %c0_150, %c0_151] : memref<2x9x16xbf16, #tpu.memory_space<vmem>>, vector<1x9x16xbf16>
    %465 = vector.shape_cast %464 : vector<1x9x16xbf16> to vector<9x16xbf16>
    %c1_152 = arith.constant 1 : index
    %c0_153 = arith.constant 0 : index
    %c0_154 = arith.constant 0 : index
    %466 = vector.load %arg21[%c1_152, %c0_153, %c0_154] : memref<2x9x16xbf16, #tpu.memory_space<vmem>>, vector<1x9x16xbf16>
    %467 = vector.shape_cast %466 : vector<1x9x16xbf16> to vector<9x16xbf16>
    %468 = vector.extract_strided_slice %459 {offsets = [0, 0], sizes = [16, 16], strides = [1, 1]} : vector<16x32xbf16> to vector<16x16xbf16>
    %469 = vector.extract_strided_slice %461 {offsets = [0, 0], sizes = [16, 16], strides = [1, 1]} : vector<16x32xbf16> to vector<16x16xbf16>
    %470 = vector.extract_strided_slice %463 {offsets = [0, 0], sizes = [16, 16], strides = [1, 1]} : vector<16x32xbf16> to vector<16x16xbf16>
    %cst_155 = arith.constant dense<0.000000e+00> : vector<16x16xf32>
    %471 = tpu.matmul %468, %469, %cst_155 {dimension_numbers = #tpu.dot_dimension_numbers<[1], [1], [0], [0], [0, 0, 1, 0], [], []>} : vector<16x16xbf16>, vector<16x16xbf16>, vector<16x16xf32> -> vector<16x16xf32>
    %cst_156 = arith.constant dense<0.000000e+00> : vector<16x9xf32>
    %472 = tpu.matmul %468, %465, %cst_156 {dimension_numbers = #tpu.dot_dimension_numbers<[1], [1], [0], [0], [0, 0, 1, 0], [], []>} : vector<16x16xbf16>, vector<9x16xbf16>, vector<16x9xf32> -> vector<16x9xf32>
    %473 = vector.extract_strided_slice %472 {offsets = [0, 0], sizes = [16, 1], strides = [1, 1]} : vector<16x9xf32> to vector<16x1xf32>
    %474 = vector.broadcast %473 : vector<16x1xf32> to vector<16x16xf32>
    %475 = arith.mulf %116, %474 : vector<16x16xf32>
    %476 = arith.addf %471, %475 : vector<16x16xf32>
    %477 = vector.extract_strided_slice %472 {offsets = [0, 1], sizes = [16, 1], strides = [1, 1]} : vector<16x9xf32> to vector<16x1xf32>
    %478 = vector.broadcast %477 : vector<16x1xf32> to vector<16x16xf32>
    %479 = arith.mulf %120, %478 : vector<16x16xf32>
    %480 = arith.addf %476, %479 : vector<16x16xf32>
    %481 = vector.extract_strided_slice %472 {offsets = [0, 2], sizes = [16, 1], strides = [1, 1]} : vector<16x9xf32> to vector<16x1xf32>
    %482 = vector.broadcast %481 : vector<16x1xf32> to vector<16x16xf32>
    %483 = arith.mulf %124, %482 : vector<16x16xf32>
    %484 = arith.addf %480, %483 : vector<16x16xf32>
    %485 = vector.extract_strided_slice %472 {offsets = [0, 3], sizes = [16, 1], strides = [1, 1]} : vector<16x9xf32> to vector<16x1xf32>
    %486 = vector.broadcast %485 : vector<16x1xf32> to vector<16x16xf32>
    %487 = arith.mulf %128, %486 : vector<16x16xf32>
    %488 = arith.addf %484, %487 : vector<16x16xf32>
    %489 = vector.extract_strided_slice %472 {offsets = [0, 4], sizes = [16, 1], strides = [1, 1]} : vector<16x9xf32> to vector<16x1xf32>
    %490 = vector.broadcast %489 : vector<16x1xf32> to vector<16x16xf32>
    %491 = arith.mulf %132, %490 : vector<16x16xf32>
    %492 = arith.addf %488, %491 : vector<16x16xf32>
    %493 = vector.extract_strided_slice %472 {offsets = [0, 5], sizes = [16, 1], strides = [1, 1]} : vector<16x9xf32> to vector<16x1xf32>
    %494 = vector.broadcast %493 : vector<16x1xf32> to vector<16x16xf32>
    %495 = arith.mulf %136, %494 : vector<16x16xf32>
    %496 = arith.addf %492, %495 : vector<16x16xf32>
    %497 = vector.extract_strided_slice %472 {offsets = [0, 6], sizes = [16, 1], strides = [1, 1]} : vector<16x9xf32> to vector<16x1xf32>
    %498 = vector.broadcast %497 : vector<16x1xf32> to vector<16x16xf32>
    %499 = arith.mulf %140, %498 : vector<16x16xf32>
    %500 = arith.addf %496, %499 : vector<16x16xf32>
    %501 = vector.extract_strided_slice %472 {offsets = [0, 7], sizes = [16, 1], strides = [1, 1]} : vector<16x9xf32> to vector<16x1xf32>
    %502 = vector.broadcast %501 : vector<16x1xf32> to vector<16x16xf32>
    %503 = arith.mulf %144, %502 : vector<16x16xf32>
    %504 = arith.addf %500, %503 : vector<16x16xf32>
    %505 = vector.extract_strided_slice %472 {offsets = [0, 8], sizes = [16, 1], strides = [1, 1]} : vector<16x9xf32> to vector<16x1xf32>
    %506 = vector.broadcast %505 : vector<16x1xf32> to vector<16x16xf32>
    %507 = arith.mulf %148, %506 : vector<16x16xf32>
    %508 = arith.addf %504, %507 : vector<16x16xf32>
    %cst_157 = arith.constant 0.000000e+00 : f32
    %509 = vector.broadcast %cst_157 : f32 to vector<16x16xf32>
    %510 = arith.cmpf ogt, %109, %509 : vector<16x16xf32>
    %cst_158 = arith.constant -1.000000e+04 : f32
    %511 = vector.broadcast %cst_158 : f32 to vector<16x16xf32>
    %512 = arith.select %510, %508, %511 : vector<16x16xi1>, vector<16x16xf32>
    %cst_159 = arith.constant dense<0xFF800000> : vector<16xf32>
    %513 = vector.multi_reduction <maximumf>, %512, %cst_159 [1] : vector<16x16xf32> to vector<16xf32>
    %514 = vector.shape_cast %513 : vector<16xf32> to vector<16x1xf32>
    %515 = vector.broadcast %514 : vector<16x1xf32> to vector<16x16xf32>
    %516 = arith.subf %512, %515 : vector<16x16xf32>
    %517 = math.exp %516 : vector<16x16xf32>
    %cst_160 = arith.constant dense<0.000000e+00> : vector<16xf32>
    %518 = vector.multi_reduction <add>, %517, %cst_160 [1] : vector<16x16xf32> to vector<16xf32>
    %519 = vector.shape_cast %518 : vector<16xf32> to vector<16x1xf32>
    %520 = tpu.reciprocal %519 {approx = true} : vector<16x1xf32> -> vector<16x1xf32>
    %521 = vector.broadcast %520 : vector<16x1xf32> to vector<16x16xf32>
    %522 = arith.mulf %517, %521 : vector<16x16xf32>
    %523 = arith.truncf %522 : vector<16x16xf32> to vector<16x16xbf16>
    %cst_161 = arith.constant dense<0.000000e+00> : vector<16x16xf32>
    %524 = tpu.matmul %523, %470, %cst_161 {dimension_numbers = #tpu.dot_dimension_numbers<[1], [0], [0], [1], [0, 0, 1, 1], [], []>} : vector<16x16xbf16>, vector<16x16xbf16>, vector<16x16xf32> -> vector<16x16xf32>
    %525 = arith.mulf %522, %116 : vector<16x16xf32>
    %cst_162 = arith.constant dense<0.000000e+00> : vector<16xf32>
    %526 = vector.multi_reduction <add>, %525, %cst_162 [1] : vector<16x16xf32> to vector<16xf32>
    %527 = vector.shape_cast %526 : vector<16xf32> to vector<16x1xf32>
    %528 = arith.mulf %522, %120 : vector<16x16xf32>
    %cst_163 = arith.constant dense<0.000000e+00> : vector<16xf32>
    %529 = vector.multi_reduction <add>, %528, %cst_163 [1] : vector<16x16xf32> to vector<16xf32>
    %530 = vector.shape_cast %529 : vector<16xf32> to vector<16x1xf32>
    %531 = arith.mulf %522, %124 : vector<16x16xf32>
    %cst_164 = arith.constant dense<0.000000e+00> : vector<16xf32>
    %532 = vector.multi_reduction <add>, %531, %cst_164 [1] : vector<16x16xf32> to vector<16xf32>
    %533 = vector.shape_cast %532 : vector<16xf32> to vector<16x1xf32>
    %534 = arith.mulf %522, %128 : vector<16x16xf32>
    %cst_165 = arith.constant dense<0.000000e+00> : vector<16xf32>
    %535 = vector.multi_reduction <add>, %534, %cst_165 [1] : vector<16x16xf32> to vector<16xf32>
    %536 = vector.shape_cast %535 : vector<16xf32> to vector<16x1xf32>
    %537 = arith.mulf %522, %132 : vector<16x16xf32>
    %cst_166 = arith.constant dense<0.000000e+00> : vector<16xf32>
    %538 = vector.multi_reduction <add>, %537, %cst_166 [1] : vector<16x16xf32> to vector<16xf32>
    %539 = vector.shape_cast %538 : vector<16xf32> to vector<16x1xf32>
    %540 = arith.mulf %522, %136 : vector<16x16xf32>
    %cst_167 = arith.constant dense<0.000000e+00> : vector<16xf32>
    %541 = vector.multi_reduction <add>, %540, %cst_167 [1] : vector<16x16xf32> to vector<16xf32>
    %542 = vector.shape_cast %541 : vector<16xf32> to vector<16x1xf32>
    %543 = arith.mulf %522, %140 : vector<16x16xf32>
    %cst_168 = arith.constant dense<0.000000e+00> : vector<16xf32>
    %544 = vector.multi_reduction <add>, %543, %cst_168 [1] : vector<16x16xf32> to vector<16xf32>
    %545 = vector.shape_cast %544 : vector<16xf32> to vector<16x1xf32>
    %546 = arith.mulf %522, %144 : vector<16x16xf32>
    %cst_169 = arith.constant dense<0.000000e+00> : vector<16xf32>
    %547 = vector.multi_reduction <add>, %546, %cst_169 [1] : vector<16x16xf32> to vector<16xf32>
    %548 = vector.shape_cast %547 : vector<16xf32> to vector<16x1xf32>
    %549 = arith.mulf %522, %148 : vector<16x16xf32>
    %cst_170 = arith.constant dense<0.000000e+00> : vector<16xf32>
    %550 = vector.multi_reduction <add>, %549, %cst_170 [1] : vector<16x16xf32> to vector<16xf32>
    %551 = vector.shape_cast %550 : vector<16xf32> to vector<16x1xf32>
    %552 = tpu.concatenate %527, %530, %533, %536, %539, %542, %545, %548, %551 in 1 : vector<16x1xf32>, vector<16x1xf32>, vector<16x1xf32>, vector<16x1xf32>, vector<16x1xf32>, vector<16x1xf32>, vector<16x1xf32>, vector<16x1xf32>, vector<16x1xf32> -> vector<16x9xf32>
    %553 = arith.truncf %552 : vector<16x9xf32> to vector<16x9xbf16>
    %cst_171 = arith.constant dense<0.000000e+00> : vector<16x16xf32>
    %554 = tpu.matmul %553, %467, %cst_171 {dimension_numbers = #tpu.dot_dimension_numbers<[1], [0], [0], [1], [0, 0, 1, 1], [], []>} : vector<16x9xbf16>, vector<9x16xbf16>, vector<16x16xf32> -> vector<16x16xf32>
    %555 = arith.addf %524, %554 : vector<16x16xf32>
    %556 = vector.extract_strided_slice %459 {offsets = [0, 16], sizes = [16, 16], strides = [1, 1]} : vector<16x32xbf16> to vector<16x16xbf16>
    %557 = vector.extract_strided_slice %461 {offsets = [0, 16], sizes = [16, 16], strides = [1, 1]} : vector<16x32xbf16> to vector<16x16xbf16>
    %558 = vector.extract_strided_slice %463 {offsets = [0, 16], sizes = [16, 16], strides = [1, 1]} : vector<16x32xbf16> to vector<16x16xbf16>
    %cst_172 = arith.constant dense<0.000000e+00> : vector<16x16xf32>
    %559 = tpu.matmul %556, %557, %cst_172 {dimension_numbers = #tpu.dot_dimension_numbers<[1], [1], [0], [0], [0, 0, 1, 0], [], []>} : vector<16x16xbf16>, vector<16x16xbf16>, vector<16x16xf32> -> vector<16x16xf32>
    %cst_173 = arith.constant dense<0.000000e+00> : vector<16x9xf32>
    %560 = tpu.matmul %556, %465, %cst_173 {dimension_numbers = #tpu.dot_dimension_numbers<[1], [1], [0], [0], [0, 0, 1, 0], [], []>} : vector<16x16xbf16>, vector<9x16xbf16>, vector<16x9xf32> -> vector<16x9xf32>
    %561 = vector.extract_strided_slice %560 {offsets = [0, 0], sizes = [16, 1], strides = [1, 1]} : vector<16x9xf32> to vector<16x1xf32>
    %562 = vector.broadcast %561 : vector<16x1xf32> to vector<16x16xf32>
    %563 = arith.mulf %116, %562 : vector<16x16xf32>
    %564 = arith.addf %559, %563 : vector<16x16xf32>
    %565 = vector.extract_strided_slice %560 {offsets = [0, 1], sizes = [16, 1], strides = [1, 1]} : vector<16x9xf32> to vector<16x1xf32>
    %566 = vector.broadcast %565 : vector<16x1xf32> to vector<16x16xf32>
    %567 = arith.mulf %120, %566 : vector<16x16xf32>
    %568 = arith.addf %564, %567 : vector<16x16xf32>
    %569 = vector.extract_strided_slice %560 {offsets = [0, 2], sizes = [16, 1], strides = [1, 1]} : vector<16x9xf32> to vector<16x1xf32>
    %570 = vector.broadcast %569 : vector<16x1xf32> to vector<16x16xf32>
    %571 = arith.mulf %124, %570 : vector<16x16xf32>
    %572 = arith.addf %568, %571 : vector<16x16xf32>
    %573 = vector.extract_strided_slice %560 {offsets = [0, 3], sizes = [16, 1], strides = [1, 1]} : vector<16x9xf32> to vector<16x1xf32>
    %574 = vector.broadcast %573 : vector<16x1xf32> to vector<16x16xf32>
    %575 = arith.mulf %128, %574 : vector<16x16xf32>
    %576 = arith.addf %572, %575 : vector<16x16xf32>
    %577 = vector.extract_strided_slice %560 {offsets = [0, 4], sizes = [16, 1], strides = [1, 1]} : vector<16x9xf32> to vector<16x1xf32>
    %578 = vector.broadcast %577 : vector<16x1xf32> to vector<16x16xf32>
    %579 = arith.mulf %132, %578 : vector<16x16xf32>
    %580 = arith.addf %576, %579 : vector<16x16xf32>
    %581 = vector.extract_strided_slice %560 {offsets = [0, 5], sizes = [16, 1], strides = [1, 1]} : vector<16x9xf32> to vector<16x1xf32>
    %582 = vector.broadcast %581 : vector<16x1xf32> to vector<16x16xf32>
    %583 = arith.mulf %136, %582 : vector<16x16xf32>
    %584 = arith.addf %580, %583 : vector<16x16xf32>
    %585 = vector.extract_strided_slice %560 {offsets = [0, 6], sizes = [16, 1], strides = [1, 1]} : vector<16x9xf32> to vector<16x1xf32>
    %586 = vector.broadcast %585 : vector<16x1xf32> to vector<16x16xf32>
    %587 = arith.mulf %140, %586 : vector<16x16xf32>
    %588 = arith.addf %584, %587 : vector<16x16xf32>
    %589 = vector.extract_strided_slice %560 {offsets = [0, 7], sizes = [16, 1], strides = [1, 1]} : vector<16x9xf32> to vector<16x1xf32>
    %590 = vector.broadcast %589 : vector<16x1xf32> to vector<16x16xf32>
    %591 = arith.mulf %144, %590 : vector<16x16xf32>
    %592 = arith.addf %588, %591 : vector<16x16xf32>
    %593 = vector.extract_strided_slice %560 {offsets = [0, 8], sizes = [16, 1], strides = [1, 1]} : vector<16x9xf32> to vector<16x1xf32>
    %594 = vector.broadcast %593 : vector<16x1xf32> to vector<16x16xf32>
    %595 = arith.mulf %148, %594 : vector<16x16xf32>
    %596 = arith.addf %592, %595 : vector<16x16xf32>
    %cst_174 = arith.constant 0.000000e+00 : f32
    %597 = vector.broadcast %cst_174 : f32 to vector<16x16xf32>
    %598 = arith.cmpf ogt, %109, %597 : vector<16x16xf32>
    %cst_175 = arith.constant -1.000000e+04 : f32
    %599 = vector.broadcast %cst_175 : f32 to vector<16x16xf32>
    %600 = arith.select %598, %596, %599 : vector<16x16xi1>, vector<16x16xf32>
    %cst_176 = arith.constant dense<0xFF800000> : vector<16xf32>
    %601 = vector.multi_reduction <maximumf>, %600, %cst_176 [1] : vector<16x16xf32> to vector<16xf32>
    %602 = vector.shape_cast %601 : vector<16xf32> to vector<16x1xf32>
    %603 = vector.broadcast %602 : vector<16x1xf32> to vector<16x16xf32>
    %604 = arith.subf %600, %603 : vector<16x16xf32>
    %605 = math.exp %604 : vector<16x16xf32>
    %cst_177 = arith.constant dense<0.000000e+00> : vector<16xf32>
    %606 = vector.multi_reduction <add>, %605, %cst_177 [1] : vector<16x16xf32> to vector<16xf32>
    %607 = vector.shape_cast %606 : vector<16xf32> to vector<16x1xf32>
    %608 = tpu.reciprocal %607 {approx = true} : vector<16x1xf32> -> vector<16x1xf32>
    %609 = vector.broadcast %608 : vector<16x1xf32> to vector<16x16xf32>
    %610 = arith.mulf %605, %609 : vector<16x16xf32>
    %611 = arith.truncf %610 : vector<16x16xf32> to vector<16x16xbf16>
    %cst_178 = arith.constant dense<0.000000e+00> : vector<16x16xf32>
    %612 = tpu.matmul %611, %558, %cst_178 {dimension_numbers = #tpu.dot_dimension_numbers<[1], [0], [0], [1], [0, 0, 1, 1], [], []>} : vector<16x16xbf16>, vector<16x16xbf16>, vector<16x16xf32> -> vector<16x16xf32>
    %613 = arith.mulf %610, %116 : vector<16x16xf32>
    %cst_179 = arith.constant dense<0.000000e+00> : vector<16xf32>
    %614 = vector.multi_reduction <add>, %613, %cst_179 [1] : vector<16x16xf32> to vector<16xf32>
    %615 = vector.shape_cast %614 : vector<16xf32> to vector<16x1xf32>
    %616 = arith.mulf %610, %120 : vector<16x16xf32>
    %cst_180 = arith.constant dense<0.000000e+00> : vector<16xf32>
    %617 = vector.multi_reduction <add>, %616, %cst_180 [1] : vector<16x16xf32> to vector<16xf32>
    %618 = vector.shape_cast %617 : vector<16xf32> to vector<16x1xf32>
    %619 = arith.mulf %610, %124 : vector<16x16xf32>
    %cst_181 = arith.constant dense<0.000000e+00> : vector<16xf32>
    %620 = vector.multi_reduction <add>, %619, %cst_181 [1] : vector<16x16xf32> to vector<16xf32>
    %621 = vector.shape_cast %620 : vector<16xf32> to vector<16x1xf32>
    %622 = arith.mulf %610, %128 : vector<16x16xf32>
    %cst_182 = arith.constant dense<0.000000e+00> : vector<16xf32>
    %623 = vector.multi_reduction <add>, %622, %cst_182 [1] : vector<16x16xf32> to vector<16xf32>
    %624 = vector.shape_cast %623 : vector<16xf32> to vector<16x1xf32>
    %625 = arith.mulf %610, %132 : vector<16x16xf32>
    %cst_183 = arith.constant dense<0.000000e+00> : vector<16xf32>
    %626 = vector.multi_reduction <add>, %625, %cst_183 [1] : vector<16x16xf32> to vector<16xf32>
    %627 = vector.shape_cast %626 : vector<16xf32> to vector<16x1xf32>
    %628 = arith.mulf %610, %136 : vector<16x16xf32>
    %cst_184 = arith.constant dense<0.000000e+00> : vector<16xf32>
    %629 = vector.multi_reduction <add>, %628, %cst_184 [1] : vector<16x16xf32> to vector<16xf32>
    %630 = vector.shape_cast %629 : vector<16xf32> to vector<16x1xf32>
    %631 = arith.mulf %610, %140 : vector<16x16xf32>
    %cst_185 = arith.constant dense<0.000000e+00> : vector<16xf32>
    %632 = vector.multi_reduction <add>, %631, %cst_185 [1] : vector<16x16xf32> to vector<16xf32>
    %633 = vector.shape_cast %632 : vector<16xf32> to vector<16x1xf32>
    %634 = arith.mulf %610, %144 : vector<16x16xf32>
    %cst_186 = arith.constant dense<0.000000e+00> : vector<16xf32>
    %635 = vector.multi_reduction <add>, %634, %cst_186 [1] : vector<16x16xf32> to vector<16xf32>
    %636 = vector.shape_cast %635 : vector<16xf32> to vector<16x1xf32>
    %637 = arith.mulf %610, %148 : vector<16x16xf32>
    %cst_187 = arith.constant dense<0.000000e+00> : vector<16xf32>
    %638 = vector.multi_reduction <add>, %637, %cst_187 [1] : vector<16x16xf32> to vector<16xf32>
    %639 = vector.shape_cast %638 : vector<16xf32> to vector<16x1xf32>
    %640 = tpu.concatenate %615, %618, %621, %624, %627, %630, %633, %636, %639 in 1 : vector<16x1xf32>, vector<16x1xf32>, vector<16x1xf32>, vector<16x1xf32>, vector<16x1xf32>, vector<16x1xf32>, vector<16x1xf32>, vector<16x1xf32>, vector<16x1xf32> -> vector<16x9xf32>
    %641 = arith.truncf %640 : vector<16x9xf32> to vector<16x9xbf16>
    %cst_188 = arith.constant dense<0.000000e+00> : vector<16x16xf32>
    %642 = tpu.matmul %641, %467, %cst_188 {dimension_numbers = #tpu.dot_dimension_numbers<[1], [0], [0], [1], [0, 0, 1, 1], [], []>} : vector<16x9xbf16>, vector<9x16xbf16>, vector<16x16xf32> -> vector<16x16xf32>
    %643 = arith.addf %612, %642 : vector<16x16xf32>
    %644 = tpu.concatenate %555, %643 in 1 : vector<16x16xf32>, vector<16x16xf32> -> vector<16x32xf32>
    %645 = arith.truncf %644 : vector<16x32xf32> to vector<16x32xbf16>
    %c1_189 = arith.constant 1 : index
    %c0_190 = arith.constant 0 : index
    %c0_191 = arith.constant 0 : index
    %646 = vector.load %arg18[%c1_189, %c0_190, %c0_191] : memref<2x32x32xbf16, #tpu.memory_space<vmem>>, vector<1x32x32xbf16>
    %647 = vector.shape_cast %646 : vector<1x32x32xbf16> to vector<32x32xbf16>
    %cst_192 = arith.constant dense<0.000000e+00> : vector<16x32xf32>
    %648 = tpu.matmul %645, %647, %cst_192 {dimension_numbers = #tpu.dot_dimension_numbers<[1], [0], [0], [1], [0, 0, 1, 1], [], []>} : vector<16x32xbf16>, vector<32x32xbf16>, vector<16x32xf32> -> vector<16x32xf32>
    %c1_193 = arith.constant 1 : index
    %c0_194 = arith.constant 0 : index
    %c0_195 = arith.constant 0 : index
    %649 = vector.load %arg19[%c1_193, %c0_194, %c0_195] : memref<2x1x32xf32, #tpu.memory_space<vmem>>, vector<1x1x32xf32>
    %650 = vector.shape_cast %649 : vector<1x1x32xf32> to vector<1x32xf32>
    %651 = vector.broadcast %650 : vector<1x32xf32> to vector<16x32xf32>
    %652 = arith.addf %648, %651 : vector<16x32xf32>
    %653 = arith.addf %447, %652 : vector<16x32xf32>
    %c1_196 = arith.constant 1 : index
    %c0_197 = arith.constant 0 : index
    %c0_198 = arith.constant 0 : index
    %654 = vector.load %arg22[%c1_196, %c0_197, %c0_198] : memref<2x1x32xf32, #tpu.memory_space<vmem>>, vector<1x1x32xf32>
    %655 = vector.shape_cast %654 : vector<1x1x32xf32> to vector<1x32xf32>
    %c1_199 = arith.constant 1 : index
    %c0_200 = arith.constant 0 : index
    %c0_201 = arith.constant 0 : index
    %656 = vector.load %arg23[%c1_199, %c0_200, %c0_201] : memref<2x1x32xf32, #tpu.memory_space<vmem>>, vector<1x1x32xf32>
    %657 = vector.shape_cast %656 : vector<1x1x32xf32> to vector<1x32xf32>
    %cst_202 = arith.constant dense<0.000000e+00> : vector<16xf32>
    %658 = vector.multi_reduction <add>, %653, %cst_202 [1] : vector<16x32xf32> to vector<16xf32>
    %659 = vector.shape_cast %658 : vector<16xf32> to vector<16x1xf32>
    %cst_203 = arith.constant 3.200000e+01 : f32
    %660 = vector.broadcast %cst_203 : f32 to vector<16x1xf32>
    %661 = arith.divf %659, %660 : vector<16x1xf32>
    %662 = vector.broadcast %661 : vector<16x1xf32> to vector<16x32xf32>
    %663 = arith.subf %653, %662 : vector<16x32xf32>
    %664 = arith.mulf %663, %663 : vector<16x32xf32>
    %cst_204 = arith.constant dense<0.000000e+00> : vector<16xf32>
    %665 = vector.multi_reduction <add>, %664, %cst_204 [1] : vector<16x32xf32> to vector<16xf32>
    %666 = vector.shape_cast %665 : vector<16xf32> to vector<16x1xf32>
    %cst_205 = arith.constant 3.200000e+01 : f32
    %667 = vector.broadcast %cst_205 : f32 to vector<16x1xf32>
    %668 = arith.divf %666, %667 : vector<16x1xf32>
    %669 = vector.broadcast %661 : vector<16x1xf32> to vector<16x32xf32>
    %670 = arith.subf %653, %669 : vector<16x32xf32>
    %cst_206 = arith.constant 9.99999974E-5 : f32
    %671 = vector.broadcast %cst_206 : f32 to vector<16x1xf32>
    %672 = arith.addf %668, %671 : vector<16x1xf32>
    %673 = math.rsqrt %672 : vector<16x1xf32>
    %674 = vector.broadcast %673 : vector<16x1xf32> to vector<16x32xf32>
    %675 = arith.mulf %670, %674 : vector<16x32xf32>
    %676 = vector.broadcast %655 : vector<1x32xf32> to vector<16x32xf32>
    %677 = arith.mulf %675, %676 : vector<16x32xf32>
    %678 = vector.broadcast %657 : vector<1x32xf32> to vector<16x32xf32>
    %679 = arith.addf %677, %678 : vector<16x32xf32>
    %680 = vector.broadcast %1 : vector<16x1xf32> to vector<16x32xf32>
    %681 = arith.mulf %679, %680 : vector<16x32xf32>
    %c1_207 = arith.constant 1 : index
    %c0_208 = arith.constant 0 : index
    %c0_209 = arith.constant 0 : index
    %682 = vector.load %arg24[%c1_207, %c0_208, %c0_209] : memref<2x96x64xbf16, #tpu.memory_space<vmem>>, vector<1x96x64xbf16>
    %683 = vector.shape_cast %682 : vector<1x96x64xbf16> to vector<96x64xbf16>
    %c1_210 = arith.constant 1 : index
    %c0_211 = arith.constant 0 : index
    %c0_212 = arith.constant 0 : index
    %684 = vector.load %arg25[%c1_210, %c0_211, %c0_212] : memref<2x1x64xf32, #tpu.memory_space<vmem>>, vector<1x1x64xf32>
    %685 = vector.shape_cast %684 : vector<1x1x64xf32> to vector<1x64xf32>
    %cst_213 = arith.constant 0.000000e+00 : f32
    %686 = vector.broadcast %cst_213 : f32 to vector<8x32xf32>
    %687 = tpu.concatenate %686, %681, %686 in 0 : vector<8x32xf32>, vector<16x32xf32>, vector<8x32xf32> -> vector<32x32xf32>
    %688 = vector.extract_strided_slice %687 {offsets = [7, 0], sizes = [16, 32], strides = [1, 1]} : vector<32x32xf32> to vector<16x32xf32>
    %689 = vector.extract_strided_slice %687 {offsets = [8, 0], sizes = [16, 32], strides = [1, 1]} : vector<32x32xf32> to vector<16x32xf32>
    %690 = vector.extract_strided_slice %687 {offsets = [9, 0], sizes = [16, 32], strides = [1, 1]} : vector<32x32xf32> to vector<16x32xf32>
    %691 = tpu.concatenate %688, %689, %690 in 1 : vector<16x32xf32>, vector<16x32xf32>, vector<16x32xf32> -> vector<16x96xf32>
    %692 = arith.truncf %691 : vector<16x96xf32> to vector<16x96xbf16>
    %cst_214 = arith.constant dense<0.000000e+00> : vector<16x64xf32>
    %693 = tpu.matmul %692, %683, %cst_214 {dimension_numbers = #tpu.dot_dimension_numbers<[1], [0], [0], [1], [0, 0, 1, 1], [], []>} : vector<16x96xbf16>, vector<96x64xbf16>, vector<16x64xf32> -> vector<16x64xf32>
    %694 = vector.broadcast %685 : vector<1x64xf32> to vector<16x64xf32>
    %695 = arith.addf %693, %694 : vector<16x64xf32>
    %cst_215 = arith.constant 0.000000e+00 : f32
    %696 = vector.broadcast %cst_215 : f32 to vector<16x64xf32>
    %697 = arith.maximumf %695, %696 : vector<16x64xf32>
    %698 = vector.broadcast %1 : vector<16x1xf32> to vector<16x64xf32>
    %699 = arith.mulf %697, %698 : vector<16x64xf32>
    %c1_216 = arith.constant 1 : index
    %c0_217 = arith.constant 0 : index
    %c0_218 = arith.constant 0 : index
    %700 = vector.load %arg26[%c1_216, %c0_217, %c0_218] : memref<2x192x32xbf16, #tpu.memory_space<vmem>>, vector<1x192x32xbf16>
    %701 = vector.shape_cast %700 : vector<1x192x32xbf16> to vector<192x32xbf16>
    %c1_219 = arith.constant 1 : index
    %c0_220 = arith.constant 0 : index
    %c0_221 = arith.constant 0 : index
    %702 = vector.load %arg27[%c1_219, %c0_220, %c0_221] : memref<2x1x32xf32, #tpu.memory_space<vmem>>, vector<1x1x32xf32>
    %703 = vector.shape_cast %702 : vector<1x1x32xf32> to vector<1x32xf32>
    %cst_222 = arith.constant 0.000000e+00 : f32
    %704 = vector.broadcast %cst_222 : f32 to vector<8x64xf32>
    %705 = tpu.concatenate %704, %699, %704 in 0 : vector<8x64xf32>, vector<16x64xf32>, vector<8x64xf32> -> vector<32x64xf32>
    %706 = vector.extract_strided_slice %705 {offsets = [7, 0], sizes = [16, 64], strides = [1, 1]} : vector<32x64xf32> to vector<16x64xf32>
    %707 = vector.extract_strided_slice %705 {offsets = [8, 0], sizes = [16, 64], strides = [1, 1]} : vector<32x64xf32> to vector<16x64xf32>
    %708 = vector.extract_strided_slice %705 {offsets = [9, 0], sizes = [16, 64], strides = [1, 1]} : vector<32x64xf32> to vector<16x64xf32>
    %709 = tpu.concatenate %706, %707, %708 in 1 : vector<16x64xf32>, vector<16x64xf32>, vector<16x64xf32> -> vector<16x192xf32>
    %710 = arith.truncf %709 : vector<16x192xf32> to vector<16x192xbf16>
    %cst_223 = arith.constant dense<0.000000e+00> : vector<16x32xf32>
    %711 = tpu.matmul %710, %701, %cst_223 {dimension_numbers = #tpu.dot_dimension_numbers<[1], [0], [0], [1], [0, 0, 1, 1], [], []>} : vector<16x192xbf16>, vector<192x32xbf16>, vector<16x32xf32> -> vector<16x32xf32>
    %712 = vector.broadcast %703 : vector<1x32xf32> to vector<16x32xf32>
    %713 = arith.addf %711, %712 : vector<16x32xf32>
    %714 = vector.broadcast %1 : vector<16x1xf32> to vector<16x32xf32>
    %715 = arith.mulf %713, %714 : vector<16x32xf32>
    %716 = arith.addf %679, %715 : vector<16x32xf32>
    %c1_224 = arith.constant 1 : index
    %c0_225 = arith.constant 0 : index
    %c0_226 = arith.constant 0 : index
    %717 = vector.load %arg28[%c1_224, %c0_225, %c0_226] : memref<2x1x32xf32, #tpu.memory_space<vmem>>, vector<1x1x32xf32>
    %718 = vector.shape_cast %717 : vector<1x1x32xf32> to vector<1x32xf32>
    %c1_227 = arith.constant 1 : index
    %c0_228 = arith.constant 0 : index
    %c0_229 = arith.constant 0 : index
    %719 = vector.load %arg29[%c1_227, %c0_228, %c0_229] : memref<2x1x32xf32, #tpu.memory_space<vmem>>, vector<1x1x32xf32>
    %720 = vector.shape_cast %719 : vector<1x1x32xf32> to vector<1x32xf32>
    %cst_230 = arith.constant dense<0.000000e+00> : vector<16xf32>
    %721 = vector.multi_reduction <add>, %716, %cst_230 [1] : vector<16x32xf32> to vector<16xf32>
    %722 = vector.shape_cast %721 : vector<16xf32> to vector<16x1xf32>
    %cst_231 = arith.constant 3.200000e+01 : f32
    %723 = vector.broadcast %cst_231 : f32 to vector<16x1xf32>
    %724 = arith.divf %722, %723 : vector<16x1xf32>
    %725 = vector.broadcast %724 : vector<16x1xf32> to vector<16x32xf32>
    %726 = arith.subf %716, %725 : vector<16x32xf32>
    %727 = arith.mulf %726, %726 : vector<16x32xf32>
    %cst_232 = arith.constant dense<0.000000e+00> : vector<16xf32>
    %728 = vector.multi_reduction <add>, %727, %cst_232 [1] : vector<16x32xf32> to vector<16xf32>
    %729 = vector.shape_cast %728 : vector<16xf32> to vector<16x1xf32>
    %cst_233 = arith.constant 3.200000e+01 : f32
    %730 = vector.broadcast %cst_233 : f32 to vector<16x1xf32>
    %731 = arith.divf %729, %730 : vector<16x1xf32>
    %732 = vector.broadcast %724 : vector<16x1xf32> to vector<16x32xf32>
    %733 = arith.subf %716, %732 : vector<16x32xf32>
    %cst_234 = arith.constant 9.99999974E-5 : f32
    %734 = vector.broadcast %cst_234 : f32 to vector<16x1xf32>
    %735 = arith.addf %731, %734 : vector<16x1xf32>
    %736 = math.rsqrt %735 : vector<16x1xf32>
    %737 = vector.broadcast %736 : vector<16x1xf32> to vector<16x32xf32>
    %738 = arith.mulf %733, %737 : vector<16x32xf32>
    %739 = vector.broadcast %718 : vector<1x32xf32> to vector<16x32xf32>
    %740 = arith.mulf %738, %739 : vector<16x32xf32>
    %741 = vector.broadcast %720 : vector<1x32xf32> to vector<16x32xf32>
    %742 = arith.addf %740, %741 : vector<16x32xf32>
    %743 = vector.broadcast %1 : vector<16x1xf32> to vector<16x32xf32>
    %744 = arith.mulf %742, %743 : vector<16x32xf32>
    %c0_235 = arith.constant 0 : index
    %c0_236 = arith.constant 0 : index
    %c0_237 = arith.constant 0 : index
    %745 = vector.load %arg30[%c0_235, %c0_236, %c0_237] : memref<1x16x32xf32, #tpu.memory_space<vmem>>, vector<1x16x32xf32>
    %746 = vector.shape_cast %745 : vector<1x16x32xf32> to vector<16x32xf32>
    %747 = vector.shape_cast %744 : vector<16x32xf32> to vector<1x16x32xf32>
    tpu.vector_store %arg30[%c0_235, %c0_236, %c0_237], %747 {strides = array<i32>} : memref<1x16x32xf32, #tpu.memory_space<vmem>>, vector<1x16x32xf32>,
    return
  }
  func.func @transform_0(%arg0: i32) -> (i32, i32, i32) {
    %c0_i32 = arith.constant 0 : i32
    %c0_i32_0 = arith.constant 0 : i32
    %c0_i32_1 = arith.constant 0 : i32
    return %arg0, %c0_i32, %c0_i32_0 : i32, i32, i32
  }
  func.func @transform_1(%arg0: i32) -> (i32, i32, i32) {
    %c0_i32 = arith.constant 0 : i32
    %c0_i32_0 = arith.constant 0 : i32
    %c0_i32_1 = arith.constant 0 : i32
    return %arg0, %c0_i32, %c0_i32_0 : i32, i32, i32
  }
  func.func @transform_2(%arg0: i32) -> (i32, i32, i32) {
    %c0_i32 = arith.constant 0 : i32
    %c0_i32_0 = arith.constant 0 : i32
    %c0_i32_1 = arith.constant 0 : i32
    return %arg0, %c0_i32, %c0_i32_0 : i32, i32, i32
  }
  func.func @transform_3(%arg0: i32) -> (i32, i32) {
    %c0_i32 = arith.constant 0 : i32
    %c0_i32_0 = arith.constant 0 : i32
    %c0_i32_1 = arith.constant 0 : i32
    return %c0_i32, %c0_i32_0 : i32, i32
  }
  func.func @transform_4(%arg0: i32) -> (i32, i32) {
    %c0_i32 = arith.constant 0 : i32
    %c0_i32_0 = arith.constant 0 : i32
    %c0_i32_1 = arith.constant 0 : i32
    return %c0_i32, %c0_i32_0 : i32, i32
  }
  func.func @transform_5(%arg0: i32) -> (i32, i32) {
    %c0_i32 = arith.constant 0 : i32
    %c0_i32_0 = arith.constant 0 : i32
    %c0_i32_1 = arith.constant 0 : i32
    return %c0_i32, %c0_i32_0 : i32, i32
  }
  func.func @transform_6(%arg0: i32) -> (i32, i32) {
    %c0_i32 = arith.constant 0 : i32
    %c0_i32_0 = arith.constant 0 : i32
    %c0_i32_1 = arith.constant 0 : i32
    return %c0_i32, %c0_i32_0 : i32, i32
  }
  func.func @transform_7(%arg0: i32) -> (i32, i32) {
    %c0_i32 = arith.constant 0 : i32
    %c0_i32_0 = arith.constant 0 : i32
    %c0_i32_1 = arith.constant 0 : i32
    return %c0_i32, %c0_i32_0 : i32, i32
  }
  func.func @transform_8(%arg0: i32) -> (i32, i32) {
    %c0_i32 = arith.constant 0 : i32
    %c0_i32_0 = arith.constant 0 : i32
    %c0_i32_1 = arith.constant 0 : i32
    return %c0_i32, %c0_i32_0 : i32, i32
  }
  func.func @transform_9(%arg0: i32) -> (i32, i32) {
    %c0_i32 = arith.constant 0 : i32
    %c0_i32_0 = arith.constant 0 : i32
    %c0_i32_1 = arith.constant 0 : i32
    return %c0_i32, %c0_i32_0 : i32, i32
  }
  func.func @transform_10(%arg0: i32) -> (i32, i32) {
    %c0_i32 = arith.constant 0 : i32
    %c0_i32_0 = arith.constant 0 : i32
    %c0_i32_1 = arith.constant 0 : i32
    return %c0_i32, %c0_i32_0 : i32, i32
  }
  func.func @transform_11(%arg0: i32) -> (i32, i32) {
    %c0_i32 = arith.constant 0 : i32
    %c0_i32_0 = arith.constant 0 : i32
    %c0_i32_1 = arith.constant 0 : i32
    return %c0_i32, %c0_i32_0 : i32, i32
  }
  func.func @transform_12(%arg0: i32) -> (i32, i32) {
    %c0_i32 = arith.constant 0 : i32
    %c0_i32_0 = arith.constant 0 : i32
    %c0_i32_1 = arith.constant 0 : i32
    return %c0_i32, %c0_i32_0 : i32, i32
  }
  func.func @transform_13(%arg0: i32) -> (i32, i32) {
    %c0_i32 = arith.constant 0 : i32
    %c0_i32_0 = arith.constant 0 : i32
    %c0_i32_1 = arith.constant 0 : i32
    return %c0_i32, %c0_i32_0 : i32, i32
  }
  func.func @transform_14(%arg0: i32) -> (i32, i32) {
    %c0_i32 = arith.constant 0 : i32
    %c0_i32_0 = arith.constant 0 : i32
    %c0_i32_1 = arith.constant 0 : i32
    return %c0_i32, %c0_i32_0 : i32, i32
  }
  func.func @transform_15(%arg0: i32) -> (i32, i32, i32) {
    %c0_i32 = arith.constant 0 : i32
    %c0_i32_0 = arith.constant 0 : i32
    %c0_i32_1 = arith.constant 0 : i32
    %c0_i32_2 = arith.constant 0 : i32
    return %c0_i32, %c0_i32_0, %c0_i32_1 : i32, i32, i32
  }
  func.func @transform_16(%arg0: i32) -> (i32, i32, i32) {
    %c0_i32 = arith.constant 0 : i32
    %c0_i32_0 = arith.constant 0 : i32
    %c0_i32_1 = arith.constant 0 : i32
    %c0_i32_2 = arith.constant 0 : i32
    return %c0_i32, %c0_i32_0, %c0_i32_1 : i32, i32, i32
  }
  func.func @transform_17(%arg0: i32) -> (i32, i32, i32) {
    %c0_i32 = arith.constant 0 : i32
    %c0_i32_0 = arith.constant 0 : i32
    %c0_i32_1 = arith.constant 0 : i32
    %c0_i32_2 = arith.constant 0 : i32
    return %c0_i32, %c0_i32_0, %c0_i32_1 : i32, i32, i32
  }
  func.func @transform_18(%arg0: i32) -> (i32, i32, i32) {
    %c0_i32 = arith.constant 0 : i32
    %c0_i32_0 = arith.constant 0 : i32
    %c0_i32_1 = arith.constant 0 : i32
    %c0_i32_2 = arith.constant 0 : i32
    return %c0_i32, %c0_i32_0, %c0_i32_1 : i32, i32, i32
  }
  func.func @transform_19(%arg0: i32) -> (i32, i32, i32) {
    %c0_i32 = arith.constant 0 : i32
    %c0_i32_0 = arith.constant 0 : i32
    %c0_i32_1 = arith.constant 0 : i32
    %c0_i32_2 = arith.constant 0 : i32
    return %c0_i32, %c0_i32_0, %c0_i32_1 : i32, i32, i32
  }
  func.func @transform_20(%arg0: i32) -> (i32, i32, i32) {
    %c0_i32 = arith.constant 0 : i32
    %c0_i32_0 = arith.constant 0 : i32
    %c0_i32_1 = arith.constant 0 : i32
    %c0_i32_2 = arith.constant 0 : i32
    return %c0_i32, %c0_i32_0, %c0_i32_1 : i32, i32, i32
  }
  func.func @transform_21(%arg0: i32) -> (i32, i32, i32) {
    %c0_i32 = arith.constant 0 : i32
    %c0_i32_0 = arith.constant 0 : i32
    %c0_i32_1 = arith.constant 0 : i32
    %c0_i32_2 = arith.constant 0 : i32
    return %c0_i32, %c0_i32_0, %c0_i32_1 : i32, i32, i32
  }
  func.func @transform_22(%arg0: i32) -> (i32, i32, i32) {
    %c0_i32 = arith.constant 0 : i32
    %c0_i32_0 = arith.constant 0 : i32
    %c0_i32_1 = arith.constant 0 : i32
    %c0_i32_2 = arith.constant 0 : i32
    return %c0_i32, %c0_i32_0, %c0_i32_1 : i32, i32, i32
  }
  func.func @transform_23(%arg0: i32) -> (i32, i32, i32) {
    %c0_i32 = arith.constant 0 : i32
    %c0_i32_0 = arith.constant 0 : i32
    %c0_i32_1 = arith.constant 0 : i32
    %c0_i32_2 = arith.constant 0 : i32
    return %c0_i32, %c0_i32_0, %c0_i32_1 : i32, i32, i32
  }
  func.func @transform_24(%arg0: i32) -> (i32, i32, i32) {
    %c0_i32 = arith.constant 0 : i32
    %c0_i32_0 = arith.constant 0 : i32
    %c0_i32_1 = arith.constant 0 : i32
    %c0_i32_2 = arith.constant 0 : i32
    return %c0_i32, %c0_i32_0, %c0_i32_1 : i32, i32, i32
  }
  func.func @transform_25(%arg0: i32) -> (i32, i32, i32) {
    %c0_i32 = arith.constant 0 : i32
    %c0_i32_0 = arith.constant 0 : i32
    %c0_i32_1 = arith.constant 0 : i32
    %c0_i32_2 = arith.constant 0 : i32
    return %c0_i32, %c0_i32_0, %c0_i32_1 : i32, i32, i32
  }
  func.func @transform_26(%arg0: i32) -> (i32, i32, i32) {
    %c0_i32 = arith.constant 0 : i32
    %c0_i32_0 = arith.constant 0 : i32
    %c0_i32_1 = arith.constant 0 : i32
    %c0_i32_2 = arith.constant 0 : i32
    return %c0_i32, %c0_i32_0, %c0_i32_1 : i32, i32, i32
  }
  func.func @transform_27(%arg0: i32) -> (i32, i32, i32) {
    %c0_i32 = arith.constant 0 : i32
    %c0_i32_0 = arith.constant 0 : i32
    %c0_i32_1 = arith.constant 0 : i32
    %c0_i32_2 = arith.constant 0 : i32
    return %c0_i32, %c0_i32_0, %c0_i32_1 : i32, i32, i32
  }
  func.func @transform_28(%arg0: i32) -> (i32, i32, i32) {
    %c0_i32 = arith.constant 0 : i32
    %c0_i32_0 = arith.constant 0 : i32
    %c0_i32_1 = arith.constant 0 : i32
    %c0_i32_2 = arith.constant 0 : i32
    return %c0_i32, %c0_i32_0, %c0_i32_1 : i32, i32, i32
  }
  func.func @transform_29(%arg0: i32) -> (i32, i32, i32) {
    %c0_i32 = arith.constant 0 : i32
    %c0_i32_0 = arith.constant 0 : i32
    %c0_i32_1 = arith.constant 0 : i32
    return %arg0, %c0_i32, %c0_i32_0 : i32, i32, i32
  }
}

</mosaic_0001>

<bundles_post_ra>
// kernel: encoder_forward.1
= control target key start
LH: loop header
LB: loop body
LE: loop exit
PB: predicated region body
PF: predicated region fallthrough
CT: control target
= control target key end

     0   :  { %s5640_s6 = smov 1   ;;  %s5641_s10 = smov 2   ;;  %s7161_s0 = inlined_call_operand.smem [shape: u32[30], index: -1, kind: input, shape index: {}] }
   0x1   :  { %s5699_s5 = sld [smem:[%s7161_s0]]   ;;  %s5642_s14 = smov 3  }
   0x2   :  { %s5704_s9 = sld [smem:[%s7161_s0 + %s5640_s6]]   ;;  %s5643_s18 = smov 4  }
   0x3   :  { %s5709_s13 = sld [smem:[%s7161_s0 + %s5641_s10]]   ;;  %s5644_s22 = smov 5  }
   0x4   :  { %s5714_s17 = sld [smem:[%s7161_s0 + %s5642_s14]]   ;;  %s5645_s26 = smov 6  }
   0x5   :  { %s5719_s21 = sld [smem:[%s7161_s0 + %s5643_s18]]   ;;  %s5646_s30 = smov 7  }
   0x6   :  { %s5724_s25 = sld [smem:[%s7161_s0 + %s5644_s22]]   ;;  %s5647_s4 = smov 8  }
   0x7   :  { %7208 = sst [smem:[#allocation5_spill]] %s5699_s5  ;;  %s5648_s10 = smov 9  }
   0x8   :  { %7209 = sst [smem:[#allocation6_spill]] %s5704_s9  ;;  %s5649_s15 = smov 10  }
   0x9   :  { %7210 = sst [smem:[#allocation7_spill]] %s5709_s13  ;;  %s5650_s20 = smov 11  }
   0xa   :  { %7211 = sst [smem:[#allocation8_spill]] %s5714_s17  ;;  %s5652_s1 = smov 13  }
   0xb   :  { %7212 = sst [smem:[#allocation9_spill]] %s5719_s21  ;;  %s5653_s7 = smov 14  }
   0xc   :  { %s5729_s29 = sld [smem:[%s7161_s0 + %s5645_s26]]   ;;  %s5651_s26 = smov 12  }
   0xd   :  { %s5734_s3 = sld [smem:[%s7161_s0 + %s5646_s30]]   ;;  %s5655_s22 = smov 16  }
   0xe   :  { %s5739_s8 = sld [smem:[%s7161_s0 + %s5647_s4]]   ;;  %s5656_s28 = smov 17  }
   0xf   :  { %s5744_s14 = sld [smem:[%s7161_s0 + %s5648_s10]]  }
  0x10   :  { %s5749_s19 = sld [smem:[%s7161_s0 + %s5649_s15]]   ;;  %s5654_s15 = smov 15  }
  0x11   :  { %s5754_s24 = sld [smem:[%s7161_s0 + %s5650_s20]]  }
  0x12   :  { %s5759_s30 = sld [smem:[%s7161_s0 + %s5651_s26]]  }
  0x13   :  { %7213 = sst [smem:[#allocation10_spill]] %s5734_s3 }
  0x14   :  { %7214 = sst [smem:[#allocation11_spill]] %s5739_s8 }
  0x15   :  { %7215 = sst [smem:[#allocation12_spill]] %s5744_s14 }
  0x16   :  { %7216 = sst [smem:[#allocation13_spill]] %s5749_s19 }
  0x17   :  { %s5764_s6 = sld [smem:[%s7161_s0 + %s5652_s1]]  }
  0x18   :  { %s5769_s12 = sld [smem:[%s7161_s0 + %s5653_s7]]   ;;  %s5657_s7 = smov 18  }
  0x19   :  { %s5774_s20 = sld [smem:[%s7161_s0 + %s5654_s15]]   ;;  %s5658_s15 = smov 19  }
  0x1a   :  { %s5779_s27 = sld [smem:[%s7161_s0 + %s5655_s22]]   ;;  %s5659_s22 = smov 20  }
  0x1b   :  { %s5784_s4 = sld [smem:[%s7161_s0 + %s5656_s28]]   ;;  %s5660_s28 = smov 21  }
  0x1c   :  { %s5789_s13 = sld [smem:[%s7161_s0 + %s5657_s7]]   ;;  %s5661_s7 = smov 22  }
  0x1d   :  { %7217 = sst [smem:[#allocation14_spill]] %s5764_s6 }
  0x1e   :  { %7218 = sst [smem:[#allocation15_spill]] %s5769_s12 }
  0x1f   :  { %7219 = sst [smem:[#allocation16_spill]] %s5774_s20 }
  0x20   :  { %7220 = sst [smem:[#allocation17_spill]] %s5779_s27 }
  0x21   :  { %7221 = sst [smem:[#allocation18_spill]] %s5784_s4 }
  0x22   :  { %7222 = sst [smem:[#allocation19_spill]] %s5789_s13 }
  0x23   :  { %s5794_s12 = sld [smem:[%s7161_s0 + %s5658_s15]]   ;;  %s5662_s15 = smov 23  }
  0x24   :  { %s5799_s27 = sld [smem:[%s7161_s0 + %s5659_s22]]   ;;  %s5663_s22 = smov 24  }
  0x25   :  { %s5804_s4 = sld [smem:[%s7161_s0 + %s5660_s28]]   ;;  %s5664_s28 = smov 25  }
  0x26   :  { %s5809_s13 = sld [smem:[%s7161_s0 + %s5661_s7]]   ;;  %s5665_s7 = smov 26  }
  0x29   :  { %7223 = sst [smem:[#allocation20_spill]] %s5794_s12 }
  0x2a   :  { %7224 = sst [smem:[#allocation21_spill]] %s5799_s27 }
  0x2b   :  { %7225 = sst [smem:[#allocation22_spill]] %s5804_s4 }
  0x2c   :  { %7226 = sst [smem:[#allocation23_spill]] %s5809_s13 }
  0x2d   :  { %s5814_s12 = sld [smem:[%s7161_s0 + %s5662_s15]]   ;;  %s5666_s15 = smov 27  }
  0x2e   :  { %s5819_s27 = sld [smem:[%s7161_s0 + %s5663_s22]]   ;;  %s5667_s22 = smov 28  }
  0x2f   :  { %s5824_s4 = sld [smem:[%s7161_s0 + %s5664_s28]]   ;;  %s5668_s28 = smov 29  }
  0x30   :  { %s5829_s13 = sld [smem:[%s7161_s0 + %s5665_s7]]  }
  0x33   :  { %7227 = sst [smem:[#allocation24_spill]] %s5814_s12 }
  0x34   :  { %7228 = sst [smem:[#allocation25_spill]] %s5819_s27 }
  0x35   :  { %7229 = sst [smem:[#allocation26_spill]] %s5824_s4 }
  0x36   :  { %s5834_s12 = sld [smem:[%s7161_s0 + %s5666_s15]]  }
  0x37   :  { %s5839_s27 = sld [smem:[%s7161_s0 + %s5667_s22]]  }
  0x38   :  { %s5844_s4 = sld [smem:[%s7161_s0 + %s5668_s28]]  }
  0x39   :  { %64 = vsyncpa [#allocation3], 0 }
  0x3a   :  { %66 = vsyncpa [#allocation3 + $0x1], 0  ;;  %s5846_s7 = smov 0   ;;  %s5848_s10 = smov 0  }
  0x3b   :  { %s5850_s11 = smov 0   ;;  %s5852_s15 = smov 0  }
  0x3c LB: > { %s7230_s20 = sld [smem:[#allocation16_spill]]  ;;  %s5867_s0 = sadd.s32 4294967295, %s5638_s15   ;;  %s5634_s11 = sphi %s5850_s11, %s7304_s11   ;;  %s5630_s10 = sphi %s5848_s10, %s7303_s10   ;;  %s5626_s7 = sphi %s5846_s7, %s7302_s7   ;;  %s5638_s15 = sphi %s5852_s15, %s7305_s15  }
  0x3d   : > { %s7231_s17 = sld [smem:[#allocation8_spill]]  ;;  %s4769_s16 = sadd.s32 4294967294, %s5638_s15  }
  0x3e   : > { %s7232_s3 = sld [smem:[#allocation10_spill]]  ;;  %s5871_s18 = sadd.s32 1, %s5638_s15  }
  0x3f   : > { %s703_s22 = sadd.s32 1, %s5634_s11  ;;  %s700_s23 = ssub.s32 %s5638_s15, %s5871_s18 }
  0x40   : > { %p713_p0 = scmp.ne.s32.totalorder %s5634_s11, %s5630_s10  ;;  %p701_p1 = scmp.eq.s32.totalorder %s700_s23, 0 }
  0x41   : > { %p714_p2 = scmp.eq.s32.totalorder %s5867_s0, 1  ;;  %p719_p3 = scmp.ne.s32.totalorder %s5630_s10, %s5626_s7 }
  0x42   : > { %p720_p4 = scmp.eq.s32.totalorder %s4769_s16, 1  ;;  %p4772_p7 = scmp.ge.s32.totalorder %s5638_s15, 1 }
  0x43   : > { %s5882_s26 = scalar_select %p701_p1, %s5634_s11, %s703_s22  }
  0x44   : > { %p5884_p5 = por %p714_p2, %p713_p0  ;;  %p5888_p6 = por %p720_p4, %p719_p3 }
  0x45   : > { %p838_p8 = scmp.lt.s32.totalorder %s5638_s15, 3 }
  0x47   : > { %p839_p9 = pnand %p4772_p7, %p838_p8 }
  0x48   : > { %s7235_s5 = sld [smem:[#allocation5_spill]] (!%p839_p9)  ;;  %p922_p10 = scmp.lt.s32.totalorder (!%p839_p9), %s5867_s0, 1 }
  0x49   : > { %842 = sbr.rel (%p839_p9) target bundleno = 8528 (0x2150), region = 136  ;;  %s7176_s23 = smov (!%p839_p9), 64  }
  0x4a   : > { %s7236_s21 = sld [smem:[#allocation9_spill]] (!%p839_p9) }
  0x4b   : > { %s7237_s8 = sld [smem:[#allocation11_spill]] (!%p839_p9) }
  0x4c   : > { %s7238_s14 = sld [smem:[#allocation12_spill]] (!%p839_p9) }
  0x4d   : > { %s7239_s19 = sld [smem:[#allocation13_spill]] (!%p839_p9) }
  0x4e   : > { %v5452_v0 = vld [vmem:[%s7231_s17 + $0x38] sm:$0xff]   ;;  %s5897_s2 = scalar_select %p922_p10, %s5867_s0, 1  ;;  %v5669_v1 = vmov 0   ;;  %v5453_v2 = vld [vmem:[%s7231_s17 + $0x30] sm:$0xff]   ;;  %vm7195_vm0 = vcmask 1045504   ;;  %vm7196_vm1 = vcmask 1046528  }
  0x4f   : > { %1114 = vmatprep.subr.bf16.mxu0 %v5669_v1  ;;  %1353 = vmatprep.subr.bf16.mxu1 %v5669_v1  ;;  %v5670_v3 = vmov 0.0   ;;  %vm993_vm2 = vcmask 1044480   ;;  %v5454_v11 = vld [vmem:[%s7231_s17 + $0x28] sm:$0xff]   ;;  %v5455_v21 = vld [vmem:[%s7231_s17 + $0x20] sm:$0xff]   ;;  %vm1008_vm3 = vcmask 1043456   ;;  %v5456_v25 = vld [vmem:[%s7231_s17 + $0x18] sm:$0xff]  }
  0x50   : > { %1115 = vmatpush1.bf16.msra.mxu0 %v5452_v0  ;;  %5343 = vset.pattern.permute.xlu0 %v5669_v1  ;;  %s7172_s16 = sshll.u32 %s5897_s2, 4  ;;  %v5910_v4 = vrot.slane %v5670_v3, 1  ;;  %v5931_v19 = vrot.slane %v5670_v3, 3  ;;  %v5942_v26 = vrot.slane %v5670_v3, 4  ;;  %vm1017_vm4 = vcmask 261120   ;;  %v5457_v33 = vld [vmem:[%s7231_s17 + $0x10] sm:$0xff]  }
  0x51   : > { %1116 = vmatprep.subr.bf16.mxu0 %v5669_v1  ;;  %5344 = vset.pattern.permute.xlu1 %v5669_v1  ;;  %s926_s22 = scalar_lea.vmem %s7235_s5, %s7172_s16  ;;  %s7178_s16 = smov 96   ;;  %v5458_v36 = vld [vmem:[%s7231_s17 + $0x8] sm:$0xff]   ;;  %v5459_v37 = vld [vmem:[%s7231_s17] sm:$0xff]   ;;  %vm7181_vm5 = vcmask 523264   ;;  %vm7180_vm6 = vcmask 785408   ;;  %vm5674_vm9 = vmmov 0  }
  0x52   : > { %v5912_v5 = vld [vmem:[%s926_s22 + $0x8] sm:$0xff]  ;;  %v5914_v6 = vld [vmem:[%s926_s22] sm:$0xff]  ;;  %s7173_s22 = smov 32   ;;  %s7240_s9 = sld [smem:[#allocation6_spill]]  ;;  %vm1805_vm10 = vcmask 130048  }
  0x53   : > { %v982_v7 = vrot.slane %v5912_v5, 2  ;;  %v969_v8 = vrot.slane %v5912_v5, 1  ;;  %v981_v9 = vrot.slane %v5914_v6, 2  ;;  %v967_v10 = vrot.slane %v5914_v6, 1  ;;  %v5460_v38 = vld [vmem:[%s7231_s17 + $0x48] sm:$0xff]   ;;  %v5461_v39 = vld [vmem:[%s7231_s17 + $0x40] sm:$0xff]  }
  0x54   : > { %1117 = vmatpush1.bf16.msra.mxu0 %v5453_v2  ;;  %v995_v12 = vrot.slane %v5912_v5, 3  ;;  %v994_v13 = vrot.slane %v5914_v6, 3  ;;  %v1009_v22 = vrot.slane %v5914_v6, 4  ;;  %v1010_v23 = vrot.slane %v5912_v5, 4  ;;  %s7242_s6 = sld [smem:[#allocation14_spill]] }
  0x55   : > { %1118 = vmatprep.subr.bf16.mxu0 %v5669_v1  ;;  %988 = vrot.lane.b32.xlu1 %v982_v7, %s7176_s23  ;;  %v983_v14 = vsel %vm7195_vm0, %v981_v9, %v982_v7  ;;  %v968_v15 = vsel %vm7196_vm1, %v5910_v4, %v967_v10  ;;  %v970_v16 = vsel %vm7196_vm1, %v967_v10, %v969_v8  ;;  %v1155_v7 = vlaneseq  ;;  %s7250_s5 = sld [smem:[#allocation19_spill]] }
  0x56   : > { %975 = vrot.lane.b32.xlu0 %v969_v8, %s7173_s22  ;;  %v5303_v17 = vpack.i.bf16 %v983_v14, %v981_v9  ;;  %v5298_v18 = vpack.i.bf16 %v970_v16, %v968_v15  ;;  %v996_v20 = vsel %vm993_vm2, %v994_v13, %v995_v12  ;;  %v998_v27 = vsel %vm993_vm2, %v995_v12, %v5931_v19  ;;  %v5463_v14 = vld [vmem:[%s7232_s3 + $0x30] sm:$0xff]   ;;  %v5464_v15 = vld [vmem:[%s7232_s3 + $0x28] sm:$0xff]   ;;  %v5465_v16 = vld [vmem:[%s7232_s3 + $0x20] sm:$0xff]   ;;  %s7258_s17 = sld [smem:[#allocation26_spill]] }
  0x57   : > { %v5308_v24 = vpack.i.bf16 %v996_v20, %v994_v13  ;;  %v1011_v28 = vsel %vm1008_vm3, %v1009_v22, %v1010_v23  ;;  %v1013_v29 = vsel %vm1008_vm3, %v1010_v23, %v5942_v26  ;;  %v5977_v8 = vshrl.u32 %v1155_v7, 7  ;;  %v5462_v13 = vld [vmem:[%s7232_s3 + $0x38] sm:$0xff]  }
  0x58   : > { %1119 = vmatpush1.bf16.msra.mxu0 %v5454_v11  ;;  %v1030_v30 = vpack.c.bf16 %v1011_v28, %v1009_v22  ;;  %v1032_v31 = vpack.c.bf16 %v1013_v29, %v1013_v29  ;;  %v1665_v10 = vand.u32 127, %v1155_v7  ;;  %1354 = vmatpush1.bf16.msra.mxu1 %v5462_v13  ;;  %v4791_v28 = vld [vmem:[%s5729_s29] ss:$0 sm:$0xff] }
  0x59   : > { %1120 = vmatprep.subr.bf16.mxu0 %v5669_v1  ;;  %5304 = vrot.lane.b32.xlu1 %v5303_v17, %s7176_s23  ;;  %v5980_v9 = vadd.s32 8, %v5977_v8  ;;  %v5466_v17 = vld [vmem:[%s7232_s3 + $0x18] sm:$0xff]   ;;  %vm1158_vm7 = vcmp.ge.s32.totalorder %v5977_v8, 2 }
  0x5a   : > { %5299 = vrot.lane.b32.xlu0 %v5298_v18, %s7173_s22  ;;  %v1047_v32 = vrot.slane %v1030_v30, 3  ;;  %v1048_v34 = vrot.slane %v1032_v31, 3  ;;  %v5983_v11 = vsub.s32 %v1665_v10, %v5977_v8  ;;  %1355 = vmatprep.subr.bf16.mxu1 %v5669_v1  ;;  %v4778_v18 = vld [vmem:[%s7236_s21] ss:$0 sm:$0xff]  ;;  %v5467_v30 = vld [vmem:[%s7232_s3 + $0x10] sm:$0xff]   ;;  %s7269_s21 = smov 80  }
  0x5b   : > { %v5986_v12 = vsub.s32 %v1665_v10, %v5980_v9  ;;  %vm1161_vm8 = vcmp.lt.s32.totalorder %v5980_v9, 14 }
  0x5c   : > { %1121 = vmatpush1.bf16.msra.mxu0 %v5455_v21  ;;  %v1049_v35 = vsel %vm993_vm2, %v1047_v32, %v1048_v34  ;;  %1356 = vmatpush1.bf16.msra.mxu1 %v5463_v14  ;;  %vm1668_vm11 = vcmp.eq.s32.totalorder %v5983_v11, 4294967292  ;;  %vm1674_vm13 = vcmp.eq.s32.totalorder %v5983_v11, 4294967293  ;;  %vm1680_vm15 = vcmp.eq.s32.totalorder %v5983_v11, 4294967294 }
  0x5d   : > { %1122 = vmatprep.subr.bf16.mxu0 %v5669_v1  ;;  %1003 = vrot.lane.b32.xlu1 %v998_v27, %s7178_s16  ;;  %vm1669_vm12 = vcmp.eq.s32.totalorder %v5986_v12, 4294967292  ;;  %vm1675_vm14 = vcmp.eq.s32.totalorder %v5986_v12, 4294967293 }
  0x5e   : > { %5309 = vrot.lane.b32.xlu0 %v5308_v24, %s7178_s16  ;;  %4789 = vmatprep.mubr.msk.bf16.mxu0 %vm1017_vm4, %v1049_v35  ;;  %v4790_v24 = vld [vmem:[%s5724_s25] ss:$0 sm:$0xff] }
  0x5f   : > { %1357 = vmatprep.subr.bf16.mxu1 %v5669_v1 }
  0x60   : > { %1123 = vmatpush1.bf16.msra.mxu0 %v5456_v25  ;;  %1358 = vmatpush1.bf16.msra.mxu1 %v5464_v15 }
  0x61   : > { %1124 = vmatprep.subr.bf16.mxu0 %v5669_v1  ;;  %1359 = vmatprep.subr.bf16.mxu1 %v5669_v1 }
  0x64   : > { %1125 = vmatpush1.bf16.msra.mxu0 %v5457_v33  ;;  %1360 = vmatpush1.bf16.msra.mxu1 %v5465_v16 }
  0x65   : > { %1126 = vmatprep.subr.bf16.mxu0 %v5669_v1  ;;  %1361 = vmatprep.subr.bf16.mxu1 %v5669_v1 }
  0x68   : > { %1127 = vmatpush1.bf16.msra.mxu0 %v5458_v36  ;;  %1362 = vmatpush1.bf16.msra.mxu1 %v5466_v17  ;;  %v5468_v36 = vld [vmem:[%s7232_s3 + $0x8] sm:$0xff]  }
  0x69   : > { %1128 = vmatprep.subr.bf16.mxu0 %v5669_v1  ;;  %1363 = vmatprep.subr.bf16.mxu1 %v5669_v1 }
  0x6c   : > { %1129 = vmatpush1.bf16.msra.mxu0 %v5459_v37  ;;  %1364 = vmatpush1.bf16.msra.mxu1 %v5467_v30 }
  0x6d   : > { %1142 = vmatprep.subr.bf16.mxu0 %v5669_v1  ;;  %1365 = vmatprep.subr.bf16.mxu1 %v5669_v1 }
  0x70   : > { %1143 = vmatpush2.bf16.msra.mxu0 %v5460_v38  ;;  %1366 = vmatpush1.bf16.msra.mxu1 %v5468_v36 }
  0x71   : > { %1144 = vmatprep.subr.bf16.mxu0 %v5669_v1  ;;  %1367 = vmatprep.subr.bf16.mxu1 %v5669_v1 }
  0x74   : > { %1145 = vmatpush2.bf16.msra.mxu0 %v5461_v39 }
  0x75   : > { %1579 = vmatprep.subr.bf16.mxu0 %v5669_v1 }
  0xc7   : > { %v989_v40 = vpop.permute.xlu1 %988 }
  0xc8   : > { %v976_v41 = vpop.permute.xlu0 %975 }
  0xc9   : > { %v1020_v44 = vsel %vm1017_vm4, %v5912_v5, %v976_v41 }
  0xca   : > { %v1024_v51 = vsel %vm7181_vm5, %v1020_v44, %v989_v40  ;;  %v5469_v40 = vld [vmem:[%s7232_s3] sm:$0xff]  }
  0xcb   : > { %v5305_v42 = vpop.permute.xlu1 %5304  ;;  %1368 = vmatpush1.bf16.msra.mxu1 %v5469_v40  ;;  %v5473_v40 = vld [vmem:[%s5754_s24 + $0x30] sm:$0xff]  }
  0xcc   : > { %v5300_v43 = vpop.permute.xlu0 %5299  ;;  %v5307_v47 = vunpack.i.h.bf16 %v5305_v42  ;;  %v5306_v48 = vunpack.i.l.bf16 %v5305_v42  ;;  %1381 = vmatprep.subr.bf16.mxu1 %v5669_v1 }
  0xcd   : > { %v5302_v45 = vunpack.i.h.bf16 %v5300_v43  ;;  %v5301_v46 = vunpack.i.l.bf16 %v5300_v43 }
  0xcf   : > { %v1019_v49 = vsel %vm1017_vm4, %v5914_v6, %v5302_v45  ;;  %v1018_v50 = vsel %vm1017_vm4, 0.0, %v5301_v46  ;;  %v1004_v52 = vpop.permute.xlu1 %1003  ;;  %v5470_v46 = vld [vmem:[%s7232_s3 + $0x48] sm:$0xff]  }
  0xd0   : > { %v5310_v53 = vpop.permute.xlu0 %5309  ;;  %v1028_v54 = vsel %vm7180_vm6, %v1024_v51, %v1004_v52  ;;  %v1022_v57 = vsel %vm7181_vm5, %v1018_v50, %v5306_v48  ;;  %v1023_v59 = vsel %vm7181_vm5, %v1019_v49, %v5307_v47  ;;  %1382 = vmatpush2.bf16.msra.mxu1 %v5470_v46 }
  0xd1   : > { %v5312_v55 = vunpack.i.h.bf16 %v5310_v53  ;;  %v5311_v56 = vunpack.i.l.bf16 %v5310_v53  ;;  %v1031_v58 = vpack.c.bf16 %v1028_v54, %v1028_v54  ;;  %v5471_v54 = vld [vmem:[%s7232_s3 + $0x40] sm:$0xff]   ;;  %1383 = vmatprep.subr.bf16.mxu1 %v5669_v1 }
  0xd3   : > { %v1026_v60 = vsel %vm7180_vm6, %v1022_v57, %v5311_v56  ;;  %v1027_v61 = vsel %vm7180_vm6, %v1023_v59, %v5312_v55  ;;  %v1045_v63 = vrot.slane %v1031_v58, 3 }
  0xd4   : > { %v1029_v62 = vpack.c.bf16 %v1027_v61, %v1026_v60  ;;  %1384 = vmatpush2.bf16.msra.mxu1 %v5471_v54 }
  0xd5   : > { %5057 = vmatprep.subr.bf16.mxu1 %v5670_v3 }
  0xd6   : > { %v1044_v0 = vrot.slane %v1029_v62, 3 }
  0xd8   : > { %v1046_v2 = vsel %vm993_vm2, %v1044_v0, %v1045_v63 }
  0xd9   : > { %1147 = vmatmul.mubr.bf16.vlgmr.msra.gmra.mxu0 %v1046_v2 }
 0x199   : > { %v1148_v20 = vpop.f32.mrf.mxu0 }
 0x19a   : > { %v1149_v21 = vadd.f32 %v4778_v18, %v1148_v20 }
 0x19b   : > { %v1150_v22 = vpop.f32.mrf.mxu0 }
 0x19c   : > { %v1168_v23 = vsel %vm1158_vm7, %v1149_v21, 0.0 }
 0x19d   : > { %v1170_v25 = vmax.f32 %v1168_v23, 0.0  ;;  %v1151_v27 = vpop.f32.mrf.mxu0 }
 0x19e   : > { %v1152_v29 = vadd.f32 %v4778_v18, %v1151_v27 }
 0x19f   : > { %v1179_v31 = vmul.f32 %v4790_v24, %v1170_v25  ;;  %v1153_v32 = vpop.f32.mrf.mxu0 }
 0x1a0   : > { %v1169_v33 = vsel %vm1161_vm8, %v1152_v29, 0.0 }
 0x1a1   : > { %v1188_v34 = vadd.f32 %v4791_v28, %v1179_v31  ;;  %v1171_v35 = vmax.f32 %v1169_v33, 0.0 }
 0x1a3   : > { %v6011_v37 = vadd.f32 %v1188_v34, %v5914_v6  ;;  %v1180_v38 = vmul.f32 %v4790_v24, %v1171_v35 }
 0x1a5   : > { %v1189_v39 = vadd.f32 %v4791_v28, %v1180_v38  ;;  %v1215_v42 = vrot.slane %v6011_v37, 1  ;;  %v1253_v6 = vrot.slane %v6011_v37, 4  ;;  %v1228_v47 = vrot.slane %v6011_v37, 2 }
 0x1a6   : > { %v1240_v59 = vrot.slane %v6011_v37, 3 }
 0x1a7   : > { %v6016_v41 = vadd.f32 %v1189_v39, %v5912_v5  ;;  %v1216_v5 = vsel %vm7196_vm1, %v5910_v4, %v1215_v42  ;;  %v5472_v39 = vld [vmem:[%s5754_s24 + $0x38] sm:$0xff]  }
 0x1a8   : > { %1580 = vmatpush1.bf16.msra.mxu0 %v5472_v39 }
 0x1a9   : > { %v1217_v43 = vrot.slane %v6016_v41, 1  ;;  %v1229_v44 = vrot.slane %v6016_v41, 2  ;;  %v1254_v45 = vrot.slane %v6016_v41, 4  ;;  %v1241_v56 = vrot.slane %v6016_v41, 3  ;;  %1581 = vmatprep.subr.bf16.mxu0 %v5669_v1 }
 0x1ab   : > { %1223 = vrot.lane.b32.xlu1 %v1217_v43, %s7173_s22  ;;  %v1218_v48 = vsel %vm7196_vm1, %v1215_v42, %v1217_v43  ;;  %v1255_v49 = vsel %vm1008_vm3, %v1253_v6, %v1254_v45  ;;  %v1256_v50 = vsel %vm1008_vm3, %v1254_v45, %v5942_v26  ;;  %v1230_v55 = vsel %vm7195_vm0, %v1228_v47, %v1229_v44  ;;  %v5474_v42 = vld [vmem:[%s5754_s24 + $0x28] sm:$0xff]   ;;  %v5475_v43 = vld [vmem:[%s5754_s24 + $0x20] sm:$0xff]  }
 0x1ac   : > { %v5313_v51 = vpack.i.bf16 %v1218_v48, %v1216_v5  ;;  %v1270_v52 = vpack.c.bf16 %v1255_v49, %v1253_v6  ;;  %v1272_v53 = vpack.c.bf16 %v1256_v50, %v1256_v50  ;;  %v5318_v61 = vpack.i.bf16 %v1230_v55, %v1228_v47  ;;  %1582 = vmatpush1.bf16.msra.mxu0 %v5473_v40  ;;  %v4792_v6 = vld [vmem:[%s7237_s8] ss:$0 sm:$0xff]  ;;  %s7252_s8 = sld [smem:[#allocation22_spill]] }
 0x1ad   : > { %v1242_v62 = vsel %vm993_vm2, %v1240_v59, %v1241_v56  ;;  %v1243_v63 = vsel %vm993_vm2, %v1241_v56, %v5931_v19  ;;  %1583 = vmatprep.subr.bf16.mxu0 %v5669_v1  ;;  %v4804_v48 = vld [vmem:[%s7238_s14] ss:$0 sm:$0xff]  ;;  %s7254_s14 = smov 32  }
 0x1ae   : > { %5314 = vrot.lane.b32.xlu0 %v5313_v51, %s7173_s22  ;;  %v1286_v57 = vrot.slane %v1270_v52, 3  ;;  %v1287_v58 = vrot.slane %v1272_v53, 3  ;;  %v5323_v0 = vpack.i.bf16 %v1242_v62, %v1240_v59  ;;  %v4805_v51 = vld [vmem:[%s7239_s19] ss:$0 sm:$0xff]  ;;  %v5477_v53 = vld [vmem:[%s5754_s24 + $0x10] sm:$0xff]   ;;  %v5478_v59 = vld [vmem:[%s5754_s24 + $0x8] sm:$0xff]  }
 0x1af   : > { %1235 = vrot.lane.b32.xlu1 %v1229_v44, %s7176_s23  ;;  %v5476_v44 = vld [vmem:[%s5754_s24 + $0x18] sm:$0xff]   ;;  %s7260_s19 = sld [smem:[#allocation25_spill]] }
 0x1b0   : > { %v1288_v60 = vsel %vm993_vm2, %v1286_v57, %v1287_v58  ;;  %1584 = vmatpush1.bf16.msra.mxu0 %v5474_v42 }
 0x1b1   : > { %4803 = vmatprep.mubr.msk.bf16.mxu1 %vm1017_vm4, %v1288_v60  ;;  %1585 = vmatprep.subr.bf16.mxu0 %v5669_v1 }
 0x1b2   : > { %5319 = vrot.lane.b32.xlu0 %v5318_v61, %s7176_s23 }
 0x1b3   : > { %1248 = vrot.lane.b32.xlu1 %v1243_v63, %s7178_s16  ;;  %v5479_v63 = vld [vmem:[%s5754_s24] sm:$0xff]  }
 0x1b4   : > { %1586 = vmatpush1.bf16.msra.mxu0 %v5475_v43 }
 0x1b5   : > { %1587 = vmatprep.subr.bf16.mxu0 %v5669_v1 }
 0x1b6   : > { %5324 = vrot.lane.b32.xlu0 %v5323_v0, %s7178_s16 }
 0x1b8   : > { %1588 = vmatpush1.bf16.msra.mxu0 %v5476_v44 }
 0x1b9   : > { %1589 = vmatprep.subr.bf16.mxu0 %v5669_v1 }
 0x1bc   : > { %1590 = vmatpush1.bf16.msra.mxu0 %v5477_v53 }
 0x1bd   : > { %1591 = vmatprep.subr.bf16.mxu0 %v5669_v1 }
 0x1c0   : > { %1592 = vmatpush1.bf16.msra.mxu0 %v5478_v59 }
 0x1c1   : > { %1593 = vmatprep.subr.bf16.mxu0 %v5669_v1 }
 0x1c4   : > { %1594 = vmatpush1.bf16.msra.mxu0 %v5479_v63  ;;  %v4806_v63 = vld [vmem:[%s5759_s30] ss:$0 sm:$0xff] }
 0x1c5   : > { %1607 = vmatprep.subr.bf16.mxu0 %v5669_v1 }
 0x21d   : > { %v1224_v2 = vpop.permute.xlu1 %1223 }
 0x21e   : > { %v1262_v14 = vsel %vm1017_vm4, %v6016_v41, %v1224_v2 }
 0x220   : > { %v5315_v7 = vpop.permute.xlu0 %5314 }
 0x221   : > { %v1236_v10 = vpop.permute.xlu1 %1235  ;;  %v5317_v15 = vunpack.i.h.bf16 %v5315_v7  ;;  %v5316_v16 = vunpack.i.l.bf16 %v5315_v7 }
 0x222   : > { %v1265_v18 = vsel %vm7181_vm5, %v1262_v14, %v1236_v10 }
 0x223   : > { %v1261_v24 = vsel %vm1017_vm4, %v6011_v37, %v5317_v15  ;;  %v1260_v25 = vsel %vm1017_vm4, 0.0, %v5316_v16  ;;  %v5480_v15 = vld [vmem:[%s5754_s24 + $0x48] sm:$0xff]  }
 0x224   : > { %v5320_v13 = vpop.permute.xlu0 %5319  ;;  %1608 = vmatpush2.bf16.msra.mxu0 %v5480_v15 }
 0x225   : > { %v1249_v17 = vpop.permute.xlu1 %1248  ;;  %v5322_v20 = vunpack.i.h.bf16 %v5320_v13  ;;  %v5321_v21 = vunpack.i.l.bf16 %v5320_v13  ;;  %1609 = vmatprep.subr.bf16.mxu0 %v5669_v1 }
 0x226   : > { %v1268_v22 = vsel %vm7180_vm6, %v1265_v18, %v1249_v17 }
 0x227   : > { %v1263_v29 = vsel %vm7181_vm5, %v1260_v25, %v5321_v21  ;;  %v1264_v30 = vsel %vm7181_vm5, %v1261_v24, %v5322_v20  ;;  %v1271_v31 = vpack.c.bf16 %v1268_v22, %v1268_v22 }
 0x228   : > { %v5325_v23 = vpop.permute.xlu0 %5324 }
 0x229   : > { %v5327_v27 = vunpack.i.h.bf16 %v5325_v23  ;;  %v5326_v28 = vunpack.i.l.bf16 %v5325_v23  ;;  %v1284_v35 = vrot.slane %v1271_v31, 3  ;;  %v5481_v23 = vld [vmem:[%s5754_s24 + $0x40] sm:$0xff]  }
 0x22a   : > { %1610 = vmatpush2.bf16.msra.mxu0 %v5481_v23 }
 0x22b   : > { %v1266_v32 = vsel %vm7180_vm6, %v1263_v29, %v5326_v28  ;;  %v1267_v33 = vsel %vm7180_vm6, %v1264_v30, %v5327_v27  ;;  %5049 = vmatprep.subr.bf16.mxu0 %v5670_v3 }
 0x22c   : > { %v1269_v34 = vpack.c.bf16 %v1267_v33, %v1266_v32 }
 0x22e   : > { %v1283_v36 = vrot.slane %v1269_v34, 3 }
 0x230   : > { %v1285_v38 = vsel %vm993_vm2, %v1283_v36, %v1284_v35 }
 0x231   : > { %1386 = vmatmul.mubr.bf16.vlgmr.msra.gmra.mxu1 %v1285_v38 }
 0x232   : > { %5059 = vmatprep.mubr.msk.bf16.mxu1 %vm5674_vm9, %v5670_v3 }
 0x2f1   : > { %v1387_v45 = vpop.f32.mrf.mxu1 }
 0x2f2   : > { %v1388_v46 = vadd.f32 %v4792_v6, %v1387_v45 }
 0x2f3   : > { %v1389_v47 = vpop.f32.mrf.mxu1 }
 0x2f4   : > { %v1394_v5 = vsel %vm1158_vm7, %v1388_v46, 0.0 }
 0x2f5   : > { %v1396_v49 = vmax.f32 %v1394_v5, 0.0  ;;  %v1390_v50 = vpop.f32.mrf.mxu1 }
 0x2f6   : > { %v1391_v52 = vadd.f32 %v4792_v6, %v1390_v50 }
 0x2f7   : > { %v1405_v54 = vmul.f32 %v4804_v48, %v1396_v49  ;;  %v1392_v55 = vpop.f32.mrf.mxu1 }
 0x2f8   : > { %v1395_v56 = vsel %vm1161_vm8, %v1391_v52, 0.0 }
 0x2f9   : > { %v1414_v57 = vadd.f32 %v4805_v51, %v1405_v54  ;;  %v1397_v58 = vmax.f32 %v1395_v56, 0.0 }
 0x2fb   : > { %v6082_v60 = vadd.f32 %v1414_v57, %v6011_v37  ;;  %v1406_v61 = vmul.f32 %v4804_v48, %v1397_v58 }
 0x2fd   : > { %v1415_v62 = vadd.f32 %v4805_v51, %v1406_v61  ;;  %v1441_v2 = vrot.slane %v6082_v60, 1  ;;  %v1479_v37 = vrot.slane %v6082_v60, 4  ;;  %v1454_v14 = vrot.slane %v6082_v60, 2  ;;  %v5482_v61 = vld [vmem:[%s7230_s20 + $0x8] sm:$0xff]  }
 0x2ff   : > { %v6087_v0 = vadd.f32 %v1415_v62, %v6016_v41  ;;  %v1442_v41 = vsel %vm7196_vm1, %v5910_v4, %v1441_v2  ;;  %v5483_v62 = vld [vmem:[%s7230_s20] sm:$0xff]  }
 0x301   : > { %v1443_v7 = vrot.slane %v6087_v0, 1  ;;  %v1455_v10 = vrot.slane %v6087_v0, 2  ;;  %v1480_v13 = vrot.slane %v6087_v0, 4  ;;  %v1467_v25 = vrot.slane %v6087_v0, 3 }
 0x303   : > { %1449 = vrot.lane.b32.xlu1 %v1443_v7, %s7173_s22  ;;  %v1444_v16 = vsel %vm7196_vm1, %v1441_v2, %v1443_v7  ;;  %v1481_v17 = vsel %vm1008_vm3, %v1479_v37, %v1480_v13  ;;  %v1482_v18 = vsel %vm1008_vm3, %v1480_v13, %v5942_v26  ;;  %v1456_v24 = vsel %vm7195_vm0, %v1454_v14, %v1455_v10  ;;  %v4818_v13 = vld [vmem:[%s7242_s6] ss:$0 sm:$0xff]  ;;  %s7190_s6 = smov 16  }
 0x304   : > { %v5328_v20 = vpack.i.bf16 %v1444_v16, %v1442_v41  ;;  %v1496_v21 = vpack.c.bf16 %v1481_v17, %v1479_v37  ;;  %v1498_v22 = vpack.c.bf16 %v1482_v18, %v1482_v18  ;;  %v1466_v26 = vrot.slane %v6082_v60, 3 }
 0x305   : > { %v5333_v29 = vpack.i.bf16 %v1456_v24, %v1454_v14  ;;  %v1469_v31 = vsel %vm993_vm2, %v1467_v25, %v5931_v19 }
 0x306   : > { %5329 = vrot.lane.b32.xlu0 %v5328_v20, %s7173_s22  ;;  %v1512_v4 = vrot.slane %v1496_v21, 3  ;;  %v1513_v27 = vrot.slane %v1498_v22, 3  ;;  %v1468_v30 = vsel %vm993_vm2, %v1466_v26, %v1467_v25  ;;  %s7241_s22 = sshll.u32 %s5897_s2, 4 }
 0x307   : > { %1461 = vrot.lane.b32.xlu1 %v1455_v10, %s7176_s23  ;;  %s931_s3 = scalar_lea.vmem %s7240_s9, %s7241_s22  ;;  %v5338_v32 = vpack.i.bf16 %v1468_v30, %v1466_v26  ;;  %s7244_s22 = sld [smem:[#allocation20_spill]] }
 0x308   : > { %v1514_v28 = vsel %vm993_vm2, %v1512_v4, %v1513_v27  ;;  %v937_v33 = vld [vmem:[%s931_s3 + $0x8] sm:$0xff]  ;;  %v936_v34 = vld [vmem:[%s931_s3] sm:$0xff]  ;;  %s7243_s3 = sld [smem:[#allocation15_spill]] }
 0x309   : > { %4817 = vmatprep.mubr.msk.bf16.mxu0 %vm1017_vm4, %v1514_v28  ;;  %s7253_s9 = sld [smem:[#allocation23_spill]] }
 0x30a   : > { %5334 = vrot.lane.b32.xlu0 %v5333_v29, %s7176_s23  ;;  %s7245_s23 = sld [smem:[#allocation17_spill]] }
 0x30b   : > { %1474 = vrot.lane.b32.xlu1 %v1469_v31, %s7178_s16 }
 0x30d   : > { %v5484_v30 = vld [vmem:[%s7244_s22] sm:$0x1f]  }
 0x30e   : > { %5339 = vrot.lane.b32.xlu0 %v5338_v32, %s7178_s16  ;;  %v4819_v41 = vld [vmem:[%s7243_s3] ss:$0 sm:$0xff]  ;;  %s7246_s3 = sld [smem:[#allocation7_spill]] }
 0x30f   : > { %1651 = vperm.xlu1 %5344, %v937_v33  }
 0x310   : > { %v4839_v31 = vld [vmem:[%s7245_s23] ss:$0 sm:$0xff] }
 0x312   : > { %1646 = vperm.xlu0 %5343, %v936_v34  }
 0x375   : > { %v1450_v35 = vpop.permute.xlu1 %1449 }
 0x376   : > { %v1488_v40 = vsel %vm1017_vm4, %v6087_v0, %v1450_v35 }
 0x378   : > { %v5330_v36 = vpop.permute.xlu0 %5329 }
 0x379   : > { %v1462_v38 = vpop.permute.xlu1 %1461  ;;  %v5332_v42 = vunpack.i.h.bf16 %v5330_v36  ;;  %v5331_v19 = vunpack.i.l.bf16 %v5330_v36 }
 0x37a   : > { %v1491_v44 = vsel %vm7181_vm5, %v1488_v40, %v1462_v38  ;;  %v7198_v38 = vmov 2  }
 0x37b   : > { %v1487_v5 = vsel %vm1017_vm4, %v6082_v60, %v5332_v42  ;;  %v1486_v48 = vsel %vm1017_vm4, 0.0, %v5331_v19  ;;  %5346 = vset.pattern.permute.xlu1 %v7198_v38 }
 0x37c   : > { %v5335_v39 = vpop.permute.xlu0 %5334 }
 0x37d   : > { %v1475_v43 = vpop.permute.xlu1 %1474  ;;  %v5337_v6 = vunpack.i.h.bf16 %v5335_v39  ;;  %v5336_v45 = vunpack.i.l.bf16 %v5335_v39 }
 0x37e   : > { %v1494_v46 = vsel %vm7180_vm6, %v1491_v44, %v1475_v43 }
 0x37f   : > { %v1489_v51 = vsel %vm7181_vm5, %v1486_v48, %v5336_v45  ;;  %v1490_v52 = vsel %vm7181_vm5, %v1487_v5, %v5337_v6  ;;  %v1497_v53 = vpack.c.bf16 %v1494_v46, %v1494_v46  ;;  %v5676_v5 = vmov 3  }
 0x380   : > { %v5340_v47 = vpop.permute.xlu0 %5339  ;;  %v7184_v48 = vmov 1   ;;  %vm7191_vm5 = vcmask 72704  }
 0x381   : > { %v5342_v49 = vunpack.i.h.bf16 %v5340_v47  ;;  %v5341_v50 = vunpack.i.l.bf16 %v5340_v47  ;;  %v1510_v57 = vrot.slane %v1497_v53, 3  ;;  %v7199_v53 = vmov 7  }
 0x383   : > { %v1492_v54 = vsel %vm7180_vm6, %v1489_v51, %v5341_v50  ;;  %v1493_v55 = vsel %vm7180_vm6, %v1490_v52, %v5342_v49  ;;  %v7186_v50 = vmov 5   ;;  %v5679_v51 = vmov 4  }
 0x384   : > { %v1495_v56 = vpack.c.bf16 %v1493_v55, %v1492_v54  ;;  %v7201_v52 = vmov 6   ;;  %v7182_v54 = vmov 8   ;;  %vm7192_vm6 = vcmask 64512  }
 0x386   : > { %v1509_v58 = vrot.slane %v1495_v56, 3 }
 0x388   : > { %v1511_v59 = vsel %vm993_vm2, %v1509_v58, %v1510_v57 }
 0x389   : > { %1612 = vmatmul.mubr.bf16.vlgmr.msra.gmra.mxu0 %v1511_v59 }
 0x38a   : > { %5053 = vmatprep.mubr.msk.bf16.mxu0 %vm5674_vm9, %v5670_v3  ;;  %5050 = vmatpush3.bf16.msra.mxu0 %v5482_v61  ;;  %v6153_v4 = vpop.permute.xlu1 %1651 }
 0x38b   : > { %5051 = vmatprep.subr.bf16.mxu0 %v5670_v3 }
 0x38d   : > { %v6151_v25 = vpop.permute.xlu0 %1646 }
 0x38e   : > { %5052 = vmatpush3.bf16.msra.mxu0 %v5483_v62 }
 0x38f   : > { %5081 = vmatprep.subr.bf16.mxu0 %v5670_v3 }
 0x449   : > { %v1613_v2 = vpop.f32.mrf.mxu0 }
 0x44a   : > { %v1614_v7 = vadd.f32 %v4806_v63, %v1613_v2 }
 0x44b   : > { %v1615_v10 = vpop.f32.mrf.mxu0 }
 0x44c   : > { %v1620_v37 = vsel %vm1158_vm7, %v1614_v7, 0.0  ;;  %vm1681_vm7 = vcmp.eq.s32.totalorder %v5986_v12, 4294967294 }
 0x44d   : > { %v1622_v14 = vmax.f32 %v1620_v37, 0.0  ;;  %v1616_v15 = vpop.f32.mrf.mxu0  ;;  %v6215_v37 = vsel %vm1668_vm11, 1.0, %v5670_v3  ;;  %vm1686_vm11 = vcmp.eq.s32.totalorder %v5983_v11, 4294967295 }
 0x44e   : > { %v1617_v16 = vadd.f32 %v4806_v63, %v1616_v15 }
 0x44f   : > { %v1631_v17 = vmul.f32 %v4818_v13, %v1622_v14  ;;  %v1618_v18 = vpop.f32.mrf.mxu0  ;;  %v6221_v14 = vsel %vm1674_vm13, 1.0, %v5670_v3  ;;  %vm1693_vm13 = vcmp.eq.s32.totalorder %v5986_v12, 0 }
 0x450   : > { %v1621_v20 = vsel %vm1161_vm8, %v1617_v16, 0.0  ;;  %vm1687_vm8 = vcmp.eq.s32.totalorder %v5986_v12, 4294967295 }
 0x451   : > { %v1640_v21 = vadd.f32 %v4819_v41, %v1631_v17  ;;  %v1623_v22 = vmax.f32 %v1621_v20, 0.0  ;;  %v6231_v20 = vsel %vm1675_vm14, 1.0, %v5670_v3  ;;  %vm1699_vm14 = vcmp.eq.s32.totalorder %v5986_v12, 1 }
 0x453   : > { %v1642_v23 = vadd.f32 %v1640_v21, %v6082_v60  ;;  %v1632_v24 = vmul.f32 %v4818_v13, %v1623_v22  ;;  %v6218_v13 = vsel %vm1669_vm12, 1.0, %v5670_v3  ;;  %vm1692_vm12 = vcmp.eq.s32.totalorder %v5983_v11, 0 }
 0x455   : > { %v1641_v8 = vadd.f32 %v4819_v41, %v1632_v24  ;;  %v1654_v26 = vmul.f32 %v6151_v25, %v1642_v23  ;;  %v6235_v23 = vsel %vm1680_vm15, 1.0, %v5670_v3  ;;  %vm1698_vm15 = vcmp.eq.s32.totalorder %v5983_v11, 1 }
 0x457   : > { %v1643_v27 = vadd.f32 %v1641_v8, %v6087_v0  ;;  %v6159_v9 = vmul.f32 %v1654_v26, %v6151_v25  ;;  %v1810_v0 = vsel %vm1805_vm10, %v5484_v30, 0  ;;  %v6241_v26 = vsel %vm1681_vm7, 1.0, %v5670_v3 }
 0x458   : > { %5058 = vmatpush3.bf16.xpose.msra.mxu1 %v1810_v0  ;;  %vm1705_vm7 = vcmp.eq.s32.totalorder %v5986_v12, 2 }
 0x459   : > { %v1655_v28 = vmul.f32 %v6153_v4, %v1643_v27  ;;  %5063 = vmatprep.subr.bf16.mxu1 %v5670_v3 }
 0x45b   : > { %v6162_v29 = vmul.f32 %v1655_v28, %v6153_v4 }
 0x45d   : > { %v1724_v60 = vpack.c.bf16 %v6162_v29, %v6159_v9 }
 0x45f   : > { %5054 = vmatmul.mubr.msk.bf16.vlgmr.msra.gmra.mxu0 %vm1017_vm4, %v1724_v60 }
 0x460   : > { %5083 = vmatprep.mubr.msk.bf16.mxu0 %vm5674_vm9, %v5670_v3  ;;  %5082 = vmatpush3.bf16.xpose.msra.mxu0 %v1810_v0  ;;  %v6246_v0 = vsel %vm1687_vm8, 1.0, %v5670_v3  ;;  %vm1704_vm8 = vcmp.eq.s32.totalorder %v5983_v11, 2 }
 0x461   : > { %5093 = vmatprep.subr.bf16.mxu0 %v5670_v3 }
 0x51f   : > { %v1785_v32 = vpop.f32.mrf.mxu0 }
 0x520   : > { %v1786_v34 = vadd.f32 %v4839_v31, %v1785_v32 }
 0x521   : > { %v5055_v33 = vpop.f32.mrf.mxu0 }
 0x522   : > { %v1792_v40 = vmul.f32 0.25, %v1786_v34 }
 0x523   : > { %v1788_v35 = vpop.f32.mrf.mxu0 }
 0x524   : > { %v1789_v36 = vadd.f32 %v4839_v31, %v1788_v35  ;;  %v6249_v31 = vsel %vm1686_vm11, 1.0, %v5670_v3  ;;  %v6254_v35 = vsel %vm1692_vm12, 1.0, %v5670_v3  ;;  %vm1711_vm11 = vcmp.eq.s32.totalorder %v5986_v12, 3 }
 0x525   : > { %v5056_v39 = vpop.f32.mrf.mxu0  ;;  %vm1717_vm12 = vcmp.eq.s32.totalorder %v5986_v12, 4 }
 0x526   : > { %v1793_v42 = vmul.f32 0.25, %v1789_v36  ;;  %v6175_v19 = vpack.c.bf16 %v1789_v36, %v1786_v34 }
 0x528   : > { %v6177_v43 = vpack.c.bf16 %v1793_v42, %v1792_v40  ;;  %1866 = vrot.lane.b32.xlu1 %v6175_v19, %s7178_s16  ;;  %v6259_v42 = vsel %vm1693_vm13, 1.0, %v5670_v3  ;;  %s934_s16 = scalar_lea.vmem %s7246_s3, %s5897_s2  ;;  %vm1710_vm13 = vcmp.eq.s32.totalorder %v5983_v11, 3  ;;  %s7179_s2 = smov 112  }
 0x529   : > { %v6297_v12 = vsel %vm1710_vm13, 1.0, %v5670_v3  ;;  %s7248_s3 = sld [smem:[#allocation21_spill]]  ;;  %vm2122_vm13 = vcmask 48128  }
 0x52a   : > { %5060 = vmatmul.mubr.msk.bf16.vlgmr.msra.gmra.mxu1 %vm1805_vm10, %v6177_v43 }
 0x52b   : > { %5065 = vmatprep.mubr.msk.bf16.mxu1 %vm5674_vm9, %v5670_v3 }
 0x59a   : > { %v1867_v44 = vpop.permute.xlu1 %1866 }
 0x59b   : > { %v1869_v6 = vsel %vm1805_vm10, %v1867_v44, 0 }
 0x59c   : > { %5064 = vmatpush3.bf16.xpose.msra.mxu1 %v1869_v6 }
 0x59d   : > { %5069 = vmatprep.subr.bf16.mxu1 %v5670_v3 }
 0x5a3   : > { %5066 = vmatmul.mubr.msk.bf16.vlgmr.msra.gmra.mxu1 %vm1805_vm10, %v6177_v43 }
 0x5a4   : > { %5071 = vmatprep.mubr.msk.bf16.mxu1 %vm5674_vm9, %v5670_v3 }
 0x5ea   : > { %v1846_v45 = vpop.f32.mrf.mxu1 }
 0x5eb   : > { %1925 = vperm.xlu1 %5346, %v1846_v45   ;;  %1855 = vperm.xlu0 %5343, %v1846_v45  }
 0x5ec   : > { %v5061_v46 = vpop.f32.mrf.mxu1 }
 0x5ee   : > { %v1849_v47 = vpop.f32.mrf.mxu1 }
 0x5ef   : > { %5347 = vset.pattern.permute.xlu1 %v5676_v5  ;;  %5345 = vset.pattern.permute.xlu0 %v7184_v48 }
 0x5f0   : > { %1937 = vperm.xlu1 %5347, %v1846_v45   ;;  %1913 = vperm.xlu0 %5345, %v1846_v45   ;;  %v5062_v49 = vpop.f32.mrf.mxu1 }
 0x5f1   : > { %v6268_v49 = vsel %vm1699_vm14, 1.0, %v5670_v3  ;;  %vm1716_vm14 = vcmp.eq.s32.totalorder %v5983_v11, 4 }
 0x5f4   : > { %5349 = vset.pattern.permute.xlu1 %v7186_v50  ;;  %5348 = vset.pattern.permute.xlu0 %v5679_v51 }
 0x5f5   : > { %1961 = vperm.xlu1 %5349, %v1846_v45   ;;  %1949 = vperm.xlu0 %5348, %v1846_v45  }
 0x5f9   : > { %5350 = vset.pattern.permute.xlu1 %v7201_v52  ;;  %5351 = vset.pattern.permute.xlu0 %v7199_v53 }
 0x5fa   : > { %1973 = vperm.xlu1 %5350, %v1846_v45   ;;  %1985 = vperm.xlu0 %5351, %v1846_v45  }
 0x5fe   : > { %5352 = vset.pattern.permute.xlu1 %v5669_v1  ;;  %5354 = vset.pattern.permute.xlu0 %v7198_v38 }
 0x5ff   : > { %1929 = vperm.xlu0 %5354, %v1849_v47   ;;  %1860 = vperm.xlu1 %5352, %v1849_v47  }
 0x603   : > { %5357 = vset.pattern.permute.xlu0 %v7186_v50  ;;  %5353 = vset.pattern.permute.xlu1 %v7184_v48 }
 0x604   : > { %1965 = vperm.xlu0 %5357, %v1849_v47   ;;  %1917 = vperm.xlu1 %5353, %v1849_v47  }
 0x608   : > { %5361 = vset.pattern.permute.xlu0 %v7182_v54  ;;  %5355 = vset.pattern.permute.xlu1 %v5676_v5 }
 0x609   : > { %2001 = vperm.xlu0 %5361, %v1849_v47   ;;  %1941 = vperm.xlu1 %5355, %v1849_v47  }
 0x60d   : > { %5356 = vset.pattern.permute.xlu1 %v5679_v51  ;;  %5363 = vset.pattern.permute.xlu0 %v7184_v48 }
 0x60e   : > { %1953 = vperm.xlu1 %5356, %v1849_v47  }
 0x612   : > { %5358 = vset.pattern.permute.xlu1 %v7201_v52 }
 0x613   : > { %1977 = vperm.xlu1 %5358, %v1849_v47  }
 0x617   : > { %5359 = vset.pattern.permute.xlu1 %v7199_v53 }
 0x618   : > { %1989 = vperm.xlu1 %5359, %v1849_v47  }
 0x61c   : > { %5360 = vset.pattern.permute.xlu1 %v7182_v54 }
 0x61d   : > { %1997 = vperm.xlu1 %5360, %v1846_v45  }
 0x621   : > { %5362 = vset.pattern.permute.xlu1 %v5669_v1 }
 0x663   : > { %v1905_v55 = vpop.f32.mrf.mxu1 }
 0x665   : > { %v5067_v56 = vpop.f32.mrf.mxu1 }
 0x666   : > { %v1926_v57 = vpop.permute.xlu1 %1925  ;;  %v1856_v59 = vpop.permute.xlu0 %1855  ;;  %v6271_v56 = vsel %vm1698_vm15, 1.0, %v5670_v3 }
 0x667   : > { %v1908_v58 = vpop.f32.mrf.mxu1  ;;  %v1863_v41 = vmul.f32 %v6215_v37, %v1856_v59  ;;  %v1932_v30 = vmul.f32 %v6235_v23, %v1926_v57  ;;  %v6274_v59 = vsel %vm1705_vm7, 1.0, %v5670_v3 }
 0x669   : > { %v5068_v61 = vpop.f32.mrf.mxu1  ;;  %v1906_v21 = vadd.f32 %v1905_v55, %v1863_v41 }
 0x66a   : > { %v6277_v61 = vsel %vm1704_vm8, 1.0, %v5670_v3  ;;  %vm2113_vm8 = vcmask 23552  }
 0x66b   : > { %v1938_v62 = vpop.permute.xlu1 %1937  ;;  %v1914_v63 = vpop.permute.xlu0 %1913 }
 0x66c   : > { %v1920_v18 = vmul.f32 %v6221_v14, %v1914_v63  ;;  %v1944_v40 = vmul.f32 %v6249_v31, %v1938_v62 }
 0x66e   : > { %v1922_v27 = vadd.f32 %v1920_v18, %v1906_v21  ;;  %v6290_v21 = vsel %vm1711_vm11, 1.0, %v5670_v3  ;;  %vm2116_vm11 = vcmask 31744  }
 0x670   : > { %v1962_v2 = vpop.permute.xlu1 %1961  ;;  %v1950_v7 = vpop.permute.xlu0 %1949  ;;  %v1934_v34 = vadd.f32 %v1932_v30, %v1922_v27 }
 0x671   : > { %v1956_v6 = vmul.f32 %v6254_v35, %v1950_v7  ;;  %v1968_v7 = vmul.f32 %v6271_v56, %v1962_v2 }
 0x672   : > { %v1946_v44 = vadd.f32 %v1944_v40, %v1934_v34 }
 0x675   : > { %v6210_v10 = vpop.permute.xlu1 %1973  ;;  %v6225_v16 = vpop.permute.xlu0 %1985 }
 0x676   : > { %v1980_v18 = vmul.f32 %v6277_v61, %v6210_v10  ;;  %v1992_v34 = vmul.f32 %v6297_v12, %v6225_v16 }
 0x67a   : > { %v1861_v15 = vpop.permute.xlu1 %1860  ;;  %v1930_v28 = vpop.permute.xlu0 %1929 }
 0x67b   : > { %v1864_v17 = vmul.f32 %v6218_v13, %v1861_v15  ;;  %v1933_v32 = vmul.f32 %v6241_v26, %v1930_v28 }
 0x67d   : > { %v1909_v24 = vadd.f32 %v1908_v58, %v1864_v17  ;;  %v1958_v58 = vadd.f32 %v1956_v6, %v1946_v44 }
 0x67f   : > { %v1918_v22 = vpop.permute.xlu1 %1917  ;;  %v1966_v55 = vpop.permute.xlu0 %1965  ;;  %v1970_v17 = vadd.f32 %v1968_v7, %v1958_v58 }
 0x680   : > { %v1921_v8 = vmul.f32 %v6231_v20, %v1918_v22  ;;  %v1969_v62 = vmul.f32 %v6268_v49, %v1966_v55  ;;  %v4820_v22 = vld [vmem:[%s934_s16] ss:$0 sm:$0xff]  ;;  %s7247_s16 = smov 64  }
 0x681   : > { %v1982_v10 = vadd.f32 %v1980_v18, %v1970_v17 }
 0x682   : > { %v1923_v60 = vadd.f32 %v1921_v8, %v1909_v24  ;;  %v6293_v24 = vsel %vm1717_vm12, 1.0, %v5670_v3  ;;  %vm2119_vm12 = vcmask 39936  }
 0x683   : > { %v1994_v40 = vadd.f32 %v1992_v34, %v1982_v10 }
 0x684   : > { %v1942_v33 = vpop.permute.xlu1 %1941  ;;  %v1935_v36 = vadd.f32 %v1933_v32, %v1923_v60  ;;  %v2002_v2 = vpop.permute.xlu0 %2001  ;;  %v6301_v60 = vmul.f32 %v4820_v22, %v6153_v4 }
 0x685   : > { %v1945_v39 = vmul.f32 %v6246_v0, %v1942_v33  ;;  %v2005_v30 = vmul.f32 %v6293_v24, %v2002_v2  ;;  %v6305_v33 = vsel %vm1716_vm14, 1.0, %v5670_v3  ;;  %vm7193_vm14 = vcmask 56320  }
 0x686   : > { %vm2009_vm15 = vcmp.gt.f32.partialorder %v6301_v60, 0.0 }
 0x687   : > { %v1947_v46 = vadd.f32 %v1945_v39, %v1935_v36  ;;  %v6310_v39 = vmul.f32 %v4820_v22, %v6151_v25 }
 0x689   : > { %v1954_v45 = vpop.permute.xlu1 %1953  ;;  %vm2008_vm7 = vcmp.gt.f32.partialorder %v6310_v39, 0.0 }
 0x68a   : > { %v1957_v47 = vmul.f32 %v6259_v42, %v1954_v45 }
 0x68c   : > { %v1959_v57 = vadd.f32 %v1957_v47, %v1947_v46 }
 0x68e   : > { %v1978_v63 = vpop.permute.xlu1 %1977  ;;  %v1971_v15 = vadd.f32 %v1969_v62, %v1959_v57 }
 0x68f   : > { %v1981_v41 = vmul.f32 %v6274_v59, %v1978_v63 }
 0x691   : > { %v1983_v27 = vadd.f32 %v1981_v41, %v1971_v15 }
 0x693   : > { %v1990_v8 = vpop.permute.xlu1 %1989 }
 0x694   : > { %v1993_v28 = vmul.f32 %v6290_v21, %v1990_v8 }
 0x696   : > { %v1995_v32 = vadd.f32 %v1993_v28, %v1983_v27 }
 0x698   : > { %v1998_v11 = vpop.permute.xlu1 %1997  ;;  %v2007_v36 = vadd.f32 %v2005_v30, %v1995_v32 }
 0x699   : > { %v2004_v44 = vmul.f32 %v6305_v33, %v1998_v11 }
 0x69a   : > { %v2011_v6 = vsel %vm2009_vm15, %v2007_v36, -10000.0 }
 0x69b   : > { %v2015_v45 = vsel %vm1805_vm10, %v2011_v6, -inf  ;;  %v2006_v46 = vadd.f32 %v2004_v44, %v1994_v40 }
 0x69c   : > { %2016 = vmax.xlane.f32.xlu0 %v2015_v45 }
 0x69d   : > { %v2010_v16 = vsel %vm2008_vm7, %v2006_v46, -10000.0 }
 0x69e   : > { %v2012_v47 = vsel %vm1805_vm10, %v2010_v16, -inf }
 0x69f   : > { %2013 = vmax.xlane.f32.xlu1 %v2012_v47 }
 0x725   : > { %v2017_v55 = vpop.xlane.xlu0 %2016 }
 0x726   : > { %v2019_v57 = vsub.f32 %v2011_v6, %v2017_v55 }
 0x728   : > { %v2022_v58 = vmul.f32 1.442695, %v2019_v57  ;;  %v2014_v62 = vpop.xlane.xlu1 %2013 }
 0x729   : > { %v2018_v63 = vsub.f32 %v2010_v16, %v2014_v62 }
 0x72a   : > { %5530 = vpow2.f32 %v2022_v58 }
 0x72b   : > { %v2020_v7 = vmul.f32 1.442695, %v2018_v63 }
 0x72d   : > { %5532 = vpow2.f32 %v2020_v7 }
 0x737   : > { %v5531_v15 = vpop.eup %5530 }
 0x738   : > { %v2027_v41 = vsel %vm1805_vm10, %v5531_v15, 0.0 }
 0x739   : > { %2028 = vadd.xlane.f32.xlu0 %v2027_v41 }
 0x73a   : > { %v5533_v17 = vpop.eup %5532 }
 0x73b   : > { %v2024_v18 = vsel %vm1805_vm10, %v5533_v17, 0.0 }
 0x73c   : > { %2025 = vadd.xlane.f32.xlu1 %v2024_v18 }
 0x74d   : > { %2235 = vrot.lane.b32.xlu1 %v6177_v43, %s7179_s2  ;;  %s7188_s2 = smov 80  }
 0x7c2   : > { %v2029_v2 = vpop.xlane.xlu0 %2028 }
 0x7c5   : > { %v2026_v22 = vpop.xlane.xlu1 %2025 }
 0x7c6   : > { %5534 = vrcp.f32 %v2026_v22 }
 0x7c7   : > { %5536 = vrcp.f32 %v2029_v2 }
 0x7c9   : > { %v6325_v8 = vpop.permute.xlu1 %2235 }
 0x7ca   : > { %5084 = vmatmul.mubr.msk.bf16.vlgmr.msra.gmra.mxu0 %vm1805_vm10, %v6325_v8 }
 0x7cb   : > { %5095 = vmatprep.mubr.msk.bf16.mxu0 %vm5674_vm9, %v5670_v3 }
 0x7d3   : > { %v5535_v27 = vpop.eup %5534 }
 0x7d4   : > { %v6331_v28 = vmul.f32 %v5535_v27, %v5533_v17  ;;  %v5537_v10 = vpop.eup %5536 }
 0x7d5   : > { %v6343_v40 = vmul.f32 %v5537_v10, %v5531_v15 }
 0x7d6   : > { %v2051_v30 = vmul.f32 %v6235_v23, %v6331_v28  ;;  %v2035_v43 = vmul.f32 %v6215_v37, %v6331_v28  ;;  %v2091_v11 = vmul.f32 %v6297_v12, %v6331_v28  ;;  %v2043_v36 = vmul.f32 %v6221_v14, %v6331_v28 }
 0x7d7   : > { %v2034_v44 = vpack.c.bf16 %v6343_v40, %v6331_v28  ;;  %v2099_v46 = vmul.f32 %v6305_v33, %v6331_v28  ;;  %v2059_v16 = vmul.f32 %v6249_v31, %v6331_v28  ;;  %v2067_v57 = vmul.f32 %v6254_v35, %v6331_v28 }
 0x7d8   : > { %v2053_v32 = vsel %vm1805_vm10, %v2051_v30, 0.0  ;;  %v2037_v34 = vsel %vm1805_vm10, %v2035_v43, 0.0  ;;  %v2093_v6 = vsel %vm1805_vm10, %v2091_v11, 0.0  ;;  %v2045_v45 = vsel %vm1805_vm10, %v2043_v36, 0.0 }
 0x7d9   : > { %2054 = vadd.xlane.f32.xlu1 %v2053_v32  ;;  %2038 = vadd.xlane.f32.xlu0 %v2037_v34  ;;  %v2101_v47 = vsel %vm1805_vm10, %v2099_v46, 0.0  ;;  %v2061_v55 = vsel %vm1805_vm10, %v2059_v16, 0.0  ;;  %v2069_v58 = vsel %vm1805_vm10, %v2067_v57, 0.0  ;;  %v2075_v62 = vmul.f32 %v6271_v56, %v6331_v28 }
 0x7da   : > { %v2083_v7 = vmul.f32 %v6277_v61, %v6331_v28  ;;  %v2036_v41 = vmul.f32 %v6218_v13, %v6343_v40  ;;  %v2044_v18 = vmul.f32 %v6231_v20, %v6343_v40  ;;  %v2052_v2 = vmul.f32 %v6241_v26, %v6343_v40 }
 0x7db   : > { %v2077_v63 = vsel %vm1805_vm10, %v2075_v62, 0.0  ;;  %v2060_v10 = vmul.f32 %v6246_v0, %v6343_v40  ;;  %v2068_v43 = vmul.f32 %v6259_v42, %v6343_v40  ;;  %v2076_v34 = vmul.f32 %v6268_v49, %v6343_v40 }
 0x7dc   : > { %v2085_v15 = vsel %vm1805_vm10, %v2083_v7, 0.0  ;;  %v2040_v17 = vsel %vm1805_vm10, %v2036_v41, 0.0  ;;  %v2048_v22 = vsel %vm1805_vm10, %v2044_v18, 0.0  ;;  %v2056_v27 = vsel %vm1805_vm10, %v2052_v2, 0.0 }
 0x7dd   : > { %2094 = vadd.xlane.f32.xlu1 %v2093_v6  ;;  %2046 = vadd.xlane.f32.xlu0 %v2045_v45  ;;  %v2064_v30 = vsel %vm1805_vm10, %v2060_v10, 0.0  ;;  %v2072_v32 = vsel %vm1805_vm10, %v2068_v43, 0.0  ;;  %v2080_v11 = vsel %vm1805_vm10, %v2076_v34, 0.0  ;;  %v2084_v36 = vmul.f32 %v6274_v59, %v6343_v40 }
 0x7de   : > { %v2092_v45 = vmul.f32 %v6290_v21, %v6343_v40  ;;  %v2100_v16 = vmul.f32 %v6293_v24, %v6343_v40  ;;  %v5684_v57 = vmov 65535  }
 0x7df   : > { %v2088_v6 = vsel %vm1805_vm10, %v2084_v36, 0.0 }
 0x7e0   : > { %v2096_v46 = vsel %vm1805_vm10, %v2092_v45, 0.0 }
 0x7e1   : > { %2102 = vadd.xlane.f32.xlu1 %v2101_v47  ;;  %2062 = vadd.xlane.f32.xlu0 %v2061_v55  ;;  %v2104_v47 = vsel %vm1805_vm10, %v2100_v16, 0.0  ;;  %v5485_v55 = vld [vmem:[%s7248_s3] sm:$0x1f]  }
 0x7e5   : > { %2070 = vadd.xlane.f32.xlu0 %v2069_v58  ;;  %v2141_v58 = vsel %vm1008_vm3, 4294967295, %v5684_v57  ;;  %vm2110_vm3 = vcmask 15360  }
 0x7e6   : > { %v6396_v62 = vsel %vm993_vm2, %v2141_v58, 0  ;;  %vm2107_vm2 = vcmask 7168  }
 0x7e9   : > { %2078 = vadd.xlane.f32.xlu0 %v2077_v63  ;;  %v2144_v63 = vand.u32 %v5485_v55, %v6396_v62 }
 0x7eb   : > { %5070 = vmatpush3.bf16.msra.mxu1 %v2144_v63  ;;  %5094 = vmatpush3.bf16.msra.mxu0 %v2144_v63 }
 0x7ec   : > { %5075 = vmatprep.subr.bf16.mxu1 %v5670_v3  ;;  %5105 = vmatprep.subr.bf16.mxu0 %v5670_v3 }
 0x7ed   : > { %2086 = vadd.xlane.f32.xlu0 %v2085_v15 }
 0x7f1   : > { %2041 = vadd.xlane.f32.xlu0 %v2040_v17 }
 0x7f2   : > { %2187 = vrot.lane.b32.xlu1 %v6175_v19, %s7247_s16 }
 0x7f5   : > { %2049 = vadd.xlane.f32.xlu0 %v2048_v22 }
 0x7f9   : > { %2057 = vadd.xlane.f32.xlu0 %v2056_v27 }
 0x7fd   : > { %2065 = vadd.xlane.f32.xlu0 %v2064_v30 }
 0x801   : > { %2073 = vadd.xlane.f32.xlu0 %v2072_v32 }
 0x805   : > { %2081 = vadd.xlane.f32.xlu0 %v2080_v11 }
 0x809   : > { %2089 = vadd.xlane.f32.xlu0 %v2088_v6 }
 0x80d   : > { %2097 = vadd.xlane.f32.xlu0 %v2096_v46 }
 0x811   : > { %2105 = vadd.xlane.f32.xlu0 %v2104_v47 }
 0x827   : > { %2293 = vrot.lane.b32.xlu0 %v6175_v19, %s7188_s2  ;;  %s7189_s2 = smov 48  }
 0x862   : > { %v2039_v7 = vpop.xlane.xlu0 %2038  ;;  %v2055_v34 = vpop.xlane.xlu1 %2054 }
 0x866   : > { %v2047_v15 = vpop.xlane.xlu0 %2046  ;;  %v2095_v47 = vpop.xlane.xlu1 %2094 }
 0x867   : > { %v2108_v36 = vsel %vm2107_vm2, %v2039_v7, %v2047_v15 }
 0x868   : > { %v2111_v16 = vsel %vm2110_vm3, %v2108_v36, %v2055_v34 }
 0x86a   : > { %v2063_v41 = vpop.xlane.xlu0 %2062  ;;  %v2103_v36 = vpop.xlane.xlu1 %2102 }
 0x86b   : > { %v2114_v55 = vsel %vm2113_vm8, %v2111_v16, %v2063_v41 }
 0x86e   : > { %v2071_v17 = vpop.xlane.xlu0 %2070 }
 0x86f   : > { %v2117_v58 = vsel %vm2116_vm11, %v2114_v55, %v2071_v17 }
 0x872   : > { %v2079_v18 = vpop.xlane.xlu0 %2078 }
 0x873   : > { %v2120_v63 = vsel %vm2119_vm12, %v2117_v58, %v2079_v18 }
 0x876   : > { %v2087_v22 = vpop.xlane.xlu0 %2086 }
 0x877   : > { %v2123_v15 = vsel %vm2122_vm13, %v2120_v63, %v2087_v22 }
 0x878   : > { %v2126_v18 = vsel %vm7193_vm14, %v2123_v15, %v2095_v47 }
 0x87a   : > { %v2042_v2 = vpop.xlane.xlu0 %2041 }
 0x87e   : > { %v2050_v27 = vpop.xlane.xlu0 %2049 }
 0x87f   : > { %v2109_v7 = vsel %vm2107_vm2, %v2042_v2, %v2050_v27 }
 0x882   : > { %v2058_v10 = vpop.xlane.xlu0 %2057 }
 0x883   : > { %v2112_v34 = vsel %vm2110_vm3, %v2109_v7, %v2058_v10 }
 0x886   : > { %v2066_v30 = vpop.xlane.xlu0 %2065 }
 0x887   : > { %v2115_v41 = vsel %vm2113_vm8, %v2112_v34, %v2066_v30  ;;  %v2129_v30 = vsel %vm7192_vm6, %v2126_v18, %v2103_v36 }
 0x88a   : > { %v2074_v43 = vpop.xlane.xlu0 %2073  ;;  %v6403_v32 = vpop.f32.mrf.mxu0 }
 0x88b   : > { %2340 = vperm.xlu0 %5363, %v6403_v32   ;;  %2283 = vperm.xlu1 %5362, %v6403_v32  }
 0x88c   : > { %v5085_v11 = vpop.f32.mrf.mxu0 }
 0x88d   : > { %v2118_v11 = vsel %vm2116_vm11, %v2115_v41, %v2074_v43 }
 0x88e   : > { %v2082_v6 = vpop.xlane.xlu0 %2081  ;;  %v6408_v45 = vpop.f32.mrf.mxu0 }
 0x88f   : > { %5366 = vset.pattern.permute.xlu0 %v7198_v38  ;;  %2288 = vperm.xlu1 %5362, %v6408_v45   ;;  %v2121_v2 = vsel %vm2119_vm12, %v2118_v11, %v2082_v6 }
 0x890   : > { %2356 = vperm.xlu0 %5366, %v6408_v45   ;;  %v5086_v46 = vpop.f32.mrf.mxu0 }
 0x891   : > { %v2188_v46 = vpop.permute.xlu1 %2187 }
 0x892   : > { %v2090_v57 = vpop.xlane.xlu0 %2089 }
 0x893   : > { %5364 = vset.pattern.permute.xlu1 %v7184_v48  ;;  %v2124_v27 = vsel %vm2122_vm13, %v2121_v2, %v2090_v57 }
 0x894   : > { %5368 = vset.pattern.permute.xlu0 %v5679_v51  ;;  %2344 = vperm.xlu1 %5364, %v6408_v45  }
 0x895   : > { %2376 = vperm.xlu0 %5368, %v6403_v32  }
 0x896   : > { %v2098_v17 = vpop.xlane.xlu0 %2097 }
 0x897   : > { %v2127_v22 = vsel %vm7193_vm14, %v2124_v27, %v2098_v17 }
 0x898   : > { %5365 = vset.pattern.permute.xlu1 %v7198_v38 }
 0x899   : > { %5371 = vset.pattern.permute.xlu0 %v7186_v50  ;;  %2352 = vperm.xlu1 %5365, %v6403_v32  }
 0x89a   : > { %v2106_v10 = vpop.xlane.xlu0 %2105  ;;  %2392 = vperm.xlu0 %5371, %v6408_v45  }
 0x89b   : > { %v2130_v43 = vsel %vm7192_vm6, %v2127_v22, %v2106_v10 }
 0x89c   : > { %v2131_v6 = vpack.c.bf16 %v2130_v43, %v2129_v30 }
 0x89d   : > { %5367 = vset.pattern.permute.xlu1 %v5676_v5 }
 0x89e   : > { %5072 = vmatmul.mubr.msk.bf16.vlgmr.msra.gmra.mxu1 %vm7191_vm5, %v2131_v6  ;;  %5373 = vset.pattern.permute.xlu0 %v7199_v53  ;;  %v2294_v16 = vpop.permute.xlu0 %2293 }
 0x89f   : > { %5076 = vmatpush3.bf16.msra.mxu1 %v2188_v46  ;;  %2364 = vperm.xlu1 %5367, %v6403_v32   ;;  %v2296_v47 = vsel %vm1805_vm10, %v2294_v16, 0 }
 0x8a0   : > { %2412 = vperm.xlu0 %5373, %v6403_v32   ;;  %5077 = vmatprep.mubr.msk.bf16.mxu1 %vm5674_vm9, %v5670_v3 }
 0x8a1   : > { %5087 = vmatprep.subr.bf16.mxu1 %v5670_v3 }
 0x8a3   : > { %2368 = vperm.xlu1 %5367, %v6408_v45  }
 0x8a4   : > { %5376 = vset.pattern.permute.xlu0 %v7182_v54 }
 0x8a5   : > { %2428 = vperm.xlu0 %5376, %v6408_v45  }
 0x8a6   : > { %5078 = vmatmul.mubr.msk.bf16.vlgmr.msra.gmra.mxu1 %vm1805_vm10, %v2034_v44 }
 0x8a7   : > { %5088 = vmatpush3.bf16.xpose.msra.mxu1 %v2296_v47  ;;  %5369 = vset.pattern.permute.xlu1 %v5679_v51 }
 0x8a8   : > { %2380 = vperm.xlu1 %5369, %v6408_v45   ;;  %5089 = vmatprep.mubr.msk.bf16.mxu1 %vm5674_vm9, %v5670_v3 }
 0x8a9   : > { %5099 = vmatprep.subr.bf16.mxu1 %v5670_v3  ;;  %5397 = vset.pattern.permute.xlu0 %v5669_v1 }
 0x8ac   : > { %5370 = vset.pattern.permute.xlu1 %v7186_v50 }
 0x8ad   : > { %2388 = vperm.xlu1 %5370, %v6403_v32  }
 0x8ae   : > { %5090 = vmatmul.mubr.msk.bf16.vlgmr.msra.gmra.mxu1 %vm1805_vm10, %v6325_v8 }
 0x8af   : > { %5101 = vmatprep.mubr.msk.bf16.mxu1 %vm5674_vm9, %v5670_v3 }
 0x8b1   : > { %5372 = vset.pattern.permute.xlu1 %v7201_v52 }
 0x8b2   : > { %2400 = vperm.xlu1 %5372, %v6403_v32  }
 0x8b6   : > { %2404 = vperm.xlu1 %5372, %v6408_v45  }
 0x8ba   : > { %5374 = vset.pattern.permute.xlu1 %v7199_v53 }
 0x8bb   : > { %2416 = vperm.xlu1 %5374, %v6408_v45  }
 0x8bf   : > { %5375 = vset.pattern.permute.xlu1 %v7182_v54 }
 0x8c0   : > { %2424 = vperm.xlu1 %5375, %v6403_v32  }
 0x8c4   : > { %5398 = vset.pattern.permute.xlu1 %v7184_v48 }
 0x906   : > { %v2284_v8 = vpop.permute.xlu1 %2283  ;;  %v2341_v7 = vpop.permute.xlu0 %2340 }
 0x907   : > { %v2291_v30 = vmul.f32 %v6215_v37, %v2284_v8  ;;  %v2347_v46 = vmul.f32 %v6221_v14, %v2341_v7 }
 0x90a   : > { %v2289_v28 = vpop.permute.xlu1 %2288 }
 0x90b   : > { %v2357_v45 = vpop.permute.xlu0 %2356 }
 0x90c   : > { %v2360_v50 = vmul.f32 %v6241_v26, %v2357_v45 }
 0x90f   : > { %v2345_v40 = vpop.permute.xlu1 %2344 }
 0x910   : > { %v2377_v22 = vpop.permute.xlu0 %2376 }
 0x911   : > { %v2383_v7 = vmul.f32 %v6254_v35, %v2377_v22 }
 0x914   : > { %v2353_v44 = vpop.permute.xlu1 %2352 }
 0x91a   : > { %v2365_v55 = vpop.permute.xlu1 %2364 }
 0x91e   : > { %v2369_v57 = vpop.permute.xlu1 %2368 }
 0x923   : > { %v2381_v58 = vpop.permute.xlu1 %2380 }
 0x928   : > { %v2389_v34 = vpop.permute.xlu1 %2388 }
 0x92d   : > { %v2401_v32 = vpop.permute.xlu1 %2400 }
 0x931   : > { %v2405_v43 = vpop.permute.xlu1 %2404 }
 0x936   : > { %v2417_v8 = vpop.permute.xlu1 %2416 }
 0x95e   : > { %v2180_v63 = vpop.f32.mrf.mxu1 }
 0x960   : > { %v5073_v15 = vpop.f32.mrf.mxu1 }
 0x961   : > { %v2292_v15 = vmul.f32 %v6218_v13, %v2289_v28  ;;  %v2372_v28 = vmul.f32 %v6246_v0, %v2369_v57  ;;  %v2408_v57 = vmul.f32 %v6274_v59, %v2405_v43 }
 0x962   : > { %v2183_v41 = vpop.f32.mrf.mxu1 }
 0x964   : > { %v5074_v17 = vpop.f32.mrf.mxu1 }
 0x966   : > { %v2227_v11 = vpop.f32.mrf.mxu1 }
 0x967   : > { %v6472_v36 = vadd.f32 %v2227_v11, %v2180_v63  ;;  %v2359_v63 = vmul.f32 %v6235_v23, %v2353_v44  ;;  %v2393_v11 = vpop.permute.xlu0 %2392  ;;  %v2395_v44 = vmul.f32 %v6271_v56, %v2389_v34 }
 0x968   : > { %v5079_v18 = vpop.f32.mrf.mxu1  ;;  %v2396_v45 = vmul.f32 %v6268_v49, %v2393_v11 }
 0x96a   : > { %v2230_v2 = vpop.f32.mrf.mxu1 }
 0x96b   : > { %v6474_v27 = vadd.f32 %v2230_v2, %v2183_v41  ;;  %v2348_v41 = vmul.f32 %v6231_v20, %v2345_v40  ;;  %v2371_v2 = vmul.f32 %v6249_v31, %v2365_v55  ;;  %v2384_v40 = vmul.f32 %v6259_v42, %v2381_v58 }
 0x96c   : > { %v5080_v10 = vpop.f32.mrf.mxu1  ;;  %v2407_v55 = vmul.f32 %v6277_v61, %v2401_v32  ;;  %v2420_v58 = vmul.f32 %v6290_v21, %v2417_v8 }
 0x96e   : > { %v2332_v6 = vpop.f32.mrf.mxu1 }
 0x96f   : > { %v2333_v16 = vadd.f32 %v2332_v6, %v2291_v30 }
 0x970   : > { %v5091_v47 = vpop.f32.mrf.mxu1 }
 0x971   : > { %v2349_v17 = vadd.f32 %v2347_v46, %v2333_v16  ;;  %v2413_v47 = vpop.permute.xlu0 %2412 }
 0x972   : > { %v2335_v18 = vpop.f32.mrf.mxu1  ;;  %v2419_v22 = vmul.f32 %v6297_v12, %v2413_v47 }
 0x973   : > { %v2361_v10 = vadd.f32 %v2359_v63, %v2349_v17  ;;  %v2336_v54 = vadd.f32 %v2335_v18, %v2292_v15 }
 0x974   : > { %v5092_v48 = vpop.f32.mrf.mxu1 }
 0x975   : > { %v2373_v30 = vadd.f32 %v2371_v2, %v2361_v10  ;;  %v2350_v6 = vadd.f32 %v2348_v41, %v2336_v54  ;;  %v2425_v48 = vpop.permute.xlu1 %2424  ;;  %v2429_v41 = vpop.permute.xlu0 %2428 }
 0x976   : > { %v2431_v34 = vmul.f32 %v6305_v33, %v2425_v48  ;;  %v2432_v10 = vmul.f32 %v6293_v24, %v2429_v41 }
 0x977   : > { %v2385_v46 = vadd.f32 %v2383_v7, %v2373_v30  ;;  %v2362_v16 = vadd.f32 %v2360_v50, %v2350_v6 }
 0x979   : > { %v2374_v15 = vadd.f32 %v2372_v28, %v2362_v16  ;;  %v2397_v63 = vadd.f32 %v2395_v44, %v2385_v46 }
 0x97b   : > { %v2386_v17 = vadd.f32 %v2384_v40, %v2374_v15  ;;  %v2409_v54 = vadd.f32 %v2407_v55, %v2397_v63 }
 0x97d   : > { %v2421_v18 = vadd.f32 %v2419_v22, %v2409_v54  ;;  %v2398_v50 = vadd.f32 %v2396_v45, %v2386_v17 }
 0x97f   : > { %v2433_v2 = vadd.f32 %v2431_v34, %v2421_v18  ;;  %v2410_v32 = vadd.f32 %v2408_v57, %v2398_v50 }
 0x981   : > { %v2435_v11 = vsel %vm2008_vm7, %v2433_v2, -10000.0  ;;  %v2422_v7 = vadd.f32 %v2420_v58, %v2410_v32 }
 0x982   : > { %v2437_v30 = vsel %vm1805_vm10, %v2435_v11, -inf }
 0x983   : > { %2438 = vmax.xlane.f32.xlu1 %v2437_v30  ;;  %v2434_v6 = vadd.f32 %v2432_v10, %v2422_v7 }
 0x985   : > { %v2436_v43 = vsel %vm2009_vm15, %v2434_v6, -10000.0 }
 0x986   : > { %v2440_v28 = vsel %vm1805_vm10, %v2436_v43, -inf }
 0x987   : > { %2441 = vmax.xlane.f32.xlu0 %v2440_v28 }
 0xa0c   : > { %v2439_v44 = vpop.xlane.xlu1 %2438 }
 0xa0d   : > { %v2443_v8 = vsub.f32 %v2435_v11, %v2439_v44 }
 0xa0f   : > { %v2445_v46 = vmul.f32 1.442695, %v2443_v8 }
 0xa10   : > { %v2442_v16 = vpop.xlane.xlu0 %2441 }
 0xa11   : > { %5538 = vpow2.f32 %v2445_v46  ;;  %v2444_v47 = vsub.f32 %v2436_v43, %v2442_v16 }
 0xa13   : > { %v2447_v40 = vmul.f32 1.442695, %v2444_v47 }
 0xa15   : > { %5540 = vpow2.f32 %v2447_v40 }
 0xa1e   : > { %v5539_v55 = vpop.eup %5538 }
 0xa1f   : > { %v2449_v15 = vsel %vm1805_vm10, %v5539_v55, 0.0 }
 0xa20   : > { %2450 = vadd.xlane.f32.xlu1 %v2449_v15 }
 0xa22   : > { %v5541_v63 = vpop.eup %5540 }
 0xa23   : > { %v2452_v48 = vsel %vm1805_vm10, %v5541_v63, 0.0 }
 0xa24   : > { %2453 = vadd.xlane.f32.xlu0 %v2452_v48 }
 0xaa9   : > { %v2451_v45 = vpop.xlane.xlu1 %2450 }
 0xaaa   : > { %5542 = vrcp.f32 %v2451_v45 }
 0xaad   : > { %v2454_v22 = vpop.xlane.xlu0 %2453 }
 0xaae   : > { %5544 = vrcp.f32 %v2454_v22 }
 0xab7   : > { %v5543_v17 = vpop.eup %5542 }
 0xab8   : > { %v6502_v54 = vmul.f32 %v5543_v17, %v5539_v55 }
 0xaba   : > { %v2460_v57 = vmul.f32 %v6215_v37, %v6502_v54  ;;  %v2468_v41 = vmul.f32 %v6221_v14, %v6502_v54  ;;  %v2476_v11 = vmul.f32 %v6235_v23, %v6502_v54  ;;  %v2484_v28 = vmul.f32 %v6249_v31, %v6502_v54 }
 0xabb   : > { %v5545_v34 = vpop.eup %5544  ;;  %v2492_v16 = vmul.f32 %v6254_v35, %v6502_v54  ;;  %v2500_v15 = vmul.f32 %v6271_v56, %v6502_v54  ;;  %v2508_v22 = vmul.f32 %v6277_v61, %v6502_v54 }
 0xabc   : > { %v6506_v18 = vmul.f32 %v5545_v34, %v5541_v63  ;;  %v2462_v50 = vsel %vm1805_vm10, %v2460_v57, 0.0  ;;  %v2470_v32 = vsel %vm1805_vm10, %v2468_v41, 0.0  ;;  %v2478_v6 = vsel %vm1805_vm10, %v2476_v11, 0.0 }
 0xabd   : > { %2463 = vadd.xlane.f32.xlu1 %v2462_v50  ;;  %v2486_v8 = vsel %vm1805_vm10, %v2484_v28, 0.0  ;;  %v2494_v40 = vsel %vm1805_vm10, %v2492_v16, 0.0  ;;  %v2502_v48 = vsel %vm1805_vm10, %v2500_v15, 0.0  ;;  %v2510_v57 = vsel %vm1805_vm10, %v2508_v22, 0.0 }
 0xabe   : > { %v2461_v58 = vmul.f32 %v6218_v13, %v6506_v18  ;;  %v2469_v10 = vmul.f32 %v6231_v20, %v6506_v18  ;;  %v2459_v7 = vpack.c.bf16 %v6506_v18, %v6502_v54  ;;  %v2477_v43 = vmul.f32 %v6241_v26, %v6506_v18 }
 0xabf   : > { %v2485_v46 = vmul.f32 %v6246_v0, %v6506_v18  ;;  %v2493_v55 = vmul.f32 %v6259_v42, %v6506_v18  ;;  %v2501_v45 = vmul.f32 %v6268_v49, %v6506_v18  ;;  %v2509_v34 = vmul.f32 %v6274_v59, %v6506_v18 }
 0xac0   : > { %v2465_v2 = vsel %vm1805_vm10, %v2461_v58, 0.0  ;;  %v2473_v30 = vsel %vm1805_vm10, %v2469_v10, 0.0  ;;  %v2481_v44 = vsel %vm1805_vm10, %v2477_v43, 0.0  ;;  %v2516_v50 = vmul.f32 %v6297_v12, %v6502_v54 }
 0xac1   : > { %2466 = vadd.xlane.f32.xlu0 %v2465_v2  ;;  %2471 = vadd.xlane.f32.xlu1 %v2470_v32  ;;  %v2489_v47 = vsel %vm1805_vm10, %v2485_v46, 0.0  ;;  %v2497_v63 = vsel %vm1805_vm10, %v2493_v55, 0.0  ;;  %v2505_v17 = vsel %vm1805_vm10, %v2501_v45, 0.0  ;;  %v2513_v41 = vsel %vm1805_vm10, %v2509_v34, 0.0 }
 0xac2   : > { %v2518_v58 = vsel %vm1805_vm10, %v2516_v50, 0.0  ;;  %v2517_v2 = vmul.f32 %v6290_v21, %v6506_v18  ;;  %v2524_v32 = vmul.f32 %v6305_v33, %v6502_v54 }
 0xac4   : > { %v2521_v10 = vsel %vm1805_vm10, %v2517_v2, 0.0  ;;  %v2526_v11 = vsel %vm1805_vm10, %v2524_v32, 0.0 }
 0xac5   : > { %2474 = vadd.xlane.f32.xlu0 %v2473_v30  ;;  %2479 = vadd.xlane.f32.xlu1 %v2478_v6  ;;  %v2525_v30 = vmul.f32 %v6293_v24, %v6506_v18 }
 0xac7   : > { %v2529_v6 = vsel %vm1805_vm10, %v2525_v30, 0.0 }
 0xac9   : > { %2482 = vadd.xlane.f32.xlu0 %v2481_v44  ;;  %2487 = vadd.xlane.f32.xlu1 %v2486_v8 }
 0xacd   : > { %2490 = vadd.xlane.f32.xlu0 %v2489_v47  ;;  %2495 = vadd.xlane.f32.xlu1 %v2494_v40 }
 0xad1   : > { %2498 = vadd.xlane.f32.xlu0 %v2497_v63  ;;  %2503 = vadd.xlane.f32.xlu1 %v2502_v48 }
 0xad5   : > { %2506 = vadd.xlane.f32.xlu0 %v2505_v17  ;;  %2511 = vadd.xlane.f32.xlu1 %v2510_v57 }
 0xad9   : > { %2514 = vadd.xlane.f32.xlu0 %v2513_v41  ;;  %2519 = vadd.xlane.f32.xlu1 %v2518_v58 }
 0xadd   : > { %2522 = vadd.xlane.f32.xlu0 %v2521_v10  ;;  %2527 = vadd.xlane.f32.xlu1 %v2526_v11 }
 0xae1   : > { %2530 = vadd.xlane.f32.xlu0 %v2529_v6 }
 0xaee   : > { %2593 = vrot.lane.b32.xlu1 %v6175_v19, %s7189_s2  ;;  %s7249_s2 = sld [smem:[#allocation18_spill]] }
 0xb46   : > { %v2464_v43 = vpop.xlane.xlu1 %2463 }
 0xb4a   : > { %v2467_v28 = vpop.xlane.xlu0 %2466  ;;  %v2472_v44 = vpop.xlane.xlu1 %2471 }
 0xb4b   : > { %v2532_v57 = vsel %vm2107_vm2, %v2464_v43, %v2472_v44 }
 0xb4e   : > { %v2475_v8 = vpop.xlane.xlu0 %2474  ;;  %v2480_v46 = vpop.xlane.xlu1 %2479 }
 0xb4f   : > { %v2533_v34 = vsel %vm2107_vm2, %v2467_v28, %v2475_v8  ;;  %v2534_v19 = vsel %vm2110_vm3, %v2532_v57, %v2480_v46 }
 0xb52   : > { %v2483_v16 = vpop.xlane.xlu0 %2482  ;;  %v2488_v47 = vpop.xlane.xlu1 %2487 }
 0xb53   : > { %v2535_v50 = vsel %vm2110_vm3, %v2533_v34, %v2483_v16  ;;  %v2536_v41 = vsel %vm2113_vm8, %v2534_v19, %v2488_v47 }
 0xb56   : > { %v2491_v40 = vpop.xlane.xlu0 %2490  ;;  %v2496_v55 = vpop.xlane.xlu1 %2495 }
 0xb57   : > { %v2537_v58 = vsel %vm2113_vm8, %v2535_v50, %v2491_v40  ;;  %v2538_v10 = vsel %vm2116_vm11, %v2536_v41, %v2496_v55 }
 0xb5a   : > { %v2499_v15 = vpop.xlane.xlu0 %2498  ;;  %v2504_v63 = vpop.xlane.xlu1 %2503 }
 0xb5b   : > { %v2539_v11 = vsel %vm2116_vm11, %v2537_v58, %v2499_v15  ;;  %v2540_v30 = vsel %vm2119_vm12, %v2538_v10, %v2504_v63  ;;  %v5486_v15 = vld [vmem:[%s7249_s2 + $0x8] sm:$0xff]   ;;  %v5487_v63 = vld [vmem:[%s7249_s2] sm:$0xff]  }
 0xb5e   : > { %v2507_v48 = vpop.xlane.xlu0 %2506  ;;  %v2512_v45 = vpop.xlane.xlu1 %2511 }
 0xb5f   : > { %v2541_v6 = vsel %vm2119_vm12, %v2539_v11, %v2507_v48  ;;  %v2542_v43 = vsel %vm2122_vm13, %v2540_v30, %v2512_v45  ;;  %v4853_v30 = vld [vmem:[%s7250_s5] ss:$0 sm:$0xff] }
 0xb62   : > { %v2515_v22 = vpop.xlane.xlu0 %2514  ;;  %v2520_v17 = vpop.xlane.xlu1 %2519 }
 0xb63   : > { %v2543_v28 = vsel %vm2122_vm13, %v2541_v6, %v2515_v22  ;;  %v2544_v44 = vsel %vm7193_vm14, %v2542_v43, %v2520_v17 }
 0xb66   : > { %v2523_v2 = vpop.xlane.xlu0 %2522  ;;  %v2528_v32 = vpop.xlane.xlu1 %2527 }
 0xb67   : > { %v2545_v8 = vsel %vm7193_vm14, %v2543_v28, %v2523_v2  ;;  %v2546_v47 = vsel %vm7192_vm6, %v2544_v44, %v2528_v32 }
 0xb6a   : > { %v2531_v46 = vpop.xlane.xlu0 %2530  ;;  %v2594_v16 = vpop.permute.xlu1 %2593 }
 0xb6b   : > { %v2547_v40 = vsel %vm7192_vm6, %v2545_v8, %v2531_v46  ;;  %5100 = vmatpush3.bf16.msra.mxu1 %v2594_v16 }
 0xb6c   : > { %v2548_v55 = vpack.c.bf16 %v2547_v40, %v2546_v47  ;;  %5113 = vmatprep.subr.bf16.mxu1 %v5670_v3 }
 0xb6e   : > { %5096 = vmatmul.mubr.msk.bf16.vlgmr.msra.gmra.mxu0 %vm7191_vm5, %v2548_v55  ;;  %5102 = vmatmul.mubr.msk.bf16.vlgmr.msra.gmra.mxu1 %vm1805_vm10, %v2459_v7  ;;  %vm7255_vm5 = vcmask 523264  }
 0xb6f   : > { %5109 = vmatprep.mubr.msk.bf16.mxu0 %vm5674_vm9, %v5670_v3  ;;  %5125 = vmatprep.mubr.msk.bf16.mxu1 %vm5674_vm9, %v5670_v3  ;;  %vm7256_vm6 = vmmov %vm7255_vm5 }
 0xb70   : > { %5106 = vmatpush3.bf16.msra.mxu0 %v5486_v15  ;;  %vm7257_vm14 = vmmov %vm7255_vm5 }
 0xb71   : > { %5107 = vmatprep.subr.bf16.mxu0 %v5670_v3 }
 0xb74   : > { %5108 = vmatpush3.bf16.msra.mxu0 %v5487_v63 }
 0xb75   : > { %3093 = vmatprep.subr.bf16.mxu0 %v5669_v1 }
 0xc2e   : > { %v2586_v48 = vpop.f32.mrf.mxu0  ;;  %v2633_v45 = vpop.f32.mrf.mxu1 }
 0xc2f   : > { %v2634_v7 = vadd.f32 %v2633_v45, %v2586_v48 }
 0xc30   : > { %v5097_v22 = vpop.f32.mrf.mxu0  ;;  %v5103_v17 = vpop.f32.mrf.mxu1 }
 0xc32   : > { %v2589_v54 = vpop.f32.mrf.mxu0  ;;  %v2636_v18 = vpop.f32.mrf.mxu1 }
 0xc33   : > { %v2637_v57 = vadd.f32 %v2636_v18, %v2589_v54 }
 0xc34   : > { %v5098_v34 = vpop.f32.mrf.mxu0  ;;  %v5104_v19 = vpop.f32.mrf.mxu1 }
 0xc35   : > { %v5377_v50 = vpack.i.bf16 %v2637_v57, %v2634_v7 }
 0xc37   : > { %5378 = vrot.lane.b32.xlu0 %v5377_v50, %s7190_s6  ;;  %s7251_s6 = sld [smem:[#allocation24_spill]] }
 0xca9   : > { %v5379_v41 = vpop.permute.xlu0 %5378 }
 0xcaa   : > { %v5381_v58 = vunpack.i.h.bf16 %v5379_v41  ;;  %v5380_v2 = vunpack.i.l.bf16 %v5379_v41 }
 0xcac   : > { %v2649_v32 = vsel %vm1805_vm10, %v6474_v27, %v5381_v58  ;;  %v2648_v10 = vsel %vm1805_vm10, %v6472_v36, %v5380_v2  ;;  %v4857_v58 = vld [vmem:[%s7252_s8] ss:$0 sm:$0xff] }
 0xcad   : > { %v2650_v11 = vpack.c.bf16 %v2649_v32, %v2648_v10  ;;  %v4858_v32 = vld [vmem:[%s7253_s9] ss:$0 sm:$0xff] }
 0xcae   : > { %v5489_v10 = vld [vmem:[%s7251_s6 + $0x20] sm:$0xff]  }
 0xcaf   : > { %5110 = vmatmul.mubr.msk.bf16.vlgmr.msra.gmra.mxu0 %vm1017_vm4, %v2650_v11 }
 0xd6f   : > { %v2711_v6 = vpop.f32.mrf.mxu0 }
 0xd70   : > { %v2712_v43 = vadd.f32 %v4853_v30, %v2711_v6 }
 0xd71   : > { %v5111_v28 = vpop.f32.mrf.mxu0 }
 0xd72   : > { %v2718_v44 = vadd.f32 %v2712_v43, %v6159_v9 }
 0xd73   : > { %v2714_v8 = vpop.f32.mrf.mxu0 }
 0xd74   : > { %v2715_v46 = vadd.f32 %v4853_v30, %v2714_v8  ;;  %v2722_v16 = vsel %vm1017_vm4, %v2718_v44, 0.0 }
 0xd75   : > { %2723 = vadd.xlane.f32.xlu1 %v2722_v16  ;;  %v5112_v47 = vpop.f32.mrf.mxu0 }
 0xd76   : > { %v2719_v27 = vadd.f32 %v2715_v46, %v6162_v29  ;;  %v5488_v29 = vld [vmem:[%s7251_s6 + $0x28] sm:$0xff]  }
 0xd77   : > { %5114 = vmatpush3.bf16.msra.mxu1 %v5488_v29 }
 0xd78   : > { %v2725_v36 = vsel %vm1017_vm4, %v2719_v27, 0.0  ;;  %5115 = vmatprep.subr.bf16.mxu1 %v5670_v3 }
 0xd79   : > { %2726 = vadd.xlane.f32.xlu0 %v2725_v36 }
 0xd7b   : > { %5116 = vmatpush3.bf16.msra.mxu1 %v5489_v10 }
 0xd7c   : > { %5117 = vmatprep.subr.bf16.mxu1 %v5670_v3 }
 0xdfe   : > { %v2724_v40 = vpop.xlane.xlu1 %2723 }
 0xdff   : > { %v2729_v55 = vmul.f32 0.03125, %v2724_v40 }
 0xe01   : > { %v2731_v15 = vsub.f32 %v2718_v44, %v2729_v55  ;;  %v5490_v44 = vld [vmem:[%s7251_s6 + $0x18] sm:$0xff]  }
 0xe02   : > { %v2727_v63 = vpop.xlane.xlu0 %2726  ;;  %5118 = vmatpush3.bf16.msra.mxu1 %v5490_v44 }
 0xe03   : > { %v2730_v48 = vmul.f32 0.03125, %v2727_v63  ;;  %v2733_v45 = vmul.f32 %v2731_v15, %v2731_v15  ;;  %5119 = vmatprep.subr.bf16.mxu1 %v5670_v3  ;;  %v5491_v63 = vld [vmem:[%s7251_s6 + $0x10] sm:$0xff]  }
 0xe05   : > { %v2732_v22 = vsub.f32 %v2719_v27, %v2730_v48  ;;  %v2735_v9 = vsel %vm1017_vm4, %v2733_v45, 0.0 }
 0xe06   : > { %2736 = vadd.xlane.f32.xlu1 %v2735_v9  ;;  %5120 = vmatpush3.bf16.msra.mxu1 %v5491_v63  ;;  %v6631_v9 = vrot.slane %v5670_v3, 2 }
 0xe07   : > { %v2734_v17 = vmul.f32 %v2732_v22, %v2732_v22  ;;  %5121 = vmatprep.subr.bf16.mxu1 %v5670_v3 }
 0xe09   : > { %v2738_v54 = vsel %vm1017_vm4, %v2734_v17, 0.0  ;;  %v5493_v17 = vld [vmem:[%s7251_s6] sm:$0xff]  }
 0xe0a   : > { %2739 = vadd.xlane.f32.xlu0 %v2738_v54 }
 0xe8f   : > { %v2737_v18 = vpop.xlane.xlu1 %2736 }
 0xe90   : > { %v2741_v7 = vmul.f32 0.03125, %v2737_v18 }
 0xe92   : > { %v2743_v57 = vadd.f32 0.0001, %v2741_v7 }
 0xe93   : > { %v2740_v34 = vpop.xlane.xlu0 %2739 }
 0xe94   : > { %5546 = vrsqrt.f32 %v2743_v57  ;;  %v2742_v19 = vmul.f32 0.03125, %v2740_v34 }
 0xe96   : > { %v2744_v50 = vadd.f32 0.0001, %v2742_v19 }
 0xe98   : > { %5548 = vrsqrt.f32 %v2744_v50 }
 0xea1   : > { %v5547_v41 = vpop.eup %5546 }
 0xea2   : > { %v2747_v2 = vmul.f32 %v5547_v41, %v2731_v15 }
 0xea4   : > { %v2755_v11 = vmul.f32 %v4857_v58, %v2747_v2 }
 0xea5   : > { %v5549_v30 = vpop.eup %5548 }
 0xea6   : > { %v2748_v6 = vmul.f32 %v5549_v30, %v2732_v22  ;;  %v6612_v43 = vadd.f32 %v4858_v32, %v2755_v11  ;;  %v5492_v22 = vld [vmem:[%s7251_s6 + $0x8] sm:$0xff]  }
 0xea7   : > { %5122 = vmatpush3.bf16.msra.mxu1 %v5492_v22  ;;  %v5495_v22 = vld [vmem:[%s7258_s17 + $0x30] sm:$0xff]  }
 0xea8   : > { %v2756_v28 = vmul.f32 %v4857_v58, %v2748_v6  ;;  %v2765_v46 = vmul.f32 %v6612_v43, %v6151_v25  ;;  %5123 = vmatprep.subr.bf16.mxu1 %v5670_v3 }
 0xeaa   : > { %v6616_v8 = vadd.f32 %v4858_v32, %v2756_v28  ;;  %v2782_v27 = vrot.slane %v2765_v46, 1  ;;  %v2794_v55 = vrot.slane %v2765_v46, 2 }
 0xeab   : > { %5124 = vmatpush3.bf16.msra.mxu1 %v5493_v17  ;;  %v5496_v17 = vld [vmem:[%s7258_s17 + $0x28] sm:$0xff]  }
 0xeac   : > { %v2766_v16 = vmul.f32 %v6616_v8, %v6153_v4  ;;  %5129 = vmatprep.subr.bf16.mxu1 %v5670_v3 }
 0xeae   : > { %v2783_v47 = vrot.slane %v2766_v16, 1  ;;  %v2795_v36 = vrot.slane %v2766_v16, 2 }
 0xeb0   : > { %2789 = vrot.lane.b32.xlu0 %v2783_v47, %s7254_s14  ;;  %v2784_v40 = vsel %vm7196_vm1, %v2782_v27, %v2783_v47  ;;  %v2796_v48 = vsel %vm7195_vm0, %v2794_v55, %v2795_v36  ;;  %v2798_v54 = vsel %vm7195_vm0, %v2795_v36, %v6631_v9 }
 0xeb1   : > { %v5382_v15 = vpack.i.bf16 %v2784_v40, %v2782_v27  ;;  %v5387_v45 = vpack.i.bf16 %v2796_v48, %v2794_v55 }
 0xeb3   : > { %5383 = vrot.lane.b32.xlu1 %v5382_v15, %s7254_s14 }
 0xeb7   : > { %5388 = vrot.lane.b32.xlu1 %v5387_v45, %s7247_s16  ;;  %v5494_v45 = vld [vmem:[%s7258_s17 + $0x38] sm:$0xff]  }
 0xeb8   : > { %3094 = vmatpush1.bf16.msra.mxu0 %v5494_v45 }
 0xeb9   : > { %3095 = vmatprep.subr.bf16.mxu0 %v5669_v1 }
 0xebb   : > { %2803 = vrot.lane.b32.xlu1 %v2798_v54, %s7247_s16  ;;  %v5497_v54 = vld [vmem:[%s7258_s17 + $0x20] sm:$0xff]  }
 0xebc   : > { %3096 = vmatpush1.bf16.msra.mxu0 %v5495_v22 }
 0xebd   : > { %3097 = vmatprep.subr.bf16.mxu0 %v5669_v1 }
 0xec0   : > { %3098 = vmatpush1.bf16.msra.mxu0 %v5496_v17 }
 0xec1   : > { %3099 = vmatprep.subr.bf16.mxu0 %v5669_v1 }
 0xec4   : > { %3100 = vmatpush1.bf16.msra.mxu0 %v5497_v54 }
 0xec5   : > { %3101 = vmatprep.subr.bf16.mxu0 %v5669_v1 }
 0xf22   : > { %v2790_v34 = vpop.permute.xlu0 %2789 }
 0xf23   : > { %v2810_v10 = vsel %vm1017_vm4, %v2766_v16, %v2790_v34  ;;  %v4859_v34 = vld [vmem:[%s7260_s19] ss:$0 sm:$0xff] }
 0xf25   : > { %v5384_v29 = vpop.permute.xlu1 %5383 }
 0xf26   : > { %v5386_v18 = vunpack.i.h.bf16 %v5384_v29  ;;  %v5385_v7 = vunpack.i.l.bf16 %v5384_v29  ;;  %v5498_v29 = vld [vmem:[%s7258_s17 + $0x18] sm:$0xff]  }
 0xf27   : > { %3102 = vmatpush1.bf16.msra.mxu0 %v5498_v29 }
 0xf28   : > { %v2809_v41 = vsel %vm1017_vm4, %v2765_v46, %v5386_v18  ;;  %v2808_v58 = vsel %vm1017_vm4, 0.0, %v5385_v7  ;;  %v5499_v18 = vld [vmem:[%s7258_s17 + $0x10] sm:$0xff]   ;;  %3103 = vmatprep.subr.bf16.mxu0 %v5669_v1  ;;  %v5500_v7 = vld [vmem:[%s7258_s17 + $0x8] sm:$0xff]  }
 0xf29   : > { %v5389_v57 = vpop.permute.xlu1 %5388 }
 0xf2a   : > { %v5391_v19 = vunpack.i.h.bf16 %v5389_v57  ;;  %v5390_v50 = vunpack.i.l.bf16 %v5389_v57  ;;  %v5501_v57 = vld [vmem:[%s7258_s17] sm:$0xff]  }
 0xf2b   : > { %3104 = vmatpush1.bf16.msra.mxu0 %v5499_v18  ;;  %v5505_v18 = vld [vmem:[%s7258_s17 + $0x40] sm:$0xff]  }
 0xf2c   : > { %v2811_v2 = vsel %vm7255_vm5, %v2808_v58, %v5390_v50  ;;  %v2812_v32 = vsel %vm7256_vm6, %v2809_v41, %v5391_v19  ;;  %vm7203_vm5 = vsmask.f32 4352  ;;  %vm7259_vm6 = vcmask 785408   ;;  %3105 = vmatprep.subr.bf16.mxu0 %v5669_v1 }
 0xf2d   : > { %v2814_v11 = vpack.c.bf16 %v2812_v32, %v2811_v2  ;;  %v2804_v30 = vpop.permute.xlu1 %2803 }
 0xf2e   : > { %v2813_v6 = vsel %vm7257_vm14, %v2810_v10, %v2804_v30 }
 0xf2f   : > { %v2824_v28 = vshrl.u32 %v2814_v11, 16  ;;  %v2827_v44 = vshll.u32 %v2814_v11, 16  ;;  %v2815_v47 = vpack.c.bf16 %v2813_v6, %v2813_v6  ;;  %3106 = vmatpush1.bf16.msra.mxu0 %v5500_v7  ;;  %v5502_v11 = vld [vmem:[%s7258_s17 + $0x58] sm:$0xff]  }
 0xf30   : > { %3107 = vmatprep.subr.bf16.mxu0 %v5669_v1 }
 0xf31   : > { %v2826_v27 = vrot.slane %v2824_v28, 3  ;;  %v2829_v36 = vrot.slane %v2827_v44, 4  ;;  %v2832_v46 = vshrl.u32 %v2815_v47, 16  ;;  %v2835_v40 = vshll.u32 %v2815_v47, 16  ;;  %v5503_v44 = vld [vmem:[%s7258_s17 + $0x50] sm:$0xff]  }
 0xf33   : > { %v2834_v55 = vrot.slane %v2832_v46, 3  ;;  %v2837_v15 = vrot.slane %v2835_v40, 4  ;;  %v2830_v16 = vor.u32 %v2829_v36, %v2826_v27  ;;  %3108 = vmatpush1.bf16.msra.mxu0 %v5501_v57  ;;  %v5504_v40 = vld [vmem:[%s7258_s17 + $0x48] sm:$0xff]  }
 0xf34   : > { %3117 = vmatprep.subr.bf16.mxu0 %v5669_v1 }
 0xf35   : > { %v2838_v63 = vor.u32 %v2837_v15, %v2834_v55 }
 0xf37   : > { %v2839_v48 = vsel %vm7203_vm5, %v2830_v16, %v2838_v63  ;;  %3118 = vmatpush2.bf16.msra.mxu0 %v5502_v11 }
 0xf38   : > { %5126 = vmatmul.mubr.msk.bf16.vlgmr.msra.gmra.mxu1 %vm7259_vm6, %v2839_v48  ;;  %3119 = vmatprep.subr.bf16.mxu0 %v5669_v1  ;;  %vm7261_vm6 = vmmov %vm7257_vm14 }
 0xf39   : > { %5133 = vmatprep.mubr.msk.bf16.mxu1 %vm5674_vm9, %v5670_v3 }
 0xf3b   : > { %3120 = vmatpush2.bf16.msra.mxu0 %v5503_v44 }
 0xf3c   : > { %3121 = vmatprep.subr.bf16.mxu0 %v5669_v1 }
 0xf3f   : > { %3122 = vmatpush2.bf16.msra.mxu0 %v5504_v40 }
 0xf40   : > { %3123 = vmatprep.subr.bf16.mxu0 %v5669_v1 }
 0xf43   : > { %3124 = vmatpush2.bf16.msra.mxu0 %v5505_v18 }
 0xf44   : > { %5155 = vmatprep.subr.bf16.mxu0 %v5670_v3 }
 0xff8   : > { %v2913_v19 = vpop.f32.mrf.mxu1 }
 0xff9   : > { %v2914_v50 = vadd.f32 %v4859_v34, %v2913_v19 }
 0xffa   : > { %v5127_v41 = vpop.f32.mrf.mxu1 }
 0xffb   : > { %v2920_v58 = vmax.f32 %v2914_v50, 0.0 }
 0xffc   : > { %v2916_v2 = vpop.f32.mrf.mxu1 }
 0xffd   : > { %v2917_v32 = vadd.f32 %v4859_v34, %v2916_v2  ;;  %v2922_v30 = vmul.f32 %v2920_v58, %v6151_v25 }
 0xffe   : > { %v5128_v10 = vpop.f32.mrf.mxu1 }
 0xfff   : > { %v2921_v6 = vmax.f32 %v2917_v32, 0.0  ;;  %v2951_v47 = vrot.slane %v2922_v30, 1  ;;  %v2963_v27 = vrot.slane %v2922_v30, 2 }
0x1001   : > { %v2923_v28 = vmul.f32 %v2921_v6, %v6153_v4 }
0x1003   : > { %v2964_v36 = vrot.slane %v2923_v28, 2  ;;  %v2952_v46 = vrot.slane %v2923_v28, 1 }
0x1005   : > { %v2965_v55 = vsel %vm7195_vm0, %v2963_v27, %v2964_v36  ;;  %v2966_v15 = vsel %vm7195_vm0, %v2964_v36, %v6631_v9  ;;  %2958 = vrot.lane.b32.xlu1 %v2952_v46, %s7247_s16  ;;  %v2953_v63 = vsel %vm7196_vm1, %v2951_v47, %v2952_v46  ;;  %vm7262_vm0 = vmmov %vm7261_vm6 }
0x1006   : > { %v2976_v16 = vpack.c.bf16 %v2966_v15, %v2966_v15  ;;  %v5392_v48 = vpack.i.bf16 %v2953_v63, %v2951_v47  ;;  %v2974_v45 = vpack.c.bf16 %v2965_v55, %v2963_v27  ;;  %vm7263_vm1 = vmmov %vm7262_vm0 }
0x1008   : > { %5393 = vrot.lane.b32.xlu0 %v5392_v48, %s7247_s16  ;;  %v3001_v22 = vshrl.u32 %v2974_v45, 16  ;;  %v3004_v17 = vshll.u32 %v2974_v45, 16  ;;  %v3009_v54 = vshrl.u32 %v2976_v16, 16  ;;  %v3012_v29 = vshll.u32 %v2976_v16, 16 }
0x100a   : > { %v3003_v7 = vrot.slane %v3001_v22, 3  ;;  %v3006_v57 = vrot.slane %v3004_v17, 4  ;;  %v3011_v34 = vrot.slane %v3009_v54, 3  ;;  %v3014_v19 = vrot.slane %v3012_v29, 4  ;;  %v4867_v54 = vld [vmem:[%s5829_s13] ss:$0 sm:$0xff] }
0x100c   : > { %v3007_v50 = vor.u32 %v3006_v57, %v3003_v7  ;;  %v3015_v41 = vor.u32 %v3014_v19, %v3011_v34 }
0x100e   : > { %v3016_v58 = vsel %vm7203_vm5, %v3007_v50, %v3015_v41 }
0x100f   : > { %4880 = vmatprep.mubr.msk.bf16.mxu0 %vm7257_vm14, %v3016_v58  ;;  %vm7272_vm14 = vcmask 64512  }
0x1077   : > { %v2959_v2 = vpop.permute.xlu1 %2958 }
0x1078   : > { %v2972_v32 = vsel %vm7261_vm6, %v2923_v28, %v2959_v2  ;;  %vm7273_vm6 = vmmov %vm7272_vm14 }
0x1079   : > { %v2975_v10 = vpack.c.bf16 %v2972_v32, %v2972_v32 }
0x107a   : > { %v5394_v11 = vpop.permute.xlu0 %5393 }
0x107b   : > { %v5396_v6 = vunpack.i.h.bf16 %v5394_v11  ;;  %v5395_v44 = vunpack.i.l.bf16 %v5394_v11  ;;  %v2992_v47 = vshrl.u32 %v2975_v10, 16  ;;  %v2995_v27 = vshll.u32 %v2975_v10, 16 }
0x107d   : > { %v2971_v36 = vsel %vm7262_vm0, %v2922_v30, %v5396_v6  ;;  %v2970_v46 = vsel %vm7263_vm1, 0.0, %v5395_v44  ;;  %v2994_v55 = vrot.slane %v2992_v47, 3  ;;  %v2997_v15 = vrot.slane %v2995_v27, 4 }
0x107e   : > { %v2973_v40 = vpack.c.bf16 %v2971_v36, %v2970_v46  ;;  %vm7270_vm0 = vcmask 56320  }
0x107f   : > { %v2998_v22 = vor.u32 %v2997_v15, %v2994_v55  ;;  %v5507_v55 = vld [vmem:[%s7230_s20 + $0x10] sm:$0xff]   ;;  %vm7271_vm1 = vmmov %vm7270_vm0 }
0x1080   : > { %v2984_v63 = vshrl.u32 %v2973_v40, 16  ;;  %v2987_v16 = vshll.u32 %v2973_v40, 16 }
0x1082   : > { %v2986_v48 = vrot.slane %v2984_v63, 3  ;;  %v2989_v45 = vrot.slane %v2987_v16, 4 }
0x1084   : > { %v2990_v28 = vor.u32 %v2989_v45, %v2986_v48 }
0x1086   : > { %v2999_v17 = vsel %vm7203_vm5, %v2990_v28, %v2998_v22  ;;  %vm7274_vm5 = vcmask 72704  }
0x1087   : > { %3126 = vmatmul.mubr.bf16.vlgmr.msra.gmra.mxu0 %v2999_v17  ;;  %v4881_v17 = vld [vmem:[%s5834_s12] ss:$0 sm:$0xff] }
0x1088   : > { %5157 = vmatprep.mubr.msk.bf16.mxu0 %vm5674_vm9, %v5670_v3 }
0x1147   : > { %v3127_v29 = vpop.f32.mrf.mxu0 }
0x1148   : > { %v3128_v30 = vadd.f32 %v4867_v54, %v3127_v29 }
0x1149   : > { %v3129_v18 = vpop.f32.mrf.mxu0 }
0x114a   : > { %v3134_v7 = vmul.f32 %v3128_v30, %v6151_v25  ;;  %v4882_v18 = vld [vmem:[%s5839_s27] ss:$0 sm:$0xff] }
0x114b   : > { %v3130_v57 = vpop.f32.mrf.mxu0 }
0x114c   : > { %v3131_v34 = vadd.f32 %v4867_v54, %v3130_v57  ;;  %v3136_v19 = vadd.f32 %v3134_v7, %v6612_v43 }
0x114d   : > { %v3132_v50 = vpop.f32.mrf.mxu0 }
0x114e   : > { %v3135_v41 = vmul.f32 %v3131_v34, %v6153_v4  ;;  %v3140_v58 = vsel %vm1017_vm4, %v3136_v19, 0.0 }
0x114f   : > { %3141 = vadd.xlane.f32.xlu0 %v3140_v58 }
0x1150   : > { %v3137_v2 = vadd.f32 %v3135_v41, %v6616_v8  ;;  %v5506_v8 = vld [vmem:[%s7230_s20 + $0x18] sm:$0xff]   ;;  %s7264_s20 = smov 96  }
0x1151   : > { %5130 = vmatpush3.bf16.msra.mxu1 %v5506_v8 }
0x1152   : > { %v3143_v32 = vsel %vm1017_vm4, %v3137_v2, 0.0  ;;  %5131 = vmatprep.subr.bf16.mxu1 %v5670_v3 }
0x1153   : > { %3144 = vadd.xlane.f32.xlu1 %v3143_v32 }
0x1155   : > { %5132 = vmatpush3.bf16.msra.mxu1 %v5507_v55 }
0x1156   : > { %5137 = vmatprep.subr.bf16.mxu1 %v5670_v3 }
0x11d8   : > { %v3142_v10 = vpop.xlane.xlu0 %3141 }
0x11d9   : > { %v3146_v11 = vmul.f32 0.03125, %v3142_v10  ;;  %v4888_v10 = vld [vmem:[%s7245_s23 + $0x1] ss:$0 sm:$0xff] }
0x11db   : > { %v3148_v6 = vsub.f32 %v3136_v19, %v3146_v11 }
0x11dc   : > { %v3145_v44 = vpop.xlane.xlu1 %3144 }
0x11dd   : > { %v3147_v47 = vmul.f32 0.03125, %v3145_v44  ;;  %v3150_v27 = vmul.f32 %v3148_v6, %v3148_v6 }
0x11df   : > { %v3149_v43 = vsub.f32 %v3137_v2, %v3147_v47  ;;  %v3152_v36 = vsel %vm1017_vm4, %v3150_v27, 0.0  ;;  %v5508_v2 = vld [vmem:[%s7244_s22 + $0x8] sm:$0x1f]  }
0x11e0   : > { %3153 = vadd.xlane.f32.xlu0 %v3152_v36  ;;  %v6719_v32 = vsel %vm1805_vm10, %v5508_v2, 0 }
0x11e1   : > { %v3151_v46 = vmul.f32 %v3149_v43, %v3149_v43 }
0x11e3   : > { %v3155_v40 = vsel %vm1017_vm4, %v3151_v46, 0.0 }
0x11e4   : > { %3156 = vadd.xlane.f32.xlu0 %v3155_v40 }
0x1269   : > { %v3154_v15 = vpop.xlane.xlu0 %3153 }
0x126a   : > { %v3158_v63 = vmul.f32 0.03125, %v3154_v15 }
0x126c   : > { %v3160_v16 = vadd.f32 0.0001, %v3158_v63 }
0x126d   : > { %v3157_v48 = vpop.xlane.xlu0 %3156 }
0x126e   : > { %5550 = vrsqrt.f32 %v3160_v16  ;;  %v3159_v45 = vmul.f32 0.03125, %v3157_v48 }
0x1270   : > { %v3161_v22 = vadd.f32 0.0001, %v3159_v45 }
0x1272   : > { %5552 = vrsqrt.f32 %v3161_v22  ;;  %v7265_v22 = vmov 5  }
0x127b   : > { %v5551_v28 = vpop.eup %5550 }
0x127c   : > { %v3164_v54 = vmul.f32 %v5551_v28, %v3148_v6  ;;  %v7266_v28 = vmov 1  }
0x127e   : > { %v3172_v29 = vmul.f32 %v4881_v17, %v3164_v54 }
0x127f   : > { %v5553_v30 = vpop.eup %5552 }
0x1280   : > { %v3165_v7 = vmul.f32 %v5553_v30, %v3149_v43  ;;  %v3180_v34 = vadd.f32 %v4882_v18, %v3172_v29 }
0x1282   : > { %v3173_v57 = vmul.f32 %v4881_v17, %v3165_v7  ;;  %v6707_v50 = vmul.f32 %v3180_v34, %v6151_v25  ;;  %v7267_v17 = vmov 8  }
0x1284   : > { %v3181_v19 = vadd.f32 %v4882_v18, %v3173_v57 }
0x1286   : > { %v6710_v41 = vmul.f32 %v3181_v19, %v6153_v4 }
0x1288   : > { %v3184_v58 = vpack.c.bf16 %v6710_v41, %v6707_v50 }
0x128a   : > { %5134 = vmatmul.mubr.msk.bf16.vlgmr.msra.gmra.mxu1 %vm1017_vm4, %v3184_v58 }
0x128b   : > { %5139 = vmatprep.mubr.msk.bf16.mxu1 %vm5674_vm9, %v5670_v3  ;;  %5138 = vmatpush3.bf16.xpose.msra.mxu1 %v6719_v32 }
0x128c   : > { %5143 = vmatprep.subr.bf16.mxu1 %v5670_v3 }
0x134a   : > { %v3247_v11 = vpop.f32.mrf.mxu1 }
0x134b   : > { %v3248_v44 = vadd.f32 %v4888_v10, %v3247_v11 }
0x134c   : > { %v5135_v6 = vpop.f32.mrf.mxu1 }
0x134d   : > { %v3254_v36 = vmul.f32 0.25, %v3248_v44 }
0x134e   : > { %v3250_v47 = vpop.f32.mrf.mxu1 }
0x134f   : > { %v3251_v27 = vadd.f32 %v4888_v10, %v3250_v47 }
0x1350   : > { %v5136_v43 = vpop.f32.mrf.mxu1 }
0x1351   : > { %v3255_v46 = vmul.f32 0.25, %v3251_v27  ;;  %v6724_v40 = vpack.c.bf16 %v3251_v27, %v3248_v44 }
0x1353   : > { %v6726_v8 = vpack.c.bf16 %v3255_v46, %v3254_v36  ;;  %3329 = vrot.lane.b32.xlu1 %v6724_v40, %s7264_s20  ;;  %s7268_s20 = smov 112  }
0x1355   : > { %5140 = vmatmul.mubr.msk.bf16.vlgmr.msra.gmra.mxu1 %vm1805_vm10, %v6726_v8 }
0x1356   : > { %5145 = vmatprep.mubr.msk.bf16.mxu1 %vm5674_vm9, %v5670_v3 }
0x13c5   : > { %v3330_v55 = vpop.permute.xlu1 %3329 }
0x13c6   : > { %v3332_v15 = vsel %vm1805_vm10, %v3330_v55, 0 }
0x13c7   : > { %5144 = vmatpush3.bf16.xpose.msra.mxu1 %v3332_v15 }
0x13c8   : > { %5149 = vmatprep.subr.bf16.mxu1 %v5670_v3 }
0x13ce   : > { %5146 = vmatmul.mubr.msk.bf16.vlgmr.msra.gmra.mxu1 %vm1805_vm10, %v6726_v8 }
0x13cf   : > { %5151 = vmatprep.mubr.msk.bf16.mxu1 %vm5674_vm9, %v5670_v3 }
0x1415   : > { %v3309_v63 = vpop.f32.mrf.mxu1 }
0x1416   : > { %3376 = vperm.xlu1 %5398, %v3309_v63   ;;  %3318 = vperm.xlu0 %5397, %v3309_v63  }
0x1417   : > { %v5141_v16 = vpop.f32.mrf.mxu1 }
0x1419   : > { %v3312_v48 = vpop.f32.mrf.mxu1 }
0x141a   : > { %5399 = vset.pattern.permute.xlu1 %v7198_v38  ;;  %5403 = vset.pattern.permute.xlu0 %v7201_v52 }
0x141b   : > { %3388 = vperm.xlu1 %5399, %v3309_v63   ;;  %3436 = vperm.xlu0 %5403, %v3309_v63   ;;  %v5142_v45 = vpop.f32.mrf.mxu1 }
0x141f   : > { %5400 = vset.pattern.permute.xlu1 %v5676_v5  ;;  %5409 = vset.pattern.permute.xlu0 %v5679_v51 }
0x1420   : > { %3400 = vperm.xlu1 %5400, %v3309_v63   ;;  %3416 = vperm.xlu0 %5409, %v3312_v48  }
0x1424   : > { %5401 = vset.pattern.permute.xlu1 %v5679_v51  ;;  %5412 = vset.pattern.permute.xlu0 %v7199_v53 }
0x1425   : > { %3412 = vperm.xlu1 %5401, %v3309_v63   ;;  %3452 = vperm.xlu0 %5412, %v3312_v48  }
0x1429   : > { %5402 = vset.pattern.permute.xlu1 %v7265_v22  ;;  %5416 = vset.pattern.permute.xlu0 %v7198_v38 }
0x142a   : > { %3424 = vperm.xlu1 %5402, %v3309_v63  }
0x142e   : > { %5404 = vset.pattern.permute.xlu1 %v7199_v53 }
0x142f   : > { %3448 = vperm.xlu1 %5404, %v3309_v63  }
0x1433   : > { %5405 = vset.pattern.permute.xlu1 %v5669_v1 }
0x1434   : > { %3323 = vperm.xlu1 %5405, %v3312_v48  }
0x1438   : > { %5406 = vset.pattern.permute.xlu1 %v7266_v28 }
0x1439   : > { %3380 = vperm.xlu1 %5406, %v3312_v48  }
0x143d   : > { %5407 = vset.pattern.permute.xlu1 %v7198_v38 }
0x143e   : > { %3392 = vperm.xlu1 %5407, %v3312_v48  }
0x1442   : > { %5408 = vset.pattern.permute.xlu1 %v5676_v5 }
0x1443   : > { %3404 = vperm.xlu1 %5408, %v3312_v48  }
0x1447   : > { %5410 = vset.pattern.permute.xlu1 %v7265_v22 }
0x1448   : > { %3428 = vperm.xlu1 %5410, %v3312_v48  }
0x144c   : > { %5411 = vset.pattern.permute.xlu1 %v7201_v52 }
0x144d   : > { %3440 = vperm.xlu1 %5411, %v3312_v48  }
0x1451   : > { %5413 = vset.pattern.permute.xlu1 %v7267_v17 }
0x1452   : > { %3460 = vperm.xlu1 %5413, %v3309_v63  }
0x1456   : > { %3464 = vperm.xlu1 %5413, %v3312_v48  }
0x145a   : > { %5414 = vset.pattern.permute.xlu1 %v5669_v1 }
0x148e   : > { %v3368_v54 = vpop.f32.mrf.mxu1 }
0x1490   : > { %v5147_v29 = vpop.f32.mrf.mxu1 }
0x1491   : > { %v3377_v30 = vpop.permute.xlu1 %3376  ;;  %v3319_v11 = vpop.permute.xlu0 %3318 }
0x1492   : > { %v3371_v18 = vpop.f32.mrf.mxu1  ;;  %v3326_v6 = vmul.f32 %v6215_v37, %v3319_v11  ;;  %v3383_v43 = vmul.f32 %v6221_v14, %v3377_v30 }
0x1494   : > { %v5148_v7 = vpop.f32.mrf.mxu1  ;;  %v3369_v47 = vadd.f32 %v3368_v54, %v3326_v6 }
0x1496   : > { %v3389_v57 = vpop.permute.xlu1 %3388  ;;  %v3385_v46 = vadd.f32 %v3383_v43, %v3369_v47  ;;  %v3437_v63 = vpop.permute.xlu0 %3436 }
0x1497   : > { %v3395_v55 = vmul.f32 %v6235_v23, %v3389_v57 }
0x1499   : > { %v3397_v7 = vadd.f32 %v3395_v55, %v3385_v46 }
0x149b   : > { %v3401_v34 = vpop.permute.xlu1 %3400  ;;  %v3417_v57 = vpop.permute.xlu0 %3416 }
0x149c   : > { %v3407_v16 = vmul.f32 %v6249_v31, %v3401_v34  ;;  %v3420_v34 = vmul.f32 %v6259_v42, %v3417_v57 }
0x149e   : > { %v3409_v6 = vadd.f32 %v3407_v16, %v3397_v7 }
0x14a0   : > { %v3413_v19 = vpop.permute.xlu1 %3412 }
0x14a1   : > { %v3419_v54 = vmul.f32 %v6254_v35, %v3413_v19 }
0x14a5   : > { %v3425_v58 = vpop.permute.xlu1 %3424 }
0x14aa   : > { %v3449_v2 = vpop.permute.xlu1 %3448 }
0x14af   : > { %v3324_v10 = vpop.permute.xlu1 %3323 }
0x14b0   : > { %v3327_v36 = vmul.f32 %v6218_v13, %v3324_v10  ;;  %v3431_v10 = vmul.f32 %v6271_v56, %v3425_v58 }
0x14b2   : > { %v3372_v48 = vadd.f32 %v3371_v18, %v3327_v36 }
0x14b4   : > { %v3381_v44 = vpop.permute.xlu1 %3380 }
0x14b5   : > { %v3384_v15 = vmul.f32 %v6231_v20, %v3381_v44  ;;  %v3421_v44 = vadd.f32 %v3419_v54, %v3409_v6 }
0x14b7   : > { %v3386_v11 = vadd.f32 %v3384_v15, %v3372_v48  ;;  %v3433_v18 = vadd.f32 %v3431_v10, %v3421_v44  ;;  %v3455_v15 = vmul.f32 %v6297_v12, %v3449_v2  ;;  %v3453_v48 = vpop.permute.xlu0 %3452 }
0x14b9   : > { %v3393_v27 = vpop.permute.xlu1 %3392 }
0x14ba   : > { %v3396_v45 = vmul.f32 %v6241_v26, %v3393_v27  ;;  %v3443_v27 = vmul.f32 %v6277_v61, %v3437_v63 }
0x14bc   : > { %v3398_v47 = vadd.f32 %v3396_v45, %v3386_v11  ;;  %v3445_v55 = vadd.f32 %v3443_v27, %v3433_v18  ;;  %v3456_v11 = vmul.f32 %v6290_v21, %v3453_v48 }
0x14be   : > { %v3405_v29 = vpop.permute.xlu1 %3404 }
0x14bf   : > { %v3408_v30 = vmul.f32 %v6246_v0, %v3405_v29  ;;  %v3457_v29 = vadd.f32 %v3455_v15, %v3445_v55 }
0x14c1   : > { %v3410_v38 = vadd.f32 %v3408_v30, %v3398_v47 }
0x14c3   : > { %v3429_v43 = vpop.permute.xlu1 %3428  ;;  %v3422_v36 = vadd.f32 %v3420_v34, %v3410_v38 }
0x14c4   : > { %v3432_v46 = vmul.f32 %v6268_v49, %v3429_v43 }
0x14c6   : > { %v3434_v58 = vadd.f32 %v3432_v46, %v3422_v36 }
0x14c8   : > { %v3441_v19 = vpop.permute.xlu1 %3440 }
0x14c9   : > { %v3444_v16 = vmul.f32 %v6274_v59, %v3441_v19 }
0x14cb   : > { %v3446_v7 = vadd.f32 %v3444_v16, %v3434_v58 }
0x14cd   : > { %v3461_v45 = vpop.permute.xlu1 %3460  ;;  %v3458_v38 = vadd.f32 %v3456_v11, %v3446_v7 }
0x14ce   : > { %v3467_v54 = vmul.f32 %v6305_v33, %v3461_v45 }
0x14d0   : > { %v3469_v30 = vadd.f32 %v3467_v54, %v3457_v29 }
0x14d1   : > { %v3465_v63 = vpop.permute.xlu1 %3464 }
0x14d2   : > { %v3468_v6 = vmul.f32 %v6293_v24, %v3465_v63  ;;  %v3471_v10 = vsel %vm2008_vm7, %v3469_v30, -10000.0 }
0x14d3   : > { %v3473_v2 = vsel %vm1805_vm10, %v3471_v10, -inf }
0x14d4   : > { %v3470_v47 = vadd.f32 %v3468_v6, %v3458_v38  ;;  %3474 = vmax.xlane.f32.xlu0 %v3473_v2 }
0x14d6   : > { %v3472_v57 = vsel %vm2009_vm15, %v3470_v47, -10000.0 }
0x14d7   : > { %v3476_v43 = vsel %vm1805_vm10, %v3472_v57, -inf }
0x14d8   : > { %3477 = vmax.xlane.f32.xlu1 %v3476_v43 }
0x155d   : > { %v3475_v44 = vpop.xlane.xlu0 %3474 }
0x155e   : > { %v3479_v34 = vsub.f32 %v3471_v10, %v3475_v44 }
0x1560   : > { %v3481_v18 = vmul.f32 1.442695, %v3479_v34 }
0x1561   : > { %v3478_v27 = vpop.xlane.xlu1 %3477 }
0x1562   : > { %5554 = vpow2.f32 %v3481_v18  ;;  %v3480_v36 = vsub.f32 %v3472_v57, %v3478_v27 }
0x1564   : > { %v3483_v46 = vmul.f32 1.442695, %v3480_v36 }
0x1566   : > { %5556 = vpow2.f32 %v3483_v46 }
0x156f   : > { %v5555_v19 = vpop.eup %5554 }
0x1570   : > { %v3485_v55 = vsel %vm1805_vm10, %v5555_v19, 0.0 }
0x1571   : > { %3486 = vadd.xlane.f32.xlu0 %v3485_v55 }
0x1573   : > { %v5557_v15 = vpop.eup %5556 }
0x1574   : > { %v3488_v16 = vsel %vm1805_vm10, %v5557_v15, 0.0 }
0x1575   : > { %3489 = vadd.xlane.f32.xlu0 %v3488_v16 }
0x15fa   : > { %v3487_v58 = vpop.xlane.xlu0 %3486 }
0x15fb   : > { %5558 = vrcp.f32 %v3487_v58 }
0x15fe   : > { %v3490_v48 = vpop.xlane.xlu0 %3489 }
0x15ff   : > { %5560 = vrcp.f32 %v3490_v48 }
0x1608   : > { %v5559_v45 = vpop.eup %5558 }
0x1609   : > { %v6783_v29 = vmul.f32 %v5559_v45, %v5555_v19 }
0x160b   : > { %v3496_v7 = vmul.f32 %v6215_v37, %v6783_v29  ;;  %v3504_v63 = vmul.f32 %v6221_v14, %v6783_v29  ;;  %v3512_v2 = vmul.f32 %v6235_v23, %v6783_v29  ;;  %v3520_v34 = vmul.f32 %v6249_v31, %v6783_v29 }
0x160c   : > { %v5561_v54 = vpop.eup %5560  ;;  %v3528_v46 = vmul.f32 %v6254_v35, %v6783_v29  ;;  %v3536_v16 = vmul.f32 %v6271_v56, %v6783_v29 }
0x160d   : > { %v6787_v11 = vmul.f32 %v5561_v54, %v5557_v15  ;;  %v3498_v30 = vsel %vm1805_vm10, %v3496_v7, 0.0  ;;  %v3506_v6 = vsel %vm1805_vm10, %v3504_v63, 0.0  ;;  %v3514_v43 = vsel %vm1805_vm10, %v3512_v2, 0.0 }
0x160e   : > { %3499 = vadd.xlane.f32.xlu0 %v3498_v30  ;;  %v3522_v27 = vsel %vm1805_vm10, %v3520_v34, 0.0  ;;  %v3530_v55 = vsel %vm1805_vm10, %v3528_v46, 0.0  ;;  %v3538_v48 = vsel %vm1805_vm10, %v3536_v16, 0.0  ;;  %v3544_v7 = vmul.f32 %v6277_v61, %v6783_v29 }
0x160f   : > { %v3497_v38 = vmul.f32 %v6218_v13, %v6787_v11  ;;  %v3505_v47 = vmul.f32 %v6231_v20, %v6787_v11  ;;  %v3495_v57 = vpack.c.bf16 %v6787_v11, %v6783_v29  ;;  %v3513_v18 = vmul.f32 %v6241_v26, %v6787_v11 }
0x1610   : > { %v3521_v19 = vmul.f32 %v6246_v0, %v6787_v11  ;;  %v3529_v58 = vmul.f32 %v6259_v42, %v6787_v11  ;;  %v3537_v54 = vmul.f32 %v6268_v49, %v6787_v11  ;;  %v3546_v30 = vsel %vm1805_vm10, %v3544_v7, 0.0 }
0x1611   : > { %v3501_v10 = vsel %vm1805_vm10, %v3497_v38, 0.0  ;;  %v3509_v44 = vsel %vm1805_vm10, %v3505_v47, 0.0  ;;  %v3517_v36 = vsel %vm1805_vm10, %v3513_v18, 0.0  ;;  %v3552_v38 = vmul.f32 %v6297_v12, %v6783_v29 }
0x1612   : > { %3507 = vadd.xlane.f32.xlu0 %v3506_v6  ;;  %3502 = vadd.xlane.f32.xlu1 %v3501_v10  ;;  %v3525_v15 = vsel %vm1805_vm10, %v3521_v19, 0.0  ;;  %v3533_v45 = vsel %vm1805_vm10, %v3529_v58, 0.0  ;;  %v3541_v63 = vsel %vm1805_vm10, %v3537_v54, 0.0  ;;  %v3545_v6 = vmul.f32 %v6274_v59, %v6787_v11 }
0x1613   : > { %v3554_v10 = vsel %vm1805_vm10, %v3552_v38, 0.0  ;;  %v3560_v47 = vmul.f32 %v6305_v33, %v6783_v29  ;;  %v3561_v18 = vmul.f32 %v6293_v24, %v6787_v11 }
0x1614   : > { %v3549_v2 = vsel %vm1805_vm10, %v3545_v6, 0.0 }
0x1616   : > { %3515 = vadd.xlane.f32.xlu0 %v3514_v43  ;;  %3510 = vadd.xlane.f32.xlu1 %v3509_v44  ;;  %v3553_v43 = vmul.f32 %v6290_v21, %v6787_v11  ;;  %v3562_v44 = vsel %vm1805_vm10, %v3560_v47, 0.0 }
0x1618   : > { %v3557_v34 = vsel %vm1805_vm10, %v3553_v43, 0.0 }
0x161a   : > { %3523 = vadd.xlane.f32.xlu0 %v3522_v27  ;;  %3518 = vadd.xlane.f32.xlu1 %v3517_v36  ;;  %v3565_v27 = vsel %vm1805_vm10, %v3561_v18, 0.0  ;;  %v5509_v36 = vld [vmem:[%s7248_s3 + $0x8] sm:$0x1f]  }
0x161b   : > { %v3594_v46 = vand.u32 %v5509_v36, %v6396_v62 }
0x161d   : > { %5150 = vmatpush3.bf16.msra.mxu1 %v3594_v46 }
0x161e   : > { %3531 = vadd.xlane.f32.xlu0 %v3530_v55  ;;  %3526 = vadd.xlane.f32.xlu1 %v3525_v15 }
0x161f   : > { %5161 = vmatprep.subr.bf16.mxu1 %v5670_v3 }
0x1622   : > { %3539 = vadd.xlane.f32.xlu0 %v3538_v48  ;;  %3534 = vadd.xlane.f32.xlu1 %v3533_v45 }
0x1626   : > { %3547 = vadd.xlane.f32.xlu0 %v3546_v30  ;;  %3542 = vadd.xlane.f32.xlu1 %v3541_v63 }
0x162a   : > { %3555 = vadd.xlane.f32.xlu0 %v3554_v10  ;;  %3550 = vadd.xlane.f32.xlu1 %v3549_v2 }
0x162e   : > { %3563 = vadd.xlane.f32.xlu0 %v3562_v44  ;;  %3558 = vadd.xlane.f32.xlu1 %v3557_v34 }
0x1632   : > { %3566 = vadd.xlane.f32.xlu1 %v3565_v27 }
0x1643   : > { %3637 = vrot.lane.b32.xlu1 %v6724_v40, %s7247_s16 }
0x1644   : > { %3685 = vrot.lane.b32.xlu0 %v6726_v8, %s7268_s20  ;;  %s7284_s20 = smov 16  }
0x1647   : > { %3743 = vrot.lane.b32.xlu1 %v6724_v40, %s7269_s21  ;;  %s7278_s21 = smov 48  }
0x1697   : > { %v3500_v19 = vpop.xlane.xlu0 %3499 }
0x169b   : > { %v3503_v55 = vpop.xlane.xlu1 %3502  ;;  %v3508_v15 = vpop.xlane.xlu0 %3507 }
0x169c   : > { %v3568_v8 = vsel %vm2107_vm2, %v3500_v19, %v3508_v15 }
0x169f   : > { %v3511_v16 = vpop.xlane.xlu1 %3510  ;;  %v3516_v58 = vpop.xlane.xlu0 %3515 }
0x16a0   : > { %v3569_v2 = vsel %vm2107_vm2, %v3503_v55, %v3511_v16  ;;  %v3570_v47 = vsel %vm2110_vm3, %v3568_v8, %v3516_v58 }
0x16a3   : > { %v3519_v48 = vpop.xlane.xlu1 %3518  ;;  %v3524_v45 = vpop.xlane.xlu0 %3523 }
0x16a4   : > { %v3571_v43 = vsel %vm2110_vm3, %v3569_v2, %v3519_v48  ;;  %v3572_v44 = vsel %vm2113_vm8, %v3570_v47, %v3524_v45 }
0x16a7   : > { %v3527_v62 = vpop.xlane.xlu1 %3526  ;;  %v3532_v7 = vpop.xlane.xlu0 %3531 }
0x16a8   : > { %v3573_v34 = vsel %vm2113_vm8, %v3571_v43, %v3527_v62  ;;  %v3574_v27 = vsel %vm2116_vm11, %v3572_v44, %v3532_v7 }
0x16ab   : > { %v3535_v54 = vpop.xlane.xlu1 %3534  ;;  %v3540_v30 = vpop.xlane.xlu0 %3539 }
0x16ac   : > { %v3575_v36 = vsel %vm2116_vm11, %v3573_v34, %v3535_v54  ;;  %v3576_v53 = vsel %vm2119_vm12, %v3574_v27, %v3540_v30 }
0x16af   : > { %v3543_v63 = vpop.xlane.xlu1 %3542  ;;  %v3548_v38 = vpop.xlane.xlu0 %3547 }
0x16b0   : > { %v3577_v52 = vsel %vm2119_vm12, %v3575_v36, %v3543_v63  ;;  %v3578_v55 = vsel %vm2122_vm13, %v3576_v53, %v3548_v38 }
0x16b3   : > { %v3551_v6 = vpop.xlane.xlu1 %3550  ;;  %v3556_v10 = vpop.xlane.xlu0 %3555 }
0x16b4   : > { %v3579_v15 = vsel %vm2122_vm13, %v3577_v52, %v3551_v6  ;;  %v3580_v16 = vsel %vm7270_vm0, %v3578_v55, %v3556_v10  ;;  %v7276_v55 = vmov 7  }
0x16b7   : > { %v3559_v18 = vpop.xlane.xlu1 %3558  ;;  %v3564_v19 = vpop.xlane.xlu0 %3563 }
0x16b8   : > { %v3581_v58 = vsel %vm7271_vm1, %v3579_v15, %v3559_v18  ;;  %v3582_v45 = vsel %vm7272_vm14, %v3580_v16, %v3564_v19  ;;  %v7275_v19 = vmov 6   ;;  %v7277_v15 = vmov 2  }
0x16b9   : > { %vm7292_vm1 = vcmask 785408  }
0x16bb   : > { %v3567_v48 = vpop.xlane.xlu1 %3566 }
0x16bc   : > { %v3583_v62 = vsel %vm7273_vm6, %v3581_v58, %v3567_v48 }
0x16bd   : > { %v3584_v7 = vpack.c.bf16 %v3583_v62, %v3582_v45 }
0x16bf   : > { %v3638_v54 = vpop.permute.xlu1 %3637  ;;  %5152 = vmatmul.mubr.msk.bf16.vlgmr.msra.gmra.mxu1 %vm7274_vm5, %v3584_v7 }
0x16c0   : > { %5156 = vmatpush3.bf16.msra.mxu0 %v3638_v54  ;;  %5162 = vmatpush3.bf16.xpose.msra.mxu1 %v6719_v32  ;;  %v3686_v32 = vpop.permute.xlu0 %3685 }
0x16c1   : > { %5167 = vmatprep.subr.bf16.mxu0 %v5670_v3  ;;  %5163 = vmatprep.mubr.msk.bf16.mxu1 %vm5674_vm9, %v5670_v3 }
0x16c2   : > { %5173 = vmatprep.subr.bf16.mxu1 %v5670_v3 }
0x16c3   : > { %v3744_v52 = vpop.permute.xlu1 %3743  ;;  %5158 = vmatmul.mubr.msk.bf16.vlgmr.msra.gmra.mxu0 %vm1805_vm10, %v3495_v57 }
0x16c4   : > { %v3746_v53 = vsel %vm1805_vm10, %v3744_v52, 0  ;;  %5169 = vmatprep.mubr.msk.bf16.mxu0 %vm5674_vm9, %v5670_v3 }
0x16c5   : > { %5168 = vmatpush3.bf16.xpose.msra.mxu0 %v3746_v53 }
0x16c6   : > { %5179 = vmatprep.subr.bf16.mxu0 %v5670_v3 }
0x16c7   : > { %5164 = vmatmul.mubr.msk.bf16.vlgmr.msra.gmra.mxu1 %vm1805_vm10, %v3686_v32 }
0x16c8   : > { %5174 = vmatpush3.bf16.msra.mxu1 %v3594_v46  ;;  %5175 = vmatprep.mubr.msk.bf16.mxu1 %vm5674_vm9, %v5670_v3 }
0x16c9   : > { %5185 = vmatprep.subr.bf16.mxu1 %v5670_v3 }
0x16cc   : > { %5170 = vmatmul.mubr.msk.bf16.vlgmr.msra.gmra.mxu0 %vm1805_vm10, %v3686_v32 }
0x16cd   : > { %5181 = vmatprep.mubr.msk.bf16.mxu0 %vm5674_vm9, %v5670_v3 }
0x177f   : > { %v3630_v29 = vpop.f32.mrf.mxu1 }
0x1781   : > { %v5153_v11 = vpop.f32.mrf.mxu1 }
0x1783   : > { %v3633_v57 = vpop.f32.mrf.mxu1  ;;  %v3677_v30 = vpop.f32.mrf.mxu0 }
0x1784   : > { %v6889_v63 = vadd.f32 %v3677_v30, %v3630_v29 }
0x1785   : > { %v5154_v38 = vpop.f32.mrf.mxu1  ;;  %v5159_v6 = vpop.f32.mrf.mxu0 }
0x1787   : > { %v3680_v10 = vpop.f32.mrf.mxu0  ;;  %v3724_v46 = vpop.f32.mrf.mxu1 }
0x1788   : > { %v6891_v8 = vadd.f32 %v3680_v10, %v3633_v57  ;;  %3802 = vperm.xlu0 %5416, %v3724_v46   ;;  %3733 = vperm.xlu1 %5414, %v3724_v46  }
0x1789   : > { %v5160_v2 = vpop.f32.mrf.mxu0  ;;  %v5165_v47 = vpop.f32.mrf.mxu1 }
0x178b   : > { %v3727_v43 = vpop.f32.mrf.mxu1 }
0x178c   : > { %v3782_v44 = vpop.f32.mrf.mxu0  ;;  %5419 = vset.pattern.permute.xlu0 %v7265_v22  ;;  %5415 = vset.pattern.permute.xlu1 %v7266_v28 }
0x178d   : > { %3838 = vperm.xlu0 %5419, %v3724_v46   ;;  %3790 = vperm.xlu1 %5415, %v3724_v46   ;;  %v5166_v34 = vpop.f32.mrf.mxu1 }
0x178e   : > { %v5171_v18 = vpop.f32.mrf.mxu0 }
0x1790   : > { %v6895_v27 = vpop.f32.mrf.mxu0 }
0x1791   : > { %5422 = vset.pattern.permute.xlu0 %v5669_v1  ;;  %5417 = vset.pattern.permute.xlu1 %v5676_v5 }
0x1792   : > { %v5172_v36 = vpop.f32.mrf.mxu0  ;;  %3814 = vperm.xlu1 %5417, %v3724_v46   ;;  %3738 = vperm.xlu0 %5422, %v3727_v43  }
0x1796   : > { %5418 = vset.pattern.permute.xlu1 %v5679_v51  ;;  %5425 = vset.pattern.permute.xlu0 %v5676_v5 }
0x1797   : > { %3826 = vperm.xlu1 %5418, %v3724_v46   ;;  %3818 = vperm.xlu0 %5425, %v3727_v43  }
0x179b   : > { %5420 = vset.pattern.permute.xlu1 %v7275_v19  ;;  %5428 = vset.pattern.permute.xlu0 %v7275_v19 }
0x179c   : > { %3850 = vperm.xlu1 %5420, %v3724_v46   ;;  %3854 = vperm.xlu0 %5428, %v3727_v43  }
0x17a0   : > { %5421 = vset.pattern.permute.xlu1 %v7276_v55  ;;  %5429 = vset.pattern.permute.xlu0 %v7267_v17 }
0x17a1   : > { %3862 = vperm.xlu1 %5421, %v3724_v46   ;;  %3874 = vperm.xlu0 %5429, %v3724_v46  }
0x17a5   : > { %5423 = vset.pattern.permute.xlu1 %v7266_v28 }
0x17a6   : > { %3794 = vperm.xlu1 %5423, %v3727_v43  }
0x17aa   : > { %5424 = vset.pattern.permute.xlu1 %v7277_v15 }
0x17ab   : > { %3806 = vperm.xlu1 %5424, %v3727_v43  }
0x17af   : > { %5426 = vset.pattern.permute.xlu1 %v5679_v51 }
0x17b0   : > { %3830 = vperm.xlu1 %5426, %v3727_v43  }
0x17b4   : > { %5427 = vset.pattern.permute.xlu1 %v7265_v22 }
0x17b5   : > { %3842 = vperm.xlu1 %5427, %v3727_v43  }
0x17b9   : > { %5430 = vset.pattern.permute.xlu1 %v7276_v55 }
0x17ba   : > { %3866 = vperm.xlu1 %5430, %v3727_v43  }
0x17be   : > { %5431 = vset.pattern.permute.xlu1 %v7267_v17 }
0x17bf   : > { %3878 = vperm.xlu1 %5431, %v3727_v43  }
0x1803   : > { %v3803_v5 = vpop.permute.xlu0 %3802  ;;  %v3734_v16 = vpop.permute.xlu1 %3733 }
0x1804   : > { %v3741_v28 = vmul.f32 %v6215_v37, %v3734_v16  ;;  %v3809_v7 = vmul.f32 %v6235_v23, %v3803_v5 }
0x1806   : > { %v3783_v45 = vadd.f32 %v3782_v44, %v3741_v28 }
0x1808   : > { %v3839_v58 = vpop.permute.xlu0 %3838  ;;  %v3791_v48 = vpop.permute.xlu1 %3790 }
0x1809   : > { %v3797_v62 = vmul.f32 %v6221_v14, %v3791_v48  ;;  %v3845_v30 = vmul.f32 %v6271_v56, %v3839_v58 }
0x180b   : > { %v3799_v51 = vadd.f32 %v3797_v62, %v3783_v45 }
0x180d   : > { %v3815_v22 = vpop.permute.xlu1 %3814  ;;  %v3739_v54 = vpop.permute.xlu0 %3738  ;;  %v3811_v52 = vadd.f32 %v3809_v7, %v3799_v51 }
0x180e   : > { %v3821_v53 = vmul.f32 %v6249_v31, %v3815_v22  ;;  %v3742_v36 = vmul.f32 %v6218_v13, %v3739_v54 }
0x1810   : > { %v3823_v29 = vadd.f32 %v3821_v53, %v3811_v52  ;;  %v3786_v28 = vadd.f32 %v6895_v27, %v3742_v36 }
0x1812   : > { %v3827_v32 = vpop.permute.xlu1 %3826  ;;  %v3819_v17 = vpop.permute.xlu0 %3818 }
0x1813   : > { %v3833_v11 = vmul.f32 %v6254_v35, %v3827_v32  ;;  %v3822_v51 = vmul.f32 %v6246_v0, %v3819_v17 }
0x1815   : > { %v3835_v57 = vadd.f32 %v3833_v11, %v3823_v29 }
0x1817   : > { %v3851_v38 = vpop.permute.xlu1 %3850  ;;  %v3855_v6 = vpop.permute.xlu0 %3854  ;;  %v3847_v10 = vadd.f32 %v3845_v30, %v3835_v57 }
0x1818   : > { %v3857_v46 = vmul.f32 %v6277_v61, %v3851_v38  ;;  %v3858_v29 = vmul.f32 %v6274_v59, %v3855_v6 }
0x181a   : > { %v3859_v43 = vadd.f32 %v3857_v46, %v3847_v10 }
0x181c   : > { %v3863_v2 = vpop.permute.xlu1 %3862  ;;  %v3875_v47 = vpop.permute.xlu0 %3874 }
0x181d   : > { %v3869_v44 = vmul.f32 %v6297_v12, %v3863_v2  ;;  %v3881_v18 = vmul.f32 %v6305_v33, %v3875_v47 }
0x181f   : > { %v3871_v34 = vadd.f32 %v3869_v44, %v3859_v43 }
0x1821   : > { %v3883_v19 = vadd.f32 %v3881_v18, %v3871_v34  ;;  %v3795_v55 = vpop.permute.xlu1 %3794 }
0x1822   : > { %v3798_v15 = vmul.f32 %v6231_v20, %v3795_v55 }
0x1823   : > { %v3885_v5 = vsel %vm2008_vm7, %v3883_v19, -10000.0  ;;  %vm7280_vm7 = vmmov %vm7270_vm0 }
0x1824   : > { %v3887_v16 = vsel %vm1805_vm10, %v3885_v5, -inf  ;;  %v3800_v48 = vadd.f32 %v3798_v15, %v3786_v28 }
0x1825   : > { %3888 = vmax.xlane.f32.xlu1 %v3887_v16 }
0x1826   : > { %v3807_v58 = vpop.permute.xlu1 %3806 }
0x1827   : > { %v3810_v45 = vmul.f32 %v6241_v26, %v3807_v58 }
0x1829   : > { %v3812_v62 = vadd.f32 %v3810_v45, %v3800_v48 }
0x182b   : > { %v3831_v7 = vpop.permute.xlu1 %3830  ;;  %v3824_v22 = vadd.f32 %v3822_v51, %v3812_v62 }
0x182c   : > { %v3834_v54 = vmul.f32 %v6259_v42, %v3831_v7 }
0x182e   : > { %v3836_v53 = vadd.f32 %v3834_v54, %v3824_v22 }
0x1830   : > { %v3843_v52 = vpop.permute.xlu1 %3842 }
0x1831   : > { %v3846_v39 = vmul.f32 %v6268_v49, %v3843_v52 }
0x1833   : > { %v3848_v32 = vadd.f32 %v3846_v39, %v3836_v53 }
0x1835   : > { %v3867_v27 = vpop.permute.xlu1 %3866  ;;  %v3860_v11 = vadd.f32 %v3858_v29, %v3848_v32 }
0x1836   : > { %v3870_v57 = vmul.f32 %v6290_v21, %v3867_v27 }
0x1838   : > { %v3872_v38 = vadd.f32 %v3870_v57, %v3860_v11 }
0x183a   : > { %v3879_v30 = vpop.permute.xlu1 %3878 }
0x183b   : > { %v3882_v10 = vmul.f32 %v6293_v24, %v3879_v30 }
0x183d   : > { %v3884_v17 = vadd.f32 %v3882_v10, %v3872_v38 }
0x183f   : > { %v3886_v46 = vsel %vm2009_vm15, %v3884_v17, -10000.0  ;;  %vm7279_vm15 = vmmov %vm7270_vm0  ;;  %vm7291_vm0 = vsmask.f32 4352 }
0x1840   : > { %v3890_v2 = vsel %vm1805_vm10, %v3886_v46, -inf }
0x1841   : > { %3891 = vmax.xlane.f32.xlu0 %v3890_v2 }
0x18ae   : > { %v3889_v47 = vpop.xlane.xlu1 %3888 }
0x18af   : > { %v3893_v43 = vsub.f32 %v3885_v5, %v3889_v47 }
0x18b1   : > { %v3895_v44 = vmul.f32 1.442695, %v3893_v43 }
0x18b3   : > { %5562 = vpow2.f32 %v3895_v44 }
0x18c0   : > { %v5563_v6 = vpop.eup %5562 }
0x18c1   : > { %v3899_v34 = vsel %vm1805_vm10, %v5563_v6, 0.0 }
0x18c2   : > { %3900 = vadd.xlane.f32.xlu0 %v3899_v34 }
0x18ca   : > { %v3892_v18 = vpop.xlane.xlu0 %3891 }
0x18cb   : > { %v3894_v36 = vsub.f32 %v3886_v46, %v3892_v18 }
0x18cd   : > { %v3897_v19 = vmul.f32 1.442695, %v3894_v36 }
0x18cf   : > { %5564 = vpow2.f32 %v3897_v19 }
0x18dc   : > { %v5565_v55 = vpop.eup %5564 }
0x18dd   : > { %v3902_v15 = vsel %vm1805_vm10, %v5565_v55, 0.0 }
0x18de   : > { %3903 = vadd.xlane.f32.xlu0 %v3902_v15 }
0x194b   : > { %v3901_v60 = vpop.xlane.xlu0 %3900 }
0x194c   : > { %5566 = vrcp.f32 %v3901_v60 }
0x1959   : > { %v5567_v16 = vpop.eup %5566 }
0x195a   : > { %v6938_v28 = vmul.f32 %v5567_v16, %v5563_v6 }
0x195c   : > { %v3910_v5 = vmul.f32 %v6215_v37, %v6938_v28  ;;  %v3918_v48 = vmul.f32 %v6221_v14, %v6938_v28  ;;  %v3926_v62 = vmul.f32 %v6235_v23, %v6938_v28  ;;  %v3934_v7 = vmul.f32 %v6249_v31, %v6938_v28 }
0x195d   : > { %v3942_v14 = vmul.f32 %v6254_v35, %v6938_v28  ;;  %v3950_v23 = vmul.f32 %v6271_v56, %v6938_v28  ;;  %v3958_v31 = vmul.f32 %v6277_v61, %v6938_v28  ;;  %v3966_v35 = vmul.f32 %v6297_v12, %v6938_v28 }
0x195e   : > { %v3912_v58 = vsel %vm1805_vm10, %v3910_v5, 0.0  ;;  %v3920_v45 = vsel %vm1805_vm10, %v3918_v48, 0.0  ;;  %v3928_v51 = vsel %vm1805_vm10, %v3926_v62, 0.0  ;;  %v3936_v37 = vsel %vm1805_vm10, %v3934_v7, 0.0 }
0x195f   : > { %3913 = vadd.xlane.f32.xlu1 %v3912_v58  ;;  %v3944_v54 = vsel %vm1805_vm10, %v3942_v14, 0.0  ;;  %v3952_v52 = vsel %vm1805_vm10, %v3950_v23, 0.0  ;;  %v3960_v32 = vsel %vm1805_vm10, %v3958_v31, 0.0  ;;  %v3968_v27 = vsel %vm1805_vm10, %v3966_v35, 0.0 }
0x1960   : > { %v3974_v11 = vmul.f32 %v6305_v33, %v6938_v28 }
0x1962   : > { %v3976_v30 = vsel %vm1805_vm10, %v3974_v11, 0.0  ;;  %v5510_v11 = vld [vmem:[%s7249_s2 + $0x18] sm:$0xff]  }
0x1963   : > { %3921 = vadd.xlane.f32.xlu1 %v3920_v45 }
0x1967   : > { %3929 = vadd.xlane.f32.xlu1 %v3928_v51  ;;  %v3904_v22 = vpop.xlane.xlu0 %3903 }
0x1968   : > { %5568 = vrcp.f32 %v3904_v22 }
0x196b   : > { %3937 = vadd.xlane.f32.xlu1 %v3936_v37 }
0x196f   : > { %3945 = vadd.xlane.f32.xlu1 %v3944_v54 }
0x1973   : > { %3953 = vadd.xlane.f32.xlu1 %v3952_v52 }
0x1975   : > { %v5569_v53 = vpop.eup %5568 }
0x1976   : > { %v3908_v39 = vmul.f32 %v5569_v53, %v5565_v55 }
0x1977   : > { %3961 = vadd.xlane.f32.xlu1 %v3960_v32 }
0x1978   : > { %v3911_v29 = vmul.f32 %v6218_v13, %v3908_v39  ;;  %v3919_v61 = vmul.f32 %v6231_v20, %v3908_v39  ;;  %v3909_v57 = vpack.c.bf16 %v3908_v39, %v6938_v28  ;;  %v3927_v38 = vmul.f32 %v6241_v26, %v3908_v39 }
0x1979   : > { %v3935_v10 = vmul.f32 %v6246_v0, %v3908_v39  ;;  %v3943_v20 = vmul.f32 %v6259_v42, %v3908_v39  ;;  %v3951_v46 = vmul.f32 %v6268_v49, %v3908_v39  ;;  %v3959_v26 = vmul.f32 %v6274_v59, %v3908_v39 }
0x197a   : > { %v3915_v56 = vsel %vm1805_vm10, %v3911_v29, 0.0  ;;  %v3923_v12 = vsel %vm1805_vm10, %v3919_v61, 0.0  ;;  %v3931_v13 = vsel %vm1805_vm10, %v3927_v38, 0.0  ;;  %v3967_v47 = vmul.f32 %v6290_v21, %v3908_v39  ;;  %v5511_v38 = vld [vmem:[%s7249_s2 + $0x10] sm:$0xff]  }
0x197b   : > { %3969 = vadd.xlane.f32.xlu1 %v3968_v27  ;;  %3916 = vadd.xlane.f32.xlu0 %v3915_v56  ;;  %v3939_v33 = vsel %vm1805_vm10, %v3935_v10, 0.0  ;;  %v3947_v17 = vsel %vm1805_vm10, %v3943_v20, 0.0  ;;  %v3955_v2 = vsel %vm1805_vm10, %v3951_v46, 0.0  ;;  %v3963_v0 = vsel %vm1805_vm10, %v3959_v26, 0.0 }
0x197c   : > { %v3971_v42 = vsel %vm1805_vm10, %v3967_v47, 0.0  ;;  %v3975_v43 = vmul.f32 %v6293_v24, %v3908_v39 }
0x197e   : > { %v3979_v49 = vsel %vm1805_vm10, %v3975_v43, 0.0 }
0x197f   : > { %3977 = vadd.xlane.f32.xlu1 %v3976_v30  ;;  %3924 = vadd.xlane.f32.xlu0 %v3923_v12 }
0x1983   : > { %3932 = vadd.xlane.f32.xlu0 %v3931_v13 }
0x1987   : > { %3940 = vadd.xlane.f32.xlu0 %v3939_v33 }
0x198b   : > { %3948 = vadd.xlane.f32.xlu0 %v3947_v17 }
0x198f   : > { %3956 = vadd.xlane.f32.xlu0 %v3955_v2 }
0x1990   : > { %4043 = vrot.lane.b32.xlu1 %v6724_v40, %s7278_s21  ;;  %s4990_s21 = sshll.u32 %s5867_s0, 8  ;;  %s5688_s0 = smov [#allocation2]  }
0x1991   : > { %s7119_s3 = scalar_lea.hbm %s5844_s4, %s4990_s21 }
0x1993   : > { %3964 = vadd.xlane.f32.xlu0 %v3963_v0 }
0x1997   : > { %3972 = vadd.xlane.f32.xlu0 %v3971_v42 }
0x199b   : > { %3980 = vadd.xlane.f32.xlu0 %v3979_v49 }
0x19e8   : > { %v3914_v44 = vpop.xlane.xlu1 %3913 }
0x19ec   : > { %v3922_v6 = vpop.xlane.xlu1 %3921 }
0x19ed   : > { %v3982_v48 = vsel %vm2107_vm2, %v3914_v44, %v3922_v6  ;;  %v4911_v44 = vld [vmem:[%s7250_s5 + $0x1] ss:$0 sm:$0xff] }
0x19f0   : > { %v3930_v59 = vpop.xlane.xlu1 %3929 }
0x19f1   : > { %v3984_v62 = vsel %vm2110_vm3, %v3982_v48, %v3930_v59 }
0x19f4   : > { %v3938_v34 = vpop.xlane.xlu1 %3937 }
0x19f5   : > { %v3986_v7 = vsel %vm2113_vm8, %v3984_v62, %v3938_v34 }
0x19f8   : > { %v3946_v18 = vpop.xlane.xlu1 %3945 }
0x19f9   : > { %v3988_v14 = vsel %vm2116_vm11, %v3986_v7, %v3946_v18 }
0x19fc   : > { %v3954_v36 = vpop.xlane.xlu1 %3953 }
0x19fd   : > { %v3990_v23 = vsel %vm2119_vm12, %v3988_v14, %v3954_v36 }
0x1a00   : > { %v3962_v40 = vpop.xlane.xlu1 %3961 }
0x1a01   : > { %v3992_v31 = vsel %vm2122_vm13, %v3990_v23, %v3962_v40 }
0x1a04   : > { %v3970_v19 = vpop.xlane.xlu1 %3969  ;;  %v3917_v55 = vpop.xlane.xlu0 %3916 }
0x1a05   : > { %v3994_v39 = vsel %vm7279_vm15, %v3992_v31, %v3970_v19  ;;  %v5513_v31 = vld [vmem:[%s7251_s6 + $0x50] sm:$0xff]  }
0x1a08   : > { %v3978_v15 = vpop.xlane.xlu1 %3977  ;;  %v3925_v21 = vpop.xlane.xlu0 %3924 }
0x1a09   : > { %v3983_v45 = vsel %vm2107_vm2, %v3917_v55, %v3925_v21  ;;  %vm7281_vm2 = vmmov %vm7273_vm6 }
0x1a0a   : > { %v3996_v29 = vsel %vm7281_vm2, %v3994_v39, %v3978_v15 }
0x1a0c   : > { %v4044_v60 = vpop.permute.xlu1 %4043  ;;  %v3933_v16 = vpop.xlane.xlu0 %3932 }
0x1a0d   : > { %5180 = vmatpush3.bf16.msra.mxu0 %v4044_v60  ;;  %v3985_v51 = vsel %vm2110_vm3, %v3983_v45, %v3933_v16  ;;  %vm7282_vm3 = vmmov %vm7281_vm2 }
0x1a0e   : > { %5193 = vmatprep.subr.bf16.mxu0 %v5670_v3 }
0x1a10   : > { %v3941_v24 = vpop.xlane.xlu0 %3940  ;;  %5182 = vmatmul.mubr.msk.bf16.vlgmr.msra.gmra.mxu0 %vm1805_vm10, %v3909_v57 }
0x1a11   : > { %5205 = vmatprep.mubr.msk.bf16.mxu0 %vm5674_vm9, %v5670_v3  ;;  %v3987_v22 = vsel %vm2113_vm8, %v3985_v51, %v3941_v24  ;;  %vm7283_vm8 = vmmov %vm7274_vm5 }
0x1a14   : > { %v3949_v28 = vpop.xlane.xlu0 %3948 }
0x1a15   : > { %v3989_v54 = vsel %vm2116_vm11, %v3987_v22, %v3949_v28 }
0x1a18   : > { %v3957_v5 = vpop.xlane.xlu0 %3956 }
0x1a19   : > { %v3991_v52 = vsel %vm2119_vm12, %v3989_v54, %v3957_v5  ;;  %v4917_v54 = vld [vmem:[%s7252_s8 + $0x1] ss:$0 sm:$0xff]  ;;  %vm7288_vm12 = vcmask 523264  }
0x1a1a   : > { %vm7290_vm5 = vmmov %vm7288_vm12 }
0x1a1b   : > { %vm7297_vm2 = vmmov %vm7290_vm5 }
0x1a1c   : > { %v3965_v58 = vpop.xlane.xlu0 %3964 }
0x1a1d   : > { %v3993_v53 = vsel %vm2122_vm13, %v3991_v52, %v3965_v58  ;;  %v4918_v52 = vld [vmem:[%s7253_s9 + $0x1] ss:$0 sm:$0xff]  ;;  %vm7289_vm13 = vmmov %vm7288_vm12 }
0x1a20   : > { %v3973_v37 = vpop.xlane.xlu0 %3972 }
0x1a21   : > { %v3995_v32 = vsel %vm7280_vm7, %v3993_v53, %v3973_v37  ;;  %vm7296_vm7 = vmmov %vm7291_vm0 }
0x1a24   : > { %v3981_v35 = vpop.xlane.xlu0 %3980 }
0x1a25   : > { %v3997_v27 = vsel %vm7282_vm3, %v3995_v32, %v3981_v35  ;;  %vm7298_vm3 = vmmov %vm7297_vm2 }
0x1a26   : > { %v3998_v56 = vpack.c.bf16 %v3997_v27, %v3996_v29  ;;  %v5514_v27 = vld [vmem:[%s7251_s6 + $0x48] sm:$0xff]  }
0x1a28   : > { %5176 = vmatmul.mubr.msk.bf16.vlgmr.msra.gmra.mxu1 %vm7283_vm8, %v3998_v56  ;;  %vm7299_vm8 = vmmov %vm7297_vm2 }
0x1a29   : > { %5189 = vmatprep.mubr.msk.bf16.mxu1 %vm5674_vm9, %v5670_v3  ;;  %5186 = vmatpush3.bf16.msra.mxu1 %v5510_v11  ;;  %vm7285_vm9 = vcmask 1046528  }
0x1a2a   : > { %5187 = vmatprep.subr.bf16.mxu1 %v5670_v3  ;;  %vm7295_vm15 = vmmov %vm7285_vm9 }
0x1a2d   : > { %5188 = vmatpush3.bf16.msra.mxu1 %v5511_v38 }
0x1a2e   : > { %4548 = vmatprep.subr.bf16.mxu1 %v5669_v1 }
0x1ad0   : > { %v4083_v61 = vpop.f32.mrf.mxu0 }
0x1ad2   : > { %v5183_v57 = vpop.f32.mrf.mxu0 }
0x1ad4   : > { %v4086_v30 = vpop.f32.mrf.mxu0 }
0x1ad6   : > { %v5184_v12 = vpop.f32.mrf.mxu0 }
0x1ae8   : > { %v4036_v13 = vpop.f32.mrf.mxu1 }
0x1ae9   : > { %v4084_v20 = vadd.f32 %v4083_v61, %v4036_v13 }
0x1aea   : > { %v5177_v10 = vpop.f32.mrf.mxu1 }
0x1aec   : > { %v4039_v33 = vpop.f32.mrf.mxu1 }
0x1aed   : > { %v4087_v17 = vadd.f32 %v4086_v30, %v4039_v33  ;;  %v5515_v33 = vld [vmem:[%s7251_s6 + $0x40] sm:$0xff]  }
0x1aee   : > { %v5178_v46 = vpop.f32.mrf.mxu1 }
0x1aef   : > { %v5432_v2 = vpack.i.bf16 %v4087_v17, %v4084_v20  ;;  %v5516_v46 = vld [vmem:[%s7251_s6 + $0x38] sm:$0xff]  }
0x1af1   : > { %5433 = vrot.lane.b32.xlu0 %v5432_v2, %s7284_s20  ;;  %v5517_v2 = vld [vmem:[%s7251_s6 + $0x30] sm:$0xff]  }
0x1b63   : > { %v5434_v26 = vpop.permute.xlu0 %5433 }
0x1b64   : > { %v5436_v0 = vunpack.i.h.bf16 %v5434_v26  ;;  %v5435_v47 = vunpack.i.l.bf16 %v5434_v26 }
0x1b66   : > { %v4099_v42 = vsel %vm1805_vm10, %v6891_v8, %v5436_v0  ;;  %v4098_v43 = vsel %vm1805_vm10, %v6889_v63, %v5435_v47  ;;  %vm7286_vm10 = vcmask 1045504  }
0x1b67   : > { %v4100_v49 = vpack.c.bf16 %v4099_v42, %v4098_v43  ;;  %vm7287_vm11 = vmmov %vm7286_vm10 }
0x1b68   : > { %vm7293_vm14 = vmmov %vm7286_vm10 }
0x1b69   : > { %5190 = vmatmul.mubr.msk.bf16.vlgmr.msra.gmra.mxu1 %vm1017_vm4, %v4100_v49  ;;  %vm7294_vm6 = vmmov %vm7286_vm10 }
0x1c29   : > { %v4163_v6 = vpop.f32.mrf.mxu1 }
0x1c2a   : > { %v4164_v59 = vadd.f32 %v4911_v44, %v4163_v6 }
0x1c2b   : > { %v5191_v34 = vpop.f32.mrf.mxu1 }
0x1c2c   : > { %v4170_v18 = vadd.f32 %v4164_v59, %v6707_v50 }
0x1c2d   : > { %v4166_v36 = vpop.f32.mrf.mxu1 }
0x1c2e   : > { %v4167_v40 = vadd.f32 %v4911_v44, %v4166_v36  ;;  %v4176_v19 = vsel %vm1017_vm4, %v4170_v18, 0.0 }
0x1c2f   : > { %4177 = vadd.xlane.f32.xlu1 %v4176_v19  ;;  %v5192_v55 = vpop.f32.mrf.mxu1 }
0x1c30   : > { %v4171_v8 = vadd.f32 %v4167_v40, %v6710_v41  ;;  %v5512_v41 = vld [vmem:[%s7251_s6 + $0x58] sm:$0xff]  }
0x1c31   : > { %5194 = vmatpush3.bf16.msra.mxu0 %v5512_v41  ;;  %v5518_v41 = vld [vmem:[%s7258_s17 + $0x98] sm:$0xff]  }
0x1c32   : > { %v4179_v63 = vsel %vm1017_vm4, %v4171_v8, 0.0  ;;  %5195 = vmatprep.subr.bf16.mxu0 %v5670_v3  ;;  %4549 = vmatpush1.bf16.msra.mxu1 %v5518_v41 }
0x1c33   : > { %4180 = vadd.xlane.f32.xlu0 %v4179_v63  ;;  %4550 = vmatprep.subr.bf16.mxu1 %v5669_v1 }
0x1c35   : > { %5196 = vmatpush3.bf16.msra.mxu0 %v5513_v31 }
0x1c36   : > { %5197 = vmatprep.subr.bf16.mxu0 %v5670_v3 }
0x1c39   : > { %5198 = vmatpush3.bf16.msra.mxu0 %v5514_v27  ;;  %v5526_v27 = vld [vmem:[%s7258_s17 + $0xb8] sm:$0xff]  }
0x1c3a   : > { %5199 = vmatprep.subr.bf16.mxu0 %v5670_v3 }
0x1c3d   : > { %5200 = vmatpush3.bf16.msra.mxu0 %v5515_v33  ;;  %v5528_v33 = vld [vmem:[%s7258_s17 + $0xa8] sm:$0xff]  }
0x1c3e   : > { %5201 = vmatprep.subr.bf16.mxu0 %v5670_v3 }
0x1c41   : > { %5202 = vmatpush3.bf16.msra.mxu0 %v5516_v46 }
0x1c42   : > { %5203 = vmatprep.subr.bf16.mxu0 %v5670_v3 }
0x1c45   : > { %5204 = vmatpush3.bf16.msra.mxu0 %v5517_v2 }
0x1cb8   : > { %v4178_v15 = vpop.xlane.xlu1 %4177 }
0x1cb9   : > { %v4182_v21 = vmul.f32 0.03125, %v4178_v15 }
0x1cbb   : > { %v4184_v60 = vsub.f32 %v4170_v18, %v4182_v21 }
0x1cbc   : > { %v4181_v16 = vpop.xlane.xlu0 %4180 }
0x1cbd   : > { %v4183_v24 = vmul.f32 0.03125, %v4181_v16  ;;  %v4186_v28 = vmul.f32 %v4184_v60, %v4184_v60 }
0x1cbf   : > { %v4185_v5 = vsub.f32 %v4171_v8, %v4183_v24  ;;  %v4188_v50 = vsel %vm1017_vm4, %v4186_v28, 0.0 }
0x1cc0   : > { %4189 = vadd.xlane.f32.xlu1 %v4188_v50 }
0x1cc1   : > { %v4187_v58 = vmul.f32 %v4185_v5, %v4185_v5 }
0x1cc3   : > { %v4191_v48 = vsel %vm1017_vm4, %v4187_v58, 0.0 }
0x1cc4   : > { %4192 = vadd.xlane.f32.xlu0 %v4191_v48 }
0x1d49   : > { %v4190_v45 = vpop.xlane.xlu1 %4189 }
0x1d4a   : > { %v4194_v62 = vmul.f32 0.03125, %v4190_v45  ;;  %v5519_v45 = vld [vmem:[%s7258_s17 + $0x90] sm:$0xff]  }
0x1d4b   : > { %4551 = vmatpush1.bf16.msra.mxu1 %v5519_v45 }
0x1d4c   : > { %v4196_v51 = vadd.f32 0.0001, %v4194_v62  ;;  %v5520_v62 = vld [vmem:[%s7258_s17 + $0x88] sm:$0xff]   ;;  %4552 = vmatprep.subr.bf16.mxu1 %v5669_v1 }
0x1d4d   : > { %v4193_v7 = vpop.xlane.xlu0 %4192 }
0x1d4e   : > { %5570 = vrsqrt.f32 %v4196_v51  ;;  %v4195_v22 = vmul.f32 0.03125, %v4193_v7  ;;  %v5521_v51 = vld [vmem:[%s7258_s17 + $0x80] sm:$0xff]   ;;  %v5522_v7 = vld [vmem:[%s7258_s17 + $0x78] sm:$0xff]  }
0x1d4f   : > { %4553 = vmatpush1.bf16.msra.mxu1 %v5520_v62 }
0x1d50   : > { %v4197_v37 = vadd.f32 0.0001, %v4195_v22  ;;  %4554 = vmatprep.subr.bf16.mxu1 %v5669_v1  ;;  %v5523_v22 = vld [vmem:[%s7258_s17 + $0x70] sm:$0xff]  }
0x1d52   : > { %5572 = vrsqrt.f32 %v4197_v37  ;;  %v5524_v37 = vld [vmem:[%s7258_s17 + $0x68] sm:$0xff]  }
0x1d53   : > { %4555 = vmatpush1.bf16.msra.mxu1 %v5521_v51 }
0x1d54   : > { %4556 = vmatprep.subr.bf16.mxu1 %v5669_v1 }
0x1d57   : > { %4557 = vmatpush1.bf16.msra.mxu1 %v5522_v7  ;;  %v4965_v7 = vld [vmem:[%s5829_s13 + $0x1] ss:$0 sm:$0xff] }
0x1d58   : > { %4558 = vmatprep.subr.bf16.mxu1 %v5669_v1 }
0x1d5b   : > { %v5571_v14 = vpop.eup %5570  ;;  %4559 = vmatpush1.bf16.msra.mxu1 %v5523_v22 }
0x1d5c   : > { %v4200_v23 = vmul.f32 %v5571_v14, %v4184_v60  ;;  %4560 = vmatprep.subr.bf16.mxu1 %v5669_v1  ;;  %v5525_v14 = vld [vmem:[%s7258_s17 + $0x60] sm:$0xff]  }
0x1d5e   : > { %v4208_v53 = vmul.f32 %v4917_v54, %v4200_v23 }
0x1d5f   : > { %v5573_v39 = vpop.eup %5572  ;;  %4561 = vmatpush1.bf16.msra.mxu1 %v5524_v37 }
0x1d60   : > { %v4201_v32 = vmul.f32 %v5573_v39, %v4185_v5  ;;  %v7033_v35 = vadd.f32 %v4918_v52, %v4208_v53  ;;  %4562 = vmatprep.subr.bf16.mxu1 %v5669_v1 }
0x1d62   : > { %v4209_v29 = vmul.f32 %v4917_v54, %v4201_v32  ;;  %v4218_v11 = vmul.f32 %v7033_v35, %v6151_v25  ;;  %v4932_v54 = vld [vmem:[%s7260_s19 + $0x1] ss:$0 sm:$0xff] }
0x1d63   : > { %4563 = vmatpush1.bf16.msra.mxu1 %v5525_v14 }
0x1d64   : > { %v7037_v56 = vadd.f32 %v4918_v52, %v4209_v29  ;;  %v4237_v30 = vrot.slane %v4218_v11, 1  ;;  %v4249_v13 = vrot.slane %v4218_v11, 2  ;;  %4572 = vmatprep.subr.bf16.mxu1 %v5669_v1 }
0x1d66   : > { %v4219_v61 = vmul.f32 %v7037_v56, %v6153_v4 }
0x1d67   : > { %4573 = vmatpush2.bf16.msra.mxu1 %v5526_v27 }
0x1d68   : > { %v4238_v57 = vrot.slane %v4219_v61, 1  ;;  %v4250_v12 = vrot.slane %v4219_v61, 2  ;;  %4574 = vmatprep.subr.bf16.mxu1 %v5669_v1 }
0x1d6a   : > { %4244 = vrot.lane.b32.xlu0 %v4238_v57, %s7254_s14  ;;  %v4239_v38 = vsel %vm7285_vm9, %v4237_v30, %v4238_v57  ;;  %v4251_v20 = vsel %vm7286_vm10, %v4249_v13, %v4250_v12  ;;  %v4252_v26 = vsel %vm7287_vm11, %v4250_v12, %v6631_v9  ;;  %vm7300_vm9 = vmmov %vm7297_vm2 }
0x1d6b   : > { %v5437_v10 = vpack.i.bf16 %v4239_v38, %v4237_v30  ;;  %v5442_v17 = vpack.i.bf16 %v4251_v20, %v4249_v13  ;;  %v5527_v30 = vld [vmem:[%s7258_s17 + $0xb0] sm:$0xff]   ;;  %vm7301_vm10 = vmmov %vm7291_vm0 }
0x1d6c   : > { %4575 = vmatpush2.bf16.msra.mxu1 %v5527_v30 }
0x1d6d   : > { %5438 = vrot.lane.b32.xlu1 %v5437_v10, %s7254_s14  ;;  %4576 = vmatprep.subr.bf16.mxu1 %v5669_v1  ;;  %s919_s14 = sand.u32 1, %s5630_s10  }
0x1d6e   : > { %s7125_s5 = scalar_lea.sflag [#allocation3], %s919_s14 }
0x1d70   : > { %4577 = vmatpush2.bf16.msra.mxu1 %v5528_v33 }
0x1d71   : > { %5443 = vrot.lane.b32.xlu1 %v5442_v17, %s7247_s16  ;;  %4578 = vmatprep.subr.bf16.mxu1 %v5669_v1 }
0x1d75   : > { %4257 = vrot.lane.b32.xlu1 %v4252_v26, %s7247_s16 }
0x1ddc   : > { %v4245_v49 = vpop.permute.xlu0 %4244 }
0x1ddd   : > { %v4264_v36 = vsel %vm1017_vm4, %v4219_v61, %v4245_v49 }
0x1ddf   : > { %v5439_v0 = vpop.permute.xlu1 %5438 }
0x1de0   : > { %v5441_v47 = vunpack.i.h.bf16 %v5439_v0  ;;  %v5440_v42 = vunpack.i.l.bf16 %v5439_v0 }
0x1de2   : > { %v4263_v59 = vsel %vm1017_vm4, %v4218_v11, %v5441_v47  ;;  %v4262_v34 = vsel %vm1017_vm4, 0.0, %v5440_v42 }
0x1de3   : > { %v5444_v43 = vpop.permute.xlu1 %5443 }
0x1de4   : > { %v5446_v44 = vunpack.i.h.bf16 %v5444_v43  ;;  %v5445_v6 = vunpack.i.l.bf16 %v5444_v43 }
0x1de6   : > { %v4265_v18 = vsel %vm7288_vm12, %v4262_v34, %v5445_v6  ;;  %v4266_v3 = vsel %vm7289_vm13, %v4263_v59, %v5446_v44  ;;  %v5529_v44 = vld [vmem:[%s7258_s17 + $0xa0] sm:$0xff]  }
0x1de7   : > { %v4268_v40 = vpack.c.bf16 %v4266_v3, %v4265_v18  ;;  %v4258_v19 = vpop.permute.xlu1 %4257  ;;  %4579 = vmatpush2.bf16.msra.mxu1 %v5529_v44 }
0x1de8   : > { %v4267_v55 = vsel %vm7290_vm5, %v4264_v36, %v4258_v19 }
0x1de9   : > { %v4277_v8 = vshrl.u32 %v4268_v40, 16  ;;  %v4280_v63 = vshll.u32 %v4268_v40, 16  ;;  %v4269_v15 = vpack.c.bf16 %v4267_v55, %v4267_v55 }
0x1deb   : > { %v4279_v21 = vrot.slane %v4277_v8, 3  ;;  %v4282_v60 = vrot.slane %v4280_v63, 4  ;;  %v4285_v16 = vshrl.u32 %v4269_v15, 16  ;;  %v4288_v24 = vshll.u32 %v4269_v15, 16 }
0x1ded   : > { %v4287_v28 = vrot.slane %v4285_v16, 3  ;;  %v4290_v5 = vrot.slane %v4288_v24, 4  ;;  %v4283_v58 = vor.u32 %v4282_v60, %v4279_v21 }
0x1def   : > { %v4291_v50 = vor.u32 %v4290_v5, %v4287_v28 }
0x1df1   : > { %v4292_v48 = vsel %vm7291_vm0, %v4283_v58, %v4291_v50 }
0x1df2   : > { %5206 = vmatmul.mubr.msk.bf16.vlgmr.msra.gmra.mxu0 %vm7292_vm1, %v4292_v48 }
0x1eb2   : > { %v4366_v23 = vpop.f32.mrf.mxu0 }
0x1eb3   : > { %v4367_v52 = vadd.f32 %v4932_v54, %v4366_v23 }
0x1eb4   : > { %v5207_v31 = vpop.f32.mrf.mxu0 }
0x1eb5   : > { %v4373_v53 = vmax.f32 %v4367_v52, 0.0 }
0x1eb6   : > { %v4369_v39 = vpop.f32.mrf.mxu0 }
0x1eb7   : > { %v4370_v32 = vadd.f32 %v4932_v54, %v4369_v39  ;;  %v4375_v11 = vmul.f32 %v4373_v53, %v6151_v25 }
0x1eb8   : > { %v5208_v29 = vpop.f32.mrf.mxu0 }
0x1eb9   : > { %v4374_v61 = vmax.f32 %v4370_v32, 0.0  ;;  %v4406_v12 = vrot.slane %v4375_v11, 1  ;;  %v4418_v38 = vrot.slane %v4375_v11, 2 }
0x1ebb   : > { %v4376_v57 = vmul.f32 %v4374_v61, %v6153_v4 }
0x1ebd   : > { %v4419_v13 = vrot.slane %v4376_v57, 2  ;;  %v4407_v10 = vrot.slane %v4376_v57, 1 }
0x1ebf   : > { %v4420_v20 = vsel %vm7293_vm14, %v4418_v38, %v4419_v13  ;;  %v4421_v17 = vsel %vm7294_vm6, %v4419_v13, %v6631_v9  ;;  %4413 = vrot.lane.b32.xlu0 %v4407_v10, %s7247_s16  ;;  %v4408_v46 = vsel %vm7295_vm15, %v4406_v12, %v4407_v10 }
0x1ec0   : > { %v4431_v2 = vpack.c.bf16 %v4421_v17, %v4421_v17  ;;  %v5447_v26 = vpack.i.bf16 %v4408_v46, %v4406_v12  ;;  %v4429_v0 = vpack.c.bf16 %v4420_v20, %v4418_v38 }
0x1ec2   : > { %5448 = vrot.lane.b32.xlu1 %v5447_v26, %s7247_s16  ;;  %v4456_v47 = vshrl.u32 %v4429_v0, 16  ;;  %v4459_v42 = vshll.u32 %v4429_v0, 16  ;;  %v4464_v43 = vshrl.u32 %v4431_v2, 16  ;;  %v4467_v49 = vshll.u32 %v4431_v2, 16  ;;  %s4773_s16 = sshll.u32 %s919_s14, 4 }
0x1ec3   : > { %s921_s20 = scalar_lea.vmem [#allocation2], %s4773_s16  ;;  %s5582_s16 = sshll.u32 %s5688_s0, 4  ;;  %s5583_s16 = int_to_ptr.vmem [resolvable:$false] %s5582_s16 }
0x1ec4   : > { %v4458_v9 = vrot.slane %v4456_v47, 3  ;;  %v4461_v6 = vrot.slane %v4459_v42, 4  ;;  %v4466_v59 = vrot.slane %v4464_v43, 3  ;;  %v4469_v34 = vrot.slane %v4467_v49, 4  ;;  %v4981_v47 = vld [vmem:[%s5834_s12 + $0x1] ss:$0 sm:$0xff] }
0x1ec5   : > { %v4982_v43 = vld [vmem:[%s5839_s27 + $0x1] ss:$0 sm:$0xff]  ;;  %s4657_s2 = sshll.u32 %s921_s20, 4  ;;  %s5584_s21 = scalar_lea.vmem %s5583_s16, 512  ;;  %s7121_s2 = int_to_ptr.vmem [resolvable:$true] %s4657_s2 }
0x1ec6   : > { %v4462_v18 = vor.u32 %v4461_v6, %v4458_v9  ;;  %v4470_v3 = vor.u32 %v4469_v34, %v4466_v59  ;;  %s5578_s6 = scalar_lea.vmem %s7121_s2, 256  ;;  %p5585_p0 = scmp.lt.s32.totalorder %s7121_s2, %s5583_s16 }
0x1ec7   : > { %p5579_p11 = scmp.ne.s32.totalorder %s7121_s2, %s5578_s6  ;;  %p5586_p1 = scmp.lt.s32.totalorder %s5584_s21, %s5578_s6 }
0x1ec8   : > { %v4471_v36 = vsel %vm7296_vm7, %v4462_v18, %v4470_v3 }
0x1ec9   : > { %4978 = vmatprep.mubr.msk.bf16.mxu1 %vm7297_vm2, %v4471_v36  ;;  %p5580_p12 = pnand %p5579_p11, %p5884_p5  ;;  %p5587_p2 = por %p5586_p1, %p5585_p0 }
0x1ecb   : > { %p5581_p13 = pneg %p5580_p12 }
0x1ecd   : > { %p5588_p3 = pnand %p5587_p2, %p5581_p13 }
0x1f31   : > { %v4414_v40 = vpop.permute.xlu0 %4413 }
0x1f32   : > { %v4427_v19 = vsel %vm7298_vm3, %v4376_v57, %v4414_v40 }
0x1f33   : > { %v4430_v55 = vpack.c.bf16 %v4427_v19, %v4427_v19 }
0x1f34   : > { %v5449_v8 = vpop.permute.xlu1 %5448 }
0x1f35   : > { %v5451_v63 = vunpack.i.h.bf16 %v5449_v8  ;;  %v5450_v15 = vunpack.i.l.bf16 %v5449_v8  ;;  %v4447_v1 = vshrl.u32 %v4430_v55, 16  ;;  %v4450_v21 = vshll.u32 %v4430_v55, 16 }
0x1f37   : > { %v4426_v60 = vsel %vm7299_vm8, %v4375_v11, %v5451_v63  ;;  %v4425_v16 = vsel %vm7300_vm9, 0.0, %v5450_v15  ;;  %v4449_v28 = vrot.slane %v4447_v1, 3  ;;  %v4452_v5 = vrot.slane %v4450_v21, 4 }
0x1f38   : > { %v4428_v24 = vpack.c.bf16 %v4426_v60, %v4425_v16 }
0x1f39   : > { %v4453_v45 = vor.u32 %v4452_v5, %v4449_v28 }
0x1f3a   : > { %v4439_v50 = vshrl.u32 %v4428_v24, 16  ;;  %v4442_v58 = vshll.u32 %v4428_v24, 16 }
0x1f3c   : > { %v4441_v48 = vrot.slane %v4439_v50, 3  ;;  %v4444_v41 = vrot.slane %v4442_v58, 4 }
0x1f3e   : > { %v4445_v62 = vor.u32 %v4444_v41, %v4441_v48 }
0x1f40   : > { %v4454_v51 = vsel %vm7301_vm10, %v4445_v62, %v4453_v45 }
0x1f41   : > { %4581 = vmatmul.mubr.bf16.vlgmr.msra.gmra.mxu1 %v4454_v51 }
0x2001   : > { %v4582_v22 = vpop.f32.mrf.mxu1 }
0x2002   : > { %v4583_v37 = vadd.f32 %v4965_v7, %v4582_v22 }
0x2003   : > { %v4584_v14 = vpop.f32.mrf.mxu1 }
0x2004   : > { %v4589_v54 = vmul.f32 %v4583_v37, %v6151_v25 }
0x2005   : > { %v4585_v23 = vpop.f32.mrf.mxu1 }
0x2006   : > { %v4586_v52 = vadd.f32 %v4965_v7, %v4585_v23  ;;  %v4591_v31 = vadd.f32 %v4589_v54, %v7033_v35 }
0x2007   : > { %v4587_v53 = vpop.f32.mrf.mxu1 }
0x2008   : > { %v4590_v39 = vmul.f32 %v4586_v52, %v6153_v4  ;;  %v4597_v32 = vsel %vm1017_vm4, %v4591_v31, 0.0 }
0x2009   : > { %4598 = vadd.xlane.f32.xlu1 %v4597_v32 }
0x200a   : > { %v4592_v29 = vadd.f32 %v4590_v39, %v7037_v56 }
0x200c   : > { %v4600_v27 = vsel %vm1017_vm4, %v4592_v29, 0.0 }
0x200d   : > { %4601 = vadd.xlane.f32.xlu0 %v4600_v27 }
0x2092   : > { %v4599_v11 = vpop.xlane.xlu1 %4598 }
0x2093   : > { %v4603_v61 = vmul.f32 0.03125, %v4599_v11 }
0x2095   : > { %v4605_v57 = vsub.f32 %v4591_v31, %v4603_v61 }
0x2096   : > { %v4602_v30 = vpop.xlane.xlu0 %4601 }
0x2097   : > { %v4604_v12 = vmul.f32 0.03125, %v4602_v30  ;;  %v4607_v38 = vmul.f32 %v4605_v57, %v4605_v57 }
0x2099   : > { %v4606_v13 = vsub.f32 %v4592_v29, %v4604_v12  ;;  %v4609_v35 = vsel %vm1017_vm4, %v4607_v38, 0.0 }
0x209a   : > { %4610 = vadd.xlane.f32.xlu0 %v4609_v35 }
0x209b   : > { %v4608_v10 = vmul.f32 %v4606_v13, %v4606_v13 }
0x209d   : > { %v4612_v33 = vsel %vm1017_vm4, %v4608_v10, 0.0 }
0x209e   : > { %4613 = vadd.xlane.f32.xlu0 %v4612_v33 }
0x2123   : > { %v4611_v56 = vpop.xlane.xlu0 %4610 }
0x2124   : > { %v4615_v20 = vmul.f32 0.03125, %v4611_v56 }
0x2126   : > { %v4617_v17 = vadd.f32 0.0001, %v4615_v20 }
0x2127   : > { %v4614_v46 = vpop.xlane.xlu0 %4613 }
0x2128   : > { %5574 = vrsqrt.f32 %v4617_v17  ;;  %v4616_v2 = vmul.f32 0.03125, %v4614_v46 }
0x212a   : > { %v4618_v26 = vadd.f32 0.0001, %v4616_v2 }
0x212c   : > { %5576 = vrsqrt.f32 %v4618_v26 }
0x2135   : > { %v5575_v0 = vpop.eup %5574 }
0x2136   : > { %v4621_v42 = vmul.f32 %v5575_v0, %v4605_v57 }
0x2138   : > { %v4629_v49 = vmul.f32 %v4981_v47, %v4621_v42 }
0x2139   : > { %v5577_v44 = vpop.eup %5576 }
0x213a   : > { %v4622_v9 = vmul.f32 %v5577_v44, %v4606_v13  ;;  %v4637_v6 = vadd.f32 %v4982_v43, %v4629_v49 }
0x213c   : > { %v4630_v59 = vmul.f32 %v4981_v47, %v4622_v9  ;;  %v4639_v34 = vmul.f32 %v4637_v6, %v6151_v25 }
0x213e   : > { %v4638_v18 = vadd.f32 %v4982_v43, %v4630_v59  ;;  %4641 = vst.msk [vmem:[%s921_s20] sm:$0xff] %vm1017_vm4, %v4639_v34 }
0x2140   : > { %v4640_v3 = vmul.f32 %v4638_v18, %v6153_v4 }
0x2142   : > { %4642 = vst.msk [vmem:[%s921_s20 + $0x8] sm:$0xff] %vm1017_vm4, %v4640_v3 }
0x2143   : > { %5591 = shalt.err (!%p5588_p3)
}
0x2144   : > { %s5592_s14 = scalar_lea.hbm %s7119_s3, 256  ;;  %s5596_s20 = scalar_lea.hbm %s5844_s4, 512 }
0x2145   : > { %p5593_p4 = scmp.ne.s32.totalorder %s7119_s3, %s5592_s14  ;;  %p5597_p9 = scmp.lt.s32.totalorder %s7119_s3, %s5844_s4 }
0x2146   : > { %p5598_p10 = scmp.lt.s32.totalorder %s5596_s20, %s5592_s14 }
0x2147   : > { %p5594_p7 = pnand %p5593_p4, %p5884_p5 }
0x2148   : > { %p5599_p11 = por %p5598_p10, %p5597_p9 }
0x2149   : > { %p5595_p8 = pneg %p5594_p7 }
0x214b   : > { %p5600_p12 = pnand %p5599_p11, %p5595_p8 }
0x214d   : > { %5603 = shalt.err (!%p5600_p12)
}
0x214e   : > { %s5689_s6 = smov 128   ;;  %s5690_s0 = smov 8  }
0x214f   : > { %5209 = dma.vmem_to_hbm [thread:$0]  (%p5884_p5), %s7121_s2, 256, %s7119_s3, %s7125_s5, %s5689_s6, %s5689_s6, %s5690_s0  }
0x2150 PF: > { %p5215_p13 = scmp.ge.s32.totalorder %s5638_s15, 2  ;;  %s4672_s16 = sand.u32 1, %s5626_s7  }
0x2151   : > { %s4673_s21 = scalar_lea.sflag [#allocation3], %s4672_s16 }
0x2152   : > { %p5212_p0 = pnand %p5215_p13, %p5888_p6 }
0x2154   : > { %p5213_p1 = pneg %p5212_p0 }
0x2156   : > { %5621 = dma.done.wait (%p5213_p1), %s4673_s21, 256  }
0x2157   : > { %5623 = vsyncadd (%p5213_p1), %s4673_s21, 4294967040  ;;  %p69_p2 = scmp.ge.s32.totalorder %s5871_s18, 4   ;;  %s7302_s7 = smov %s5630_s10 }
0x2158   : > { %s7303_s10 = smov %s5634_s11  ;;  %s7304_s11 = smov %s5882_s26 }
0x2159   : > { %s7305_s15 = smov %s5871_s18  ;;  %71 = sbr.rel (!%p69_p2) target bundleno = 60 (0x3c), region = 220 }
0x215e   :  { %4678 = vsyncpa [#allocation3], 1 }
0x215f   :  { %4680 = vsyncpa [#allocation3 + $0x1], 1 }

</bundles_post_ra>
